<compile_context>
chip_gen: v7x
topology: tpu7x:2x2x1
jax: 0.10.0
libtpu: 0.0.40
codegen_flags: <defaults>
</compile_context>

<pallas_src>
import functools
import math

import jax
import jax.numpy as jnp
from jax import lax
from jax.experimental import pallas as pl
from jax.experimental.pallas import tpu as pltpu

LN_EPS = 1e-5
_GELU_C = math.sqrt(2.0 / math.pi)
_BF16 = jnp.bfloat16
_F32 = jnp.float32

# rows of the packed (11, C) vector slab
_VC = {"ln1_g": 0, "ln1_b": 1, "b_c1": 2, "b_c2": 3, "b_lin1": 4, "b_proj": 5,
       "sc_g": 6, "sc_b": 7, "ln2_g": 8, "ln2_b": 9, "b_fc2": 10}

PACKED_ORDER = ("w_qkv_h", "w_proj_h", "w_cc", "w_ll", "w_mlp", "vec_c", "vec_lc", "b_fc1")


# ----------------------------- shared math helpers ---------------------------

def _layernorm(x, g, b):
    m = jnp.mean(x, axis=-1, keepdims=True)
    v = jnp.mean((x - m) ** 2, axis=-1, keepdims=True)
    return (x - m) * lax.rsqrt(v + LN_EPS) * g + b


def _gelu_tanh(x):
    return 0.5 * x * (1.0 + jnp.tanh(_GELU_C * (x + 0.044715 * x * x * x)))


def _softmax_ref(x, axis=-1):
    m = jnp.max(x, axis=axis, keepdims=True)
    e = jnp.exp(x - m)
    return e / jnp.sum(e, axis=axis, keepdims=True)


# ------------------------ in-kernel matmul / softmax -------------------------

def _softmax_k(x, axis=-1):
    """f32 softmax; the divide goes to the EUP via approximate reciprocal."""
    m = jnp.max(x, axis=axis, keepdims=True)
    e = jnp.exp(x - m)
    return e * pl.reciprocal(jnp.sum(e, axis=axis, keepdims=True), approx=True)


def _mm(a, b):                       # (M,K) @ (K,N) -> f32 accum
    return lax.dot_general(a.astype(_BF16), b.astype(_BF16),
                           (((1,), (0,)), ((), ())), preferred_element_type=_F32)


def _mm_tb(a, b):                    # (M,K) @ (N,K)^T -> f32 accum
    return lax.dot_general(a.astype(_BF16), b.astype(_BF16),
                           (((1,), (1,)), ((), ())), preferred_element_type=_F32)


def _bmm(a, b):                      # (G,M,K) @ (G,K,N) -> f32 accum
    return lax.dot_general(a.astype(_BF16), b.astype(_BF16),
                           (((2,), (1,)), ((0,), (0,))), preferred_element_type=_F32)


def _bmm_tb(a, b):                   # (G,M,K) @ (G,N,K)^T -> f32 accum
    return lax.dot_general(a.astype(_BF16), b.astype(_BF16),
                           (((2,), (2,)), ((0,), (0,))), preferred_element_type=_F32)


# ------------------------------- Pallas kernel -------------------------------

def _block_t_kernel(x_ref,
                    w_qkv_h, w_proj_h, w_cc, w_ll, w_mlp, vec_c, vec_lc, b_fc1,
                    o_ref, *, seq_len, num_heads):
    L, H = seq_len, num_heads
    N, C = x_ref.shape                                    # N = BB * L rows in this block
    BB = N // L

    def vc(name):
        r = _VC[name]
        return vec_c[r:r + 1, :]                          # (1, C) f32 row

    x = x_ref[...]                                        # (N, C) f32
    xn = _layernorm(x, vc("ln1_g"), vc("ln1_b"))          # norm1 (shared by both branches)
    xn16 = xn.astype(_BF16)

    # token-parallel linears of the spatial/channel branch, flattened over BB*L rows
    x1 = _mm(xn16, w_cc[0]) + vc("b_c1")                  # linear_c1  (N, C)
    x2 = _mm(xn16, w_cc[1]) + vc("b_c2")                  # linear_c2  (N, C)

    wq = w_qkv_h[...]                                     # (3H, C, hd) bf16, scale folded in Q
    wp = w_proj_h[...]                                    # (H, hd, C) bf16
    wl1t, wl2t, wlin2t = w_ll[0], w_ll[1], w_ll[2]        # (L, L) bf16 (pre-transposed)
    wlin1 = w_cc[2]                                       # (C, C) bf16
    bl1, bl2, blin2 = vec_lc[0], vec_lc[1], vec_lc[2]     # (L, 1) f32 column biases

    branches = []
    for b in range(BB):                                   # static small loop (BB = 1 or 2)
        sl = slice(b * L, (b + 1) * L)
        xn_b, xb16 = xn[sl], xn16[sl]                     # (L, C)

        # ---- branch 1: multi-head self-attention (head-batched, no lane slicing) ----
        rep = jnp.broadcast_to(xb16[None], (3 * H, L, C))
        qkv = _bmm(rep, wq)                               # (3H, L, hd)
        q, k, v = qkv[:H], qkv[H:2 * H], qkv[2 * H:]
        p = _softmax_k(_bmm_tb(q, k), axis=-1)            # (H, L, L); scale already in Wq
        ctx = _bmm(p, v)                                  # (H, L, hd)
        attn_b = jnp.sum(_bmm(ctx, wp), axis=0) + vc("b_proj")      # (L, C)

        # ---- branch 2: Spatial_Channel_Attn_Trans (transpose-free formulation) ----
        xl1t = _mm(wl1t, xb16) + bl1                      # (L, C) == (xn^T W_l1 + b_l1)^T
        xl2t = _mm(wl2t, xb16) + bl2                      # (L, C) == (xn^T W_l2 + b_l2)^T
        m1 = _mm_tb(xb16, xl1t)                           # (L, L) == xn @ xl1
        u = _mm(m1, xl2t)                                 # (L, C) == xn @ map_c
        y1 = _mm(u, wlin1) + vc("b_lin1")                 # (L, C) == linear1(...)
        ml_t = _mm_tb(x2[sl], x1[sl])                     # (L, L) == map_l^T
        tt = _mm(wlin2t, _mm(ml_t, y1)) + blin2           # (L, C) == linear2(...)^T
        s1 = _softmax_k(tt, axis=0)                       # softmax over L
        s2 = _softmax_k(s1, axis=-1)                      # softmax over C
        sc_b_out = _layernorm(xn_b + s2, vc("sc_g"), vc("sc_b"))

        branches.append(attn_b + sc_b_out)

    # residual #1 (DropPath / Dropout are identity in eval mode)
    z = x + (jnp.concatenate(branches, axis=0) if BB > 1 else branches[0])

    # ---- norm2 + MLP + residual #2 (flattened over BB*L rows) ----
    zn = _layernorm(z, vc("ln2_g"), vc("ln2_b"))
    h1 = _gelu_tanh(_mm(zn, w_mlp[0]) + b_fc1[...])       # fc1 + GELU  (N, 4C)
    h2 = _mm_tb(h1, w_mlp[1]) + vc("b_fc2")               # fc2 (w_fc2 stored transposed)
    o_ref[...] = z + h2


# --------------------------------- wrapper -----------------------------------

def _const_index_map(ndim):
    zeros = (0,) * ndim
    return lambda i: zeros


def attention_trans_forward(x, packed, num_heads, block_b=None):
    """attentionTrans(in_channels=C, head=num_heads, L=L).forward(x) for x:(B,L,C), eval mode."""
    B, L, C = x.shape
    assert C % num_heads == 0
    if block_b is None:
        # keep >=2 grid blocks whenever possible so both v7x TensorCores stay busy
        block_b = B // 2 if (B % 2 == 0 and B >= 2) else 1
    assert B % block_b == 0
    N = block_b * L

    flat = [packed[k] for k in PACKED_ORDER]
    kernel = functools.partial(_block_t_kernel, seq_len=L, num_heads=num_heads)

    in_specs = [pl.BlockSpec((N, C), lambda i: (i, 0))]
    in_specs += [pl.BlockSpec(p.shape, _const_index_map(p.ndim)) for p in flat]

    out2d = pl.pallas_call(
        kernel,
        out_shape=jax.ShapeDtypeStruct((B * L, C), jnp.float32),
        grid=(B // block_b,),
        in_specs=in_specs,
        out_specs=pl.BlockSpec((N, C), lambda i: (i, 0)),
        compiler_params=pltpu.CompilerParams(
            dimension_semantics=("parallel",),
            # explicit VMEM budget (trivially satisfied at these shapes); re-derive the
            # residency of the LxL / CxC maps before scaling L/C (v7x: 64 MiB physical).
            vmem_limit_bytes=32 * 1024 * 1024),
    )(x.reshape(B * L, C), *flat)
    return out2d.reshape(B, L, C)


# ---------------------- deterministic parameters & packing -------------------
# Linear weights are stored as (in_features, out_features); biases / LN params as (1, dim).

def init_params(key, dim, seq_len):
    C, L, Hd = dim, seq_len, 4 * dim
    keys = iter(jax.random.split(key, 32))

    def nrm(shape, s=0.1):
        return s * jax.random.normal(next(keys), shape, jnp.float32)

    def one(shape):
        return 1.0 + 0.1 * jax.random.normal(next(keys), shape, jnp.float32)

    return {
        "ln1_g": one((1, C)), "ln1_b": nrm((1, C)),
        "w_qkv": nrm((C, 3 * C)),                       # qkv_bias=False
        "w_proj": nrm((C, C)), "b_proj": nrm((1, C)),
        "w_c1": nrm((C, C)), "b_c1": nrm((1, C)),
        "w_c2": nrm((C, C)), "b_c2": nrm((1, C)),
        "w_l1": nrm((L, L)), "b_l1": nrm((1, L)),
        "w_l2": nrm((L, L)), "b_l2": nrm((1, L)),
        "w_lin1": nrm((C, C)), "b_lin1": nrm((1, C)),
        "w_lin2": nrm((L, L)), "b_lin2": nrm((1, L)),
        "sc_g": one((1, C)), "sc_b": nrm((1, C)),
        "ln2_g": one((1, C)), "ln2_b": nrm((1, C)),
        "w_fc1": nrm((C, Hd)), "b_fc1": nrm((1, Hd)),
        "w_fc2": nrm((Hd, C)), "b_fc2": nrm((1, C)),
        # NOTE: Spatial_Channel_Attn_Trans.proj is defined but never used in forward().
    }


def pack_params(params, num_heads):
    """One-time prep: fold the attention scale into Wq, split per-head, pre-transpose the
    L-weights / fc2, cast MXU weights to bf16, and pack everything into a few slabs."""
    C = params["w_qkv"].shape[0]
    L = params["w_l1"].shape[0]
    H = num_heads
    hd = C // H
    scale = hd ** -0.5

    def heads_in(w):                 # (C, C) -> (H, C, hd), split along output columns
        return jnp.stack([w[:, h * hd:(h + 1) * hd] for h in range(H)], axis=0)

    wq = heads_in(params["w_qkv"][:, 0 * C:1 * C]) * scale       # scale folded here
    wk = heads_in(params["w_qkv"][:, 1 * C:2 * C])
    wv = heads_in(params["w_qkv"][:, 2 * C:3 * C])
    w_qkv_h = jnp.concatenate([wq, wk, wv], axis=0).astype(_BF16)            # (3H, C, hd)
    w_proj_h = jnp.stack([params["w_proj"][h * hd:(h + 1) * hd, :]
                          for h in range(H)], axis=0).astype(_BF16)          # (H, hd, C)

    w_cc = jnp.stack([params["w_c1"], params["w_c2"], params["w_lin1"]],
                     axis=0).astype(_BF16)                                   # (3, C, C)
    w_ll = jnp.stack([params["w_l1"].T, params["w_l2"].T, params["w_lin2"].T],
                     axis=0).astype(_BF16)                                   # (3, L, L)
    w_mlp = jnp.stack([params["w_fc1"], params["w_fc2"].T], axis=0).astype(_BF16)  # (2, C, 4C)

    vec_c = jnp.concatenate(
        [params[k] for k in ("ln1_g", "ln1_b", "b_c1", "b_c2", "b_lin1", "b_proj",
                             "sc_g", "sc_b", "ln2_g", "ln2_b", "b_fc2")],
        axis=0).astype(_F32)                                                  # (11, C)
    vec_lc = jnp.stack([params["b_l1"].reshape(L, 1), params["b_l2"].reshape(L, 1),
                        params["b_lin2"].reshape(L, 1)], axis=0).astype(_F32)  # (3, L, 1)

    return {"w_qkv_h": w_qkv_h, "w_proj_h": w_proj_h, "w_cc": w_cc, "w_ll": w_ll,
            "w_mlp": w_mlp, "vec_c": vec_c, "vec_lc": vec_lc,
            "b_fc1": params["b_fc1"].astype(_F32)}


# ----------------------------- pure-JAX reference ----------------------------

def ref_attention_trans(x, p, num_heads):
    B, L, C = x.shape
    hd = C // num_heads
    scale = hd ** -0.5
    hi = jax.lax.Precision.HIGHEST
    mm = functools.partial(jnp.matmul, precision=hi)

    xn = _layernorm(x, p["ln1_g"], p["ln1_b"])

    # multi-head self-attention
    qkv = mm(xn, p["w_qkv"]).reshape(B, L, 3, num_heads, hd).transpose(2, 0, 3, 1, 4)
    q, k, v = qkv[0], qkv[1], qkv[2]                      # (B, H, L, hd)
    a = _softmax_ref(jnp.einsum("bhqd,bhkd->bhqk", q, k, precision=hi) * scale)
    ao = jnp.einsum("bhqk,bhkd->bhqd", a, v, precision=hi)
    ao = ao.transpose(0, 2, 1, 3).reshape(B, L, C)
    ao = mm(ao, p["w_proj"]) + p["b_proj"]

    # Spatial_Channel_Attn_Trans
    x1 = mm(xn, p["w_c1"]) + p["b_c1"]
    x2 = mm(xn, p["w_c2"]) + p["b_c2"]
    xt = jnp.swapaxes(xn, 1, 2)
    xl1 = mm(xt, p["w_l1"]) + p["b_l1"]
    xl2 = mm(xt, p["w_l2"]) + p["b_l2"]
    map_l = mm(x1, jnp.swapaxes(x2, 1, 2))
    map_c = mm(xl1, jnp.swapaxes(xl2, 1, 2))
    y = mm(mm(xn, map_c), p["w_lin1"]) + p["b_lin1"]
    y = mm(jnp.swapaxes(y, 1, 2), map_l)
    y = mm(y, p["w_lin2"]) + p["b_lin2"]
    y = _softmax_ref(y)
    y = _softmax_ref(jnp.swapaxes(y, 1, 2))
    sc = _layernorm(xn + y, p["sc_g"], p["sc_b"])

    z = x + ao + sc
    zn = _layernorm(z, p["ln2_g"], p["ln2_b"])
    h = _gelu_tanh(mm(zn, p["w_fc1"]) + p["b_fc1"])
    return z + mm(h, p["w_fc2"]) + p["b_fc2"]


# ---------------------------------- main -------------------------------------

if __name__ == "__main__":
    B, L, C, HEADS = 4, 16, 32, 4     # attentionTrans(in_channels=32, head=4, L=16)
    key = jax.random.PRNGKey(0)
    kx, kp = jax.random.split(key)
    x = jax.random.normal(kx, (B, L, C), jnp.float32)
    params = init_params(kp, C, L)
    kparams = pack_params(params, HEADS)          # one-time weight packing / bf16 cast

    out = jax.block_until_ready(attention_trans_forward(x, kparams, num_heads=HEADS))
    assert out.shape == (B, L, C), out.shape

    ref = jax.block_until_ready(ref_attention_trans(x, params, num_heads=HEADS))
    # bf16 MXU operands + approximate-reciprocal softmax vs. an exact-f32 reference:
    # tolerance relaxed accordingly (structural bugs would show up as O(0.1-1) errors).
    max_err = float(jnp.max(jnp.abs(out - ref)))
    assert jnp.allclose(out, ref, rtol=5e-2, atol=5e-2), max_err

    print("KERNEL_OK")
</pallas_src>

<mosaic_0001>
module attributes {stable_mosaic.version = 11 : i64} {
  func.func @_block_t_kernel(%arg0: i32, %arg1: memref<32x32xf32, #tpu.memory_space<vmem>>, %arg2: memref<12x32x8xbf16, #tpu.memory_space<vmem>>, %arg3: memref<4x8x32xbf16, #tpu.memory_space<vmem>>, %arg4: memref<3x32x32xbf16, #tpu.memory_space<vmem>>, %arg5: memref<3x16x16xbf16, #tpu.memory_space<vmem>>, %arg6: memref<2x32x128xbf16, #tpu.memory_space<vmem>>, %arg7: memref<11x32xf32, #tpu.memory_space<vmem>>, %arg8: memref<3x16x1xf32, #tpu.memory_space<vmem>>, %arg9: memref<1x128xf32, #tpu.memory_space<vmem>>, %arg10: memref<32x32xf32, #tpu.memory_space<vmem>>) attributes {dimension_semantics = [#tpu.dimension_semantics<parallel>], iteration_bounds = array<i64: 2>, scalar_prefetch = 0 : i64, scratch_operands = 0 : i64, tpu.core_type = #tpu.core_type<tc>, window_params = [{transform_indices = @transform_0, window_bounds = array<i64: 32, 32>}, {pipeline_mode = #tpu.pipeline_mode<synchronous>, transform_indices = @transform_1, window_bounds = array<i64: 12, 32, 8>}, {pipeline_mode = #tpu.pipeline_mode<synchronous>, transform_indices = @transform_2, window_bounds = array<i64: 4, 8, 32>}, {pipeline_mode = #tpu.pipeline_mode<synchronous>, transform_indices = @transform_3, window_bounds = array<i64: 3, 32, 32>}, {pipeline_mode = #tpu.pipeline_mode<synchronous>, transform_indices = @transform_4, window_bounds = array<i64: 3, 16, 16>}, {pipeline_mode = #tpu.pipeline_mode<synchronous>, transform_indices = @transform_5, window_bounds = array<i64: 2, 32, 128>}, {pipeline_mode = #tpu.pipeline_mode<synchronous>, transform_indices = @transform_6, window_bounds = array<i64: 11, 32>}, {pipeline_mode = #tpu.pipeline_mode<synchronous>, transform_indices = @transform_7, window_bounds = array<i64: 3, 16, 1>}, {pipeline_mode = #tpu.pipeline_mode<synchronous>, transform_indices = @transform_8, window_bounds = array<i64: 1, 128>}, {transform_indices = @transform_9, window_bounds = array<i64: 32, 32>}]} {
    %c0 = arith.constant 0 : index
    %c0_0 = arith.constant 0 : index
    %0 = vector.load %arg1[%c0, %c0_0] : memref<32x32xf32, #tpu.memory_space<vmem>>, vector<32x32xf32>
    %c0_1 = arith.constant 0 : index
    %c0_2 = arith.constant 0 : index
    %1 = vector.load %arg7[%c0_1, %c0_2] : memref<11x32xf32, #tpu.memory_space<vmem>>, vector<1x32xf32>
    %c1 = arith.constant 1 : index
    %c0_3 = arith.constant 0 : index
    %2 = vector.load %arg7[%c1, %c0_3] : memref<11x32xf32, #tpu.memory_space<vmem>>, vector<1x32xf32>
    %cst = arith.constant dense<0.000000e+00> : vector<32xf32>
    %3 = vector.multi_reduction <add>, %0, %cst [1] : vector<32x32xf32> to vector<32xf32>
    %4 = vector.shape_cast %3 : vector<32xf32> to vector<32x1xf32>
    %cst_4 = arith.constant 3.200000e+01 : f32
    %5 = vector.broadcast %cst_4 : f32 to vector<32x1xf32>
    %6 = arith.divf %4, %5 : vector<32x1xf32>
    %7 = vector.broadcast %6 : vector<32x1xf32> to vector<32x32xf32>
    %8 = arith.subf %0, %7 : vector<32x32xf32>
    %9 = arith.mulf %8, %8 : vector<32x32xf32>
    %cst_5 = arith.constant dense<0.000000e+00> : vector<32xf32>
    %10 = vector.multi_reduction <add>, %9, %cst_5 [1] : vector<32x32xf32> to vector<32xf32>
    %11 = vector.shape_cast %10 : vector<32xf32> to vector<32x1xf32>
    %cst_6 = arith.constant 3.200000e+01 : f32
    %12 = vector.broadcast %cst_6 : f32 to vector<32x1xf32>
    %13 = arith.divf %11, %12 : vector<32x1xf32>
    %14 = vector.broadcast %6 : vector<32x1xf32> to vector<32x32xf32>
    %15 = arith.subf %0, %14 : vector<32x32xf32>
    %cst_7 = arith.constant 9.99999974E-6 : f32
    %16 = vector.broadcast %cst_7 : f32 to vector<32x1xf32>
    %17 = arith.addf %13, %16 : vector<32x1xf32>
    %18 = math.rsqrt %17 : vector<32x1xf32>
    %19 = vector.broadcast %18 : vector<32x1xf32> to vector<32x32xf32>
    %20 = arith.mulf %15, %19 : vector<32x32xf32>
    %21 = vector.broadcast %1 : vector<1x32xf32> to vector<32x32xf32>
    %22 = arith.mulf %20, %21 : vector<32x32xf32>
    %23 = vector.broadcast %2 : vector<1x32xf32> to vector<32x32xf32>
    %24 = arith.addf %22, %23 : vector<32x32xf32>
    %25 = arith.truncf %24 : vector<32x32xf32> to vector<32x32xbf16>
    %c0_8 = arith.constant 0 : index
    %c0_9 = arith.constant 0 : index
    %c0_10 = arith.constant 0 : index
    %26 = vector.load %arg4[%c0_8, %c0_9, %c0_10] : memref<3x32x32xbf16, #tpu.memory_space<vmem>>, vector<1x32x32xbf16>
    %27 = vector.shape_cast %26 : vector<1x32x32xbf16> to vector<32x32xbf16>
    %cst_11 = arith.constant dense<0.000000e+00> : vector<32x32xf32>
    %28 = tpu.matmul %25, %27, %cst_11 {dimension_numbers = #tpu.dot_dimension_numbers<[1], [0], [0], [1], [0, 0, 1, 1], [], []>} : vector<32x32xbf16>, vector<32x32xbf16>, vector<32x32xf32> -> vector<32x32xf32>
    %c2 = arith.constant 2 : index
    %c0_12 = arith.constant 0 : index
    %29 = vector.load %arg7[%c2, %c0_12] : memref<11x32xf32, #tpu.memory_space<vmem>>, vector<1x32xf32>
    %30 = vector.broadcast %29 : vector<1x32xf32> to vector<32x32xf32>
    %31 = arith.addf %28, %30 : vector<32x32xf32>
    %c1_13 = arith.constant 1 : index
    %c0_14 = arith.constant 0 : index
    %c0_15 = arith.constant 0 : index
    %32 = vector.load %arg4[%c1_13, %c0_14, %c0_15] : memref<3x32x32xbf16, #tpu.memory_space<vmem>>, vector<1x32x32xbf16>
    %33 = vector.shape_cast %32 : vector<1x32x32xbf16> to vector<32x32xbf16>
    %cst_16 = arith.constant dense<0.000000e+00> : vector<32x32xf32>
    %34 = tpu.matmul %25, %33, %cst_16 {dimension_numbers = #tpu.dot_dimension_numbers<[1], [0], [0], [1], [0, 0, 1, 1], [], []>} : vector<32x32xbf16>, vector<32x32xbf16>, vector<32x32xf32> -> vector<32x32xf32>
    %c3 = arith.constant 3 : index
    %c0_17 = arith.constant 0 : index
    %35 = vector.load %arg7[%c3, %c0_17] : memref<11x32xf32, #tpu.memory_space<vmem>>, vector<1x32xf32>
    %36 = vector.broadcast %35 : vector<1x32xf32> to vector<32x32xf32>
    %37 = arith.addf %34, %36 : vector<32x32xf32>
    %c0_18 = arith.constant 0 : index
    %c0_19 = arith.constant 0 : index
    %c0_20 = arith.constant 0 : index
    %38 = vector.load %arg2[%c0_18, %c0_19, %c0_20] : memref<12x32x8xbf16, #tpu.memory_space<vmem>>, vector<12x32x8xbf16>
    %c0_21 = arith.constant 0 : index
    %c0_22 = arith.constant 0 : index
    %c0_23 = arith.constant 0 : index
    %39 = vector.load %arg3[%c0_21, %c0_22, %c0_23] : memref<4x8x32xbf16, #tpu.memory_space<vmem>>, vector<4x8x32xbf16>
    %c0_24 = arith.constant 0 : index
    %c0_25 = arith.constant 0 : index
    %c0_26 = arith.constant 0 : index
    %40 = vector.load %arg5[%c0_24, %c0_25, %c0_26] : memref<3x16x16xbf16, #tpu.memory_space<vmem>>, vector<1x16x16xbf16>
    %41 = vector.shape_cast %40 : vector<1x16x16xbf16> to vector<16x16xbf16>
    %c1_27 = arith.constant 1 : index
    %c0_28 = arith.constant 0 : index
    %c0_29 = arith.constant 0 : index
    %42 = vector.load %arg5[%c1_27, %c0_28, %c0_29] : memref<3x16x16xbf16, #tpu.memory_space<vmem>>, vector<1x16x16xbf16>
    %43 = vector.shape_cast %42 : vector<1x16x16xbf16> to vector<16x16xbf16>
    %c2_30 = arith.constant 2 : index
    %c0_31 = arith.constant 0 : index
    %c0_32 = arith.constant 0 : index
    %44 = vector.load %arg5[%c2_30, %c0_31, %c0_32] : memref<3x16x16xbf16, #tpu.memory_space<vmem>>, vector<1x16x16xbf16>
    %45 = vector.shape_cast %44 : vector<1x16x16xbf16> to vector<16x16xbf16>
    %c2_33 = arith.constant 2 : index
    %c0_34 = arith.constant 0 : index
    %c0_35 = arith.constant 0 : index
    %46 = vector.load %arg4[%c2_33, %c0_34, %c0_35] : memref<3x32x32xbf16, #tpu.memory_space<vmem>>, vector<1x32x32xbf16>
    %47 = vector.shape_cast %46 : vector<1x32x32xbf16> to vector<32x32xbf16>
    %c0_36 = arith.constant 0 : index
    %c0_37 = arith.constant 0 : index
    %c0_38 = arith.constant 0 : index
    %48 = vector.load %arg8[%c0_36, %c0_37, %c0_38] : memref<3x16x1xf32, #tpu.memory_space<vmem>>, vector<1x16x1xf32>
    %49 = vector.shape_cast %48 : vector<1x16x1xf32> to vector<16x1xf32>
    %c1_39 = arith.constant 1 : index
    %c0_40 = arith.constant 0 : index
    %c0_41 = arith.constant 0 : index
    %50 = vector.load %arg8[%c1_39, %c0_40, %c0_41] : memref<3x16x1xf32, #tpu.memory_space<vmem>>, vector<1x16x1xf32>
    %51 = vector.shape_cast %50 : vector<1x16x1xf32> to vector<16x1xf32>
    %c2_42 = arith.constant 2 : index
    %c0_43 = arith.constant 0 : index
    %c0_44 = arith.constant 0 : index
    %52 = vector.load %arg8[%c2_42, %c0_43, %c0_44] : memref<3x16x1xf32, #tpu.memory_space<vmem>>, vector<1x16x1xf32>
    %53 = vector.shape_cast %52 : vector<1x16x1xf32> to vector<16x1xf32>
    %54 = vector.extract_strided_slice %24 {offsets = [0, 0], sizes = [16, 32], strides = [1, 1]} : vector<32x32xf32> to vector<16x32xf32>
    %55 = vector.extract_strided_slice %25 {offsets = [0, 0], sizes = [16, 32], strides = [1, 1]} : vector<32x32xbf16> to vector<16x32xbf16>
    %56 = vector.shape_cast %55 : vector<16x32xbf16> to vector<1x16x32xbf16>
    %57 = vector.shape_cast %56 : vector<1x16x32xbf16> to vector<1x16x32xbf16>
    %58 = vector.broadcast %57 : vector<1x16x32xbf16> to vector<12x16x32xbf16>
    %cst_45 = arith.constant dense<0.000000e+00> : vector<12x16x8xf32>
    %59 = tpu.matmul %58, %38, %cst_45 {dimension_numbers = #tpu.dot_dimension_numbers<[2], [1], [1], [2], [0, 0, 0, 1, 1, 2], [0], [0]>} : vector<12x16x32xbf16>, vector<12x32x8xbf16>, vector<12x16x8xf32> -> vector<12x16x8xf32>
    %60 = vector.extract_strided_slice %59 {offsets = [0, 0, 0], sizes = [4, 16, 8], strides = [1, 1, 1]} : vector<12x16x8xf32> to vector<4x16x8xf32>
    %61 = vector.extract_strided_slice %59 {offsets = [4, 0, 0], sizes = [4, 16, 8], strides = [1, 1, 1]} : vector<12x16x8xf32> to vector<4x16x8xf32>
    %62 = vector.extract_strided_slice %59 {offsets = [8, 0, 0], sizes = [4, 16, 8], strides = [1, 1, 1]} : vector<12x16x8xf32> to vector<4x16x8xf32>
    %63 = arith.truncf %60 : vector<4x16x8xf32> to vector<4x16x8xbf16>
    %64 = arith.truncf %61 : vector<4x16x8xf32> to vector<4x16x8xbf16>
    %cst_46 = arith.constant dense<0.000000e+00> : vector<4x16x16xf32>
    %65 = tpu.matmul %63, %64, %cst_46 {dimension_numbers = #tpu.dot_dimension_numbers<[2], [2], [1], [1], [0, 0, 0, 1, 1, 1], [0], [0]>} : vector<4x16x8xbf16>, vector<4x16x8xbf16>, vector<4x16x16xf32> -> vector<4x16x16xf32>
    %cst_47 = arith.constant dense<0xFF800000> : vector<4x16xf32>
    %66 = vector.multi_reduction <maximumf>, %65, %cst_47 [2] : vector<4x16x16xf32> to vector<4x16xf32>
    %67 = vector.shape_cast %66 : vector<4x16xf32> to vector<4x16x1xf32>
    %68 = vector.broadcast %67 : vector<4x16x1xf32> to vector<4x16x16xf32>
    %69 = arith.subf %65, %68 : vector<4x16x16xf32>
    %70 = math.exp %69 : vector<4x16x16xf32>
    %cst_48 = arith.constant dense<0.000000e+00> : vector<4x16xf32>
    %71 = vector.multi_reduction <add>, %70, %cst_48 [2] : vector<4x16x16xf32> to vector<4x16xf32>
    %72 = vector.shape_cast %71 : vector<4x16xf32> to vector<4x16x1xf32>
    %73 = tpu.reciprocal %72 {approx = true} : vector<4x16x1xf32> -> vector<4x16x1xf32>
    %74 = vector.broadcast %73 : vector<4x16x1xf32> to vector<4x16x16xf32>
    %75 = arith.mulf %70, %74 : vector<4x16x16xf32>
    %76 = arith.truncf %75 : vector<4x16x16xf32> to vector<4x16x16xbf16>
    %77 = arith.truncf %62 : vector<4x16x8xf32> to vector<4x16x8xbf16>
    %cst_49 = arith.constant dense<0.000000e+00> : vector<4x16x8xf32>
    %78 = tpu.matmul %76, %77, %cst_49 {dimension_numbers = #tpu.dot_dimension_numbers<[2], [1], [1], [2], [0, 0, 0, 1, 1, 2], [0], [0]>} : vector<4x16x16xbf16>, vector<4x16x8xbf16>, vector<4x16x8xf32> -> vector<4x16x8xf32>
    %79 = arith.truncf %78 : vector<4x16x8xf32> to vector<4x16x8xbf16>
    %cst_50 = arith.constant dense<0.000000e+00> : vector<4x16x32xf32>
    %80 = tpu.matmul %79, %39, %cst_50 {dimension_numbers = #tpu.dot_dimension_numbers<[2], [1], [1], [2], [0, 0, 0, 1, 1, 2], [0], [0]>} : vector<4x16x8xbf16>, vector<4x8x32xbf16>, vector<4x16x32xf32> -> vector<4x16x32xf32>
    %cst_51 = arith.constant dense<0.000000e+00> : vector<16x32xf32>
    %81 = vector.multi_reduction <add>, %80, %cst_51 [0] : vector<4x16x32xf32> to vector<16x32xf32>
    %c5 = arith.constant 5 : index
    %c0_52 = arith.constant 0 : index
    %82 = vector.load %arg7[%c5, %c0_52] : memref<11x32xf32, #tpu.memory_space<vmem>>, vector<1x32xf32>
    %83 = vector.broadcast %82 : vector<1x32xf32> to vector<16x32xf32>
    %84 = arith.addf %81, %83 : vector<16x32xf32>
    %cst_53 = arith.constant dense<0.000000e+00> : vector<16x32xf32>
    %85 = tpu.matmul %41, %55, %cst_53 {dimension_numbers = #tpu.dot_dimension_numbers<[1], [0], [0], [1], [0, 0, 1, 1], [], []>} : vector<16x16xbf16>, vector<16x32xbf16>, vector<16x32xf32> -> vector<16x32xf32>
    %86 = vector.broadcast %49 : vector<16x1xf32> to vector<16x32xf32>
    %87 = arith.addf %85, %86 : vector<16x32xf32>
    %cst_54 = arith.constant dense<0.000000e+00> : vector<16x32xf32>
    %88 = tpu.matmul %43, %55, %cst_54 {dimension_numbers = #tpu.dot_dimension_numbers<[1], [0], [0], [1], [0, 0, 1, 1], [], []>} : vector<16x16xbf16>, vector<16x32xbf16>, vector<16x32xf32> -> vector<16x32xf32>
    %89 = vector.broadcast %51 : vector<16x1xf32> to vector<16x32xf32>
    %90 = arith.addf %88, %89 : vector<16x32xf32>
    %91 = arith.truncf %87 : vector<16x32xf32> to vector<16x32xbf16>
    %cst_55 = arith.constant dense<0.000000e+00> : vector<16x16xf32>
    %92 = tpu.matmul %55, %91, %cst_55 {dimension_numbers = #tpu.dot_dimension_numbers<[1], [1], [0], [0], [0, 0, 1, 0], [], []>} : vector<16x32xbf16>, vector<16x32xbf16>, vector<16x16xf32> -> vector<16x16xf32>
    %93 = arith.truncf %92 : vector<16x16xf32> to vector<16x16xbf16>
    %94 = arith.truncf %90 : vector<16x32xf32> to vector<16x32xbf16>
    %cst_56 = arith.constant dense<0.000000e+00> : vector<16x32xf32>
    %95 = tpu.matmul %93, %94, %cst_56 {dimension_numbers = #tpu.dot_dimension_numbers<[1], [0], [0], [1], [0, 0, 1, 1], [], []>} : vector<16x16xbf16>, vector<16x32xbf16>, vector<16x32xf32> -> vector<16x32xf32>
    %96 = arith.truncf %95 : vector<16x32xf32> to vector<16x32xbf16>
    %cst_57 = arith.constant dense<0.000000e+00> : vector<16x32xf32>
    %97 = tpu.matmul %96, %47, %cst_57 {dimension_numbers = #tpu.dot_dimension_numbers<[1], [0], [0], [1], [0, 0, 1, 1], [], []>} : vector<16x32xbf16>, vector<32x32xbf16>, vector<16x32xf32> -> vector<16x32xf32>
    %c4 = arith.constant 4 : index
    %c0_58 = arith.constant 0 : index
    %98 = vector.load %arg7[%c4, %c0_58] : memref<11x32xf32, #tpu.memory_space<vmem>>, vector<1x32xf32>
    %99 = vector.broadcast %98 : vector<1x32xf32> to vector<16x32xf32>
    %100 = arith.addf %97, %99 : vector<16x32xf32>
    %101 = vector.extract_strided_slice %37 {offsets = [0, 0], sizes = [16, 32], strides = [1, 1]} : vector<32x32xf32> to vector<16x32xf32>
    %102 = vector.extract_strided_slice %31 {offsets = [0, 0], sizes = [16, 32], strides = [1, 1]} : vector<32x32xf32> to vector<16x32xf32>
    %103 = arith.truncf %101 : vector<16x32xf32> to vector<16x32xbf16>
    %104 = arith.truncf %102 : vector<16x32xf32> to vector<16x32xbf16>
    %cst_59 = arith.constant dense<0.000000e+00> : vector<16x16xf32>
    %105 = tpu.matmul %103, %104, %cst_59 {dimension_numbers = #tpu.dot_dimension_numbers<[1], [1], [0], [0], [0, 0, 1, 0], [], []>} : vector<16x32xbf16>, vector<16x32xbf16>, vector<16x16xf32> -> vector<16x16xf32>
    %106 = arith.truncf %105 : vector<16x16xf32> to vector<16x16xbf16>
    %107 = arith.truncf %100 : vector<16x32xf32> to vector<16x32xbf16>
    %cst_60 = arith.constant dense<0.000000e+00> : vector<16x32xf32>
    %108 = tpu.matmul %106, %107, %cst_60 {dimension_numbers = #tpu.dot_dimension_numbers<[1], [0], [0], [1], [0, 0, 1, 1], [], []>} : vector<16x16xbf16>, vector<16x32xbf16>, vector<16x32xf32> -> vector<16x32xf32>
    %109 = arith.truncf %108 : vector<16x32xf32> to vector<16x32xbf16>
    %cst_61 = arith.constant dense<0.000000e+00> : vector<16x32xf32>
    %110 = tpu.matmul %45, %109, %cst_61 {dimension_numbers = #tpu.dot_dimension_numbers<[1], [0], [0], [1], [0, 0, 1, 1], [], []>} : vector<16x16xbf16>, vector<16x32xbf16>, vector<16x32xf32> -> vector<16x32xf32>
    %111 = vector.broadcast %53 : vector<16x1xf32> to vector<16x32xf32>
    %112 = arith.addf %110, %111 : vector<16x32xf32>
    %cst_62 = arith.constant dense<0xFF800000> : vector<32xf32>
    %113 = vector.multi_reduction <maximumf>, %112, %cst_62 [0] : vector<16x32xf32> to vector<32xf32>
    %114 = vector.shape_cast %113 : vector<32xf32> to vector<1x32xf32>
    %115 = vector.broadcast %114 : vector<1x32xf32> to vector<16x32xf32>
    %116 = arith.subf %112, %115 : vector<16x32xf32>
    %117 = math.exp %116 : vector<16x32xf32>
    %cst_63 = arith.constant dense<0.000000e+00> : vector<32xf32>
    %118 = vector.multi_reduction <add>, %117, %cst_63 [0] : vector<16x32xf32> to vector<32xf32>
    %119 = vector.shape_cast %118 : vector<32xf32> to vector<1x32xf32>
    %120 = tpu.reciprocal %119 {approx = true} : vector<1x32xf32> -> vector<1x32xf32>
    %121 = vector.broadcast %120 : vector<1x32xf32> to vector<16x32xf32>
    %122 = arith.mulf %117, %121 : vector<16x32xf32>
    %cst_64 = arith.constant dense<0xFF800000> : vector<16xf32>
    %123 = vector.multi_reduction <maximumf>, %122, %cst_64 [1] : vector<16x32xf32> to vector<16xf32>
    %124 = vector.shape_cast %123 : vector<16xf32> to vector<16x1xf32>
    %125 = vector.broadcast %124 : vector<16x1xf32> to vector<16x32xf32>
    %126 = arith.subf %122, %125 : vector<16x32xf32>
    %127 = math.exp %126 : vector<16x32xf32>
    %cst_65 = arith.constant dense<0.000000e+00> : vector<16xf32>
    %128 = vector.multi_reduction <add>, %127, %cst_65 [1] : vector<16x32xf32> to vector<16xf32>
    %129 = vector.shape_cast %128 : vector<16xf32> to vector<16x1xf32>
    %130 = tpu.reciprocal %129 {approx = true} : vector<16x1xf32> -> vector<16x1xf32>
    %131 = vector.broadcast %130 : vector<16x1xf32> to vector<16x32xf32>
    %132 = arith.mulf %127, %131 : vector<16x32xf32>
    %133 = arith.addf %54, %132 : vector<16x32xf32>
    %c6 = arith.constant 6 : index
    %c0_66 = arith.constant 0 : index
    %134 = vector.load %arg7[%c6, %c0_66] : memref<11x32xf32, #tpu.memory_space<vmem>>, vector<1x32xf32>
    %c7 = arith.constant 7 : index
    %c0_67 = arith.constant 0 : index
    %135 = vector.load %arg7[%c7, %c0_67] : memref<11x32xf32, #tpu.memory_space<vmem>>, vector<1x32xf32>
    %cst_68 = arith.constant dense<0.000000e+00> : vector<16xf32>
    %136 = vector.multi_reduction <add>, %133, %cst_68 [1] : vector<16x32xf32> to vector<16xf32>
    %137 = vector.shape_cast %136 : vector<16xf32> to vector<16x1xf32>
    %cst_69 = arith.constant 3.200000e+01 : f32
    %138 = vector.broadcast %cst_69 : f32 to vector<16x1xf32>
    %139 = arith.divf %137, %138 : vector<16x1xf32>
    %140 = vector.broadcast %139 : vector<16x1xf32> to vector<16x32xf32>
    %141 = arith.subf %133, %140 : vector<16x32xf32>
    %142 = arith.mulf %141, %141 : vector<16x32xf32>
    %cst_70 = arith.constant dense<0.000000e+00> : vector<16xf32>
    %143 = vector.multi_reduction <add>, %142, %cst_70 [1] : vector<16x32xf32> to vector<16xf32>
    %144 = vector.shape_cast %143 : vector<16xf32> to vector<16x1xf32>
    %cst_71 = arith.constant 3.200000e+01 : f32
    %145 = vector.broadcast %cst_71 : f32 to vector<16x1xf32>
    %146 = arith.divf %144, %145 : vector<16x1xf32>
    %147 = vector.broadcast %139 : vector<16x1xf32> to vector<16x32xf32>
    %148 = arith.subf %133, %147 : vector<16x32xf32>
    %cst_72 = arith.constant 9.99999974E-6 : f32
    %149 = vector.broadcast %cst_72 : f32 to vector<16x1xf32>
    %150 = arith.addf %146, %149 : vector<16x1xf32>
    %151 = math.rsqrt %150 : vector<16x1xf32>
    %152 = vector.broadcast %151 : vector<16x1xf32> to vector<16x32xf32>
    %153 = arith.mulf %148, %152 : vector<16x32xf32>
    %154 = vector.broadcast %134 : vector<1x32xf32> to vector<16x32xf32>
    %155 = arith.mulf %153, %154 : vector<16x32xf32>
    %156 = vector.broadcast %135 : vector<1x32xf32> to vector<16x32xf32>
    %157 = arith.addf %155, %156 : vector<16x32xf32>
    %158 = arith.addf %84, %157 : vector<16x32xf32>
    %159 = vector.extract_strided_slice %24 {offsets = [16, 0], sizes = [16, 32], strides = [1, 1]} : vector<32x32xf32> to vector<16x32xf32>
    %160 = vector.extract_strided_slice %25 {offsets = [16, 0], sizes = [16, 32], strides = [1, 1]} : vector<32x32xbf16> to vector<16x32xbf16>
    %161 = vector.shape_cast %160 : vector<16x32xbf16> to vector<1x16x32xbf16>
    %162 = vector.shape_cast %161 : vector<1x16x32xbf16> to vector<1x16x32xbf16>
    %163 = vector.broadcast %162 : vector<1x16x32xbf16> to vector<12x16x32xbf16>
    %cst_73 = arith.constant dense<0.000000e+00> : vector<12x16x8xf32>
    %164 = tpu.matmul %163, %38, %cst_73 {dimension_numbers = #tpu.dot_dimension_numbers<[2], [1], [1], [2], [0, 0, 0, 1, 1, 2], [0], [0]>} : vector<12x16x32xbf16>, vector<12x32x8xbf16>, vector<12x16x8xf32> -> vector<12x16x8xf32>
    %165 = vector.extract_strided_slice %164 {offsets = [0, 0, 0], sizes = [4, 16, 8], strides = [1, 1, 1]} : vector<12x16x8xf32> to vector<4x16x8xf32>
    %166 = vector.extract_strided_slice %164 {offsets = [4, 0, 0], sizes = [4, 16, 8], strides = [1, 1, 1]} : vector<12x16x8xf32> to vector<4x16x8xf32>
    %167 = vector.extract_strided_slice %164 {offsets = [8, 0, 0], sizes = [4, 16, 8], strides = [1, 1, 1]} : vector<12x16x8xf32> to vector<4x16x8xf32>
    %168 = arith.truncf %165 : vector<4x16x8xf32> to vector<4x16x8xbf16>
    %169 = arith.truncf %166 : vector<4x16x8xf32> to vector<4x16x8xbf16>
    %cst_74 = arith.constant dense<0.000000e+00> : vector<4x16x16xf32>
    %170 = tpu.matmul %168, %169, %cst_74 {dimension_numbers = #tpu.dot_dimension_numbers<[2], [2], [1], [1], [0, 0, 0, 1, 1, 1], [0], [0]>} : vector<4x16x8xbf16>, vector<4x16x8xbf16>, vector<4x16x16xf32> -> vector<4x16x16xf32>
    %cst_75 = arith.constant dense<0xFF800000> : vector<4x16xf32>
    %171 = vector.multi_reduction <maximumf>, %170, %cst_75 [2] : vector<4x16x16xf32> to vector<4x16xf32>
    %172 = vector.shape_cast %171 : vector<4x16xf32> to vector<4x16x1xf32>
    %173 = vector.broadcast %172 : vector<4x16x1xf32> to vector<4x16x16xf32>
    %174 = arith.subf %170, %173 : vector<4x16x16xf32>
    %175 = math.exp %174 : vector<4x16x16xf32>
    %cst_76 = arith.constant dense<0.000000e+00> : vector<4x16xf32>
    %176 = vector.multi_reduction <add>, %175, %cst_76 [2] : vector<4x16x16xf32> to vector<4x16xf32>
    %177 = vector.shape_cast %176 : vector<4x16xf32> to vector<4x16x1xf32>
    %178 = tpu.reciprocal %177 {approx = true} : vector<4x16x1xf32> -> vector<4x16x1xf32>
    %179 = vector.broadcast %178 : vector<4x16x1xf32> to vector<4x16x16xf32>
    %180 = arith.mulf %175, %179 : vector<4x16x16xf32>
    %181 = arith.truncf %180 : vector<4x16x16xf32> to vector<4x16x16xbf16>
    %182 = arith.truncf %167 : vector<4x16x8xf32> to vector<4x16x8xbf16>
    %cst_77 = arith.constant dense<0.000000e+00> : vector<4x16x8xf32>
    %183 = tpu.matmul %181, %182, %cst_77 {dimension_numbers = #tpu.dot_dimension_numbers<[2], [1], [1], [2], [0, 0, 0, 1, 1, 2], [0], [0]>} : vector<4x16x16xbf16>, vector<4x16x8xbf16>, vector<4x16x8xf32> -> vector<4x16x8xf32>
    %184 = arith.truncf %183 : vector<4x16x8xf32> to vector<4x16x8xbf16>
    %cst_78 = arith.constant dense<0.000000e+00> : vector<4x16x32xf32>
    %185 = tpu.matmul %184, %39, %cst_78 {dimension_numbers = #tpu.dot_dimension_numbers<[2], [1], [1], [2], [0, 0, 0, 1, 1, 2], [0], [0]>} : vector<4x16x8xbf16>, vector<4x8x32xbf16>, vector<4x16x32xf32> -> vector<4x16x32xf32>
    %cst_79 = arith.constant dense<0.000000e+00> : vector<16x32xf32>
    %186 = vector.multi_reduction <add>, %185, %cst_79 [0] : vector<4x16x32xf32> to vector<16x32xf32>
    %c5_80 = arith.constant 5 : index
    %c0_81 = arith.constant 0 : index
    %187 = vector.load %arg7[%c5_80, %c0_81] : memref<11x32xf32, #tpu.memory_space<vmem>>, vector<1x32xf32>
    %188 = vector.broadcast %187 : vector<1x32xf32> to vector<16x32xf32>
    %189 = arith.addf %186, %188 : vector<16x32xf32>
    %cst_82 = arith.constant dense<0.000000e+00> : vector<16x32xf32>
    %190 = tpu.matmul %41, %160, %cst_82 {dimension_numbers = #tpu.dot_dimension_numbers<[1], [0], [0], [1], [0, 0, 1, 1], [], []>} : vector<16x16xbf16>, vector<16x32xbf16>, vector<16x32xf32> -> vector<16x32xf32>
    %191 = vector.broadcast %49 : vector<16x1xf32> to vector<16x32xf32>
    %192 = arith.addf %190, %191 : vector<16x32xf32>
    %cst_83 = arith.constant dense<0.000000e+00> : vector<16x32xf32>
    %193 = tpu.matmul %43, %160, %cst_83 {dimension_numbers = #tpu.dot_dimension_numbers<[1], [0], [0], [1], [0, 0, 1, 1], [], []>} : vector<16x16xbf16>, vector<16x32xbf16>, vector<16x32xf32> -> vector<16x32xf32>
    %194 = vector.broadcast %51 : vector<16x1xf32> to vector<16x32xf32>
    %195 = arith.addf %193, %194 : vector<16x32xf32>
    %196 = arith.truncf %192 : vector<16x32xf32> to vector<16x32xbf16>
    %cst_84 = arith.constant dense<0.000000e+00> : vector<16x16xf32>
    %197 = tpu.matmul %160, %196, %cst_84 {dimension_numbers = #tpu.dot_dimension_numbers<[1], [1], [0], [0], [0, 0, 1, 0], [], []>} : vector<16x32xbf16>, vector<16x32xbf16>, vector<16x16xf32> -> vector<16x16xf32>
    %198 = arith.truncf %197 : vector<16x16xf32> to vector<16x16xbf16>
    %199 = arith.truncf %195 : vector<16x32xf32> to vector<16x32xbf16>
    %cst_85 = arith.constant dense<0.000000e+00> : vector<16x32xf32>
    %200 = tpu.matmul %198, %199, %cst_85 {dimension_numbers = #tpu.dot_dimension_numbers<[1], [0], [0], [1], [0, 0, 1, 1], [], []>} : vector<16x16xbf16>, vector<16x32xbf16>, vector<16x32xf32> -> vector<16x32xf32>
    %201 = arith.truncf %200 : vector<16x32xf32> to vector<16x32xbf16>
    %cst_86 = arith.constant dense<0.000000e+00> : vector<16x32xf32>
    %202 = tpu.matmul %201, %47, %cst_86 {dimension_numbers = #tpu.dot_dimension_numbers<[1], [0], [0], [1], [0, 0, 1, 1], [], []>} : vector<16x32xbf16>, vector<32x32xbf16>, vector<16x32xf32> -> vector<16x32xf32>
    %c4_87 = arith.constant 4 : index
    %c0_88 = arith.constant 0 : index
    %203 = vector.load %arg7[%c4_87, %c0_88] : memref<11x32xf32, #tpu.memory_space<vmem>>, vector<1x32xf32>
    %204 = vector.broadcast %203 : vector<1x32xf32> to vector<16x32xf32>
    %205 = arith.addf %202, %204 : vector<16x32xf32>
    %206 = vector.extract_strided_slice %37 {offsets = [16, 0], sizes = [16, 32], strides = [1, 1]} : vector<32x32xf32> to vector<16x32xf32>
    %207 = vector.extract_strided_slice %31 {offsets = [16, 0], sizes = [16, 32], strides = [1, 1]} : vector<32x32xf32> to vector<16x32xf32>
    %208 = arith.truncf %206 : vector<16x32xf32> to vector<16x32xbf16>
    %209 = arith.truncf %207 : vector<16x32xf32> to vector<16x32xbf16>
    %cst_89 = arith.constant dense<0.000000e+00> : vector<16x16xf32>
    %210 = tpu.matmul %208, %209, %cst_89 {dimension_numbers = #tpu.dot_dimension_numbers<[1], [1], [0], [0], [0, 0, 1, 0], [], []>} : vector<16x32xbf16>, vector<16x32xbf16>, vector<16x16xf32> -> vector<16x16xf32>
    %211 = arith.truncf %210 : vector<16x16xf32> to vector<16x16xbf16>
    %212 = arith.truncf %205 : vector<16x32xf32> to vector<16x32xbf16>
    %cst_90 = arith.constant dense<0.000000e+00> : vector<16x32xf32>
    %213 = tpu.matmul %211, %212, %cst_90 {dimension_numbers = #tpu.dot_dimension_numbers<[1], [0], [0], [1], [0, 0, 1, 1], [], []>} : vector<16x16xbf16>, vector<16x32xbf16>, vector<16x32xf32> -> vector<16x32xf32>
    %214 = arith.truncf %213 : vector<16x32xf32> to vector<16x32xbf16>
    %cst_91 = arith.constant dense<0.000000e+00> : vector<16x32xf32>
    %215 = tpu.matmul %45, %214, %cst_91 {dimension_numbers = #tpu.dot_dimension_numbers<[1], [0], [0], [1], [0, 0, 1, 1], [], []>} : vector<16x16xbf16>, vector<16x32xbf16>, vector<16x32xf32> -> vector<16x32xf32>
    %216 = vector.broadcast %53 : vector<16x1xf32> to vector<16x32xf32>
    %217 = arith.addf %215, %216 : vector<16x32xf32>
    %cst_92 = arith.constant dense<0xFF800000> : vector<32xf32>
    %218 = vector.multi_reduction <maximumf>, %217, %cst_92 [0] : vector<16x32xf32> to vector<32xf32>
    %219 = vector.shape_cast %218 : vector<32xf32> to vector<1x32xf32>
    %220 = vector.broadcast %219 : vector<1x32xf32> to vector<16x32xf32>
    %221 = arith.subf %217, %220 : vector<16x32xf32>
    %222 = math.exp %221 : vector<16x32xf32>
    %cst_93 = arith.constant dense<0.000000e+00> : vector<32xf32>
    %223 = vector.multi_reduction <add>, %222, %cst_93 [0] : vector<16x32xf32> to vector<32xf32>
    %224 = vector.shape_cast %223 : vector<32xf32> to vector<1x32xf32>
    %225 = tpu.reciprocal %224 {approx = true} : vector<1x32xf32> -> vector<1x32xf32>
    %226 = vector.broadcast %225 : vector<1x32xf32> to vector<16x32xf32>
    %227 = arith.mulf %222, %226 : vector<16x32xf32>
    %cst_94 = arith.constant dense<0xFF800000> : vector<16xf32>
    %228 = vector.multi_reduction <maximumf>, %227, %cst_94 [1] : vector<16x32xf32> to vector<16xf32>
    %229 = vector.shape_cast %228 : vector<16xf32> to vector<16x1xf32>
    %230 = vector.broadcast %229 : vector<16x1xf32> to vector<16x32xf32>
    %231 = arith.subf %227, %230 : vector<16x32xf32>
    %232 = math.exp %231 : vector<16x32xf32>
    %cst_95 = arith.constant dense<0.000000e+00> : vector<16xf32>
    %233 = vector.multi_reduction <add>, %232, %cst_95 [1] : vector<16x32xf32> to vector<16xf32>
    %234 = vector.shape_cast %233 : vector<16xf32> to vector<16x1xf32>
    %235 = tpu.reciprocal %234 {approx = true} : vector<16x1xf32> -> vector<16x1xf32>
    %236 = vector.broadcast %235 : vector<16x1xf32> to vector<16x32xf32>
    %237 = arith.mulf %232, %236 : vector<16x32xf32>
    %238 = arith.addf %159, %237 : vector<16x32xf32>
    %c6_96 = arith.constant 6 : index
    %c0_97 = arith.constant 0 : index
    %239 = vector.load %arg7[%c6_96, %c0_97] : memref<11x32xf32, #tpu.memory_space<vmem>>, vector<1x32xf32>
    %c7_98 = arith.constant 7 : index
    %c0_99 = arith.constant 0 : index
    %240 = vector.load %arg7[%c7_98, %c0_99] : memref<11x32xf32, #tpu.memory_space<vmem>>, vector<1x32xf32>
    %cst_100 = arith.constant dense<0.000000e+00> : vector<16xf32>
    %241 = vector.multi_reduction <add>, %238, %cst_100 [1] : vector<16x32xf32> to vector<16xf32>
    %242 = vector.shape_cast %241 : vector<16xf32> to vector<16x1xf32>
    %cst_101 = arith.constant 3.200000e+01 : f32
    %243 = vector.broadcast %cst_101 : f32 to vector<16x1xf32>
    %244 = arith.divf %242, %243 : vector<16x1xf32>
    %245 = vector.broadcast %244 : vector<16x1xf32> to vector<16x32xf32>
    %246 = arith.subf %238, %245 : vector<16x32xf32>
    %247 = arith.mulf %246, %246 : vector<16x32xf32>
    %cst_102 = arith.constant dense<0.000000e+00> : vector<16xf32>
    %248 = vector.multi_reduction <add>, %247, %cst_102 [1] : vector<16x32xf32> to vector<16xf32>
    %249 = vector.shape_cast %248 : vector<16xf32> to vector<16x1xf32>
    %cst_103 = arith.constant 3.200000e+01 : f32
    %250 = vector.broadcast %cst_103 : f32 to vector<16x1xf32>
    %251 = arith.divf %249, %250 : vector<16x1xf32>
    %252 = vector.broadcast %244 : vector<16x1xf32> to vector<16x32xf32>
    %253 = arith.subf %238, %252 : vector<16x32xf32>
    %cst_104 = arith.constant 9.99999974E-6 : f32
    %254 = vector.broadcast %cst_104 : f32 to vector<16x1xf32>
    %255 = arith.addf %251, %254 : vector<16x1xf32>
    %256 = math.rsqrt %255 : vector<16x1xf32>
    %257 = vector.broadcast %256 : vector<16x1xf32> to vector<16x32xf32>
    %258 = arith.mulf %253, %257 : vector<16x32xf32>
    %259 = vector.broadcast %239 : vector<1x32xf32> to vector<16x32xf32>
    %260 = arith.mulf %258, %259 : vector<16x32xf32>
    %261 = vector.broadcast %240 : vector<1x32xf32> to vector<16x32xf32>
    %262 = arith.addf %260, %261 : vector<16x32xf32>
    %263 = arith.addf %189, %262 : vector<16x32xf32>
    %264 = tpu.concatenate %158, %263 in 0 : vector<16x32xf32>, vector<16x32xf32> -> vector<32x32xf32>
    %265 = arith.addf %0, %264 : vector<32x32xf32>
    %c8 = arith.constant 8 : index
    %c0_105 = arith.constant 0 : index
    %266 = vector.load %arg7[%c8, %c0_105] : memref<11x32xf32, #tpu.memory_space<vmem>>, vector<1x32xf32>
    %c9 = arith.constant 9 : index
    %c0_106 = arith.constant 0 : index
    %267 = vector.load %arg7[%c9, %c0_106] : memref<11x32xf32, #tpu.memory_space<vmem>>, vector<1x32xf32>
    %cst_107 = arith.constant dense<0.000000e+00> : vector<32xf32>
    %268 = vector.multi_reduction <add>, %265, %cst_107 [1] : vector<32x32xf32> to vector<32xf32>
    %269 = vector.shape_cast %268 : vector<32xf32> to vector<32x1xf32>
    %cst_108 = arith.constant 3.200000e+01 : f32
    %270 = vector.broadcast %cst_108 : f32 to vector<32x1xf32>
    %271 = arith.divf %269, %270 : vector<32x1xf32>
    %272 = vector.broadcast %271 : vector<32x1xf32> to vector<32x32xf32>
    %273 = arith.subf %265, %272 : vector<32x32xf32>
    %274 = arith.mulf %273, %273 : vector<32x32xf32>
    %cst_109 = arith.constant dense<0.000000e+00> : vector<32xf32>
    %275 = vector.multi_reduction <add>, %274, %cst_109 [1] : vector<32x32xf32> to vector<32xf32>
    %276 = vector.shape_cast %275 : vector<32xf32> to vector<32x1xf32>
    %cst_110 = arith.constant 3.200000e+01 : f32
    %277 = vector.broadcast %cst_110 : f32 to vector<32x1xf32>
    %278 = arith.divf %276, %277 : vector<32x1xf32>
    %279 = vector.broadcast %271 : vector<32x1xf32> to vector<32x32xf32>
    %280 = arith.subf %265, %279 : vector<32x32xf32>
    %cst_111 = arith.constant 9.99999974E-6 : f32
    %281 = vector.broadcast %cst_111 : f32 to vector<32x1xf32>
    %282 = arith.addf %278, %281 : vector<32x1xf32>
    %283 = math.rsqrt %282 : vector<32x1xf32>
    %284 = vector.broadcast %283 : vector<32x1xf32> to vector<32x32xf32>
    %285 = arith.mulf %280, %284 : vector<32x32xf32>
    %286 = vector.broadcast %266 : vector<1x32xf32> to vector<32x32xf32>
    %287 = arith.mulf %285, %286 : vector<32x32xf32>
    %288 = vector.broadcast %267 : vector<1x32xf32> to vector<32x32xf32>
    %289 = arith.addf %287, %288 : vector<32x32xf32>
    %c0_112 = arith.constant 0 : index
    %c0_113 = arith.constant 0 : index
    %c0_114 = arith.constant 0 : index
    %290 = vector.load %arg6[%c0_112, %c0_113, %c0_114] : memref<2x32x128xbf16, #tpu.memory_space<vmem>>, vector<1x32x128xbf16>
    %291 = vector.shape_cast %290 : vector<1x32x128xbf16> to vector<32x128xbf16>
    %292 = arith.truncf %289 : vector<32x32xf32> to vector<32x32xbf16>
    %cst_115 = arith.constant dense<0.000000e+00> : vector<32x128xf32>
    %293 = tpu.matmul %292, %291, %cst_115 {dimension_numbers = #tpu.dot_dimension_numbers<[1], [0], [0], [1], [0, 0, 1, 1], [], []>} : vector<32x32xbf16>, vector<32x128xbf16>, vector<32x128xf32> -> vector<32x128xf32>
    %c0_116 = arith.constant 0 : index
    %c0_117 = arith.constant 0 : index
    %294 = vector.load %arg9[%c0_116, %c0_117] : memref<1x128xf32, #tpu.memory_space<vmem>>, vector<1x128xf32>
    %295 = vector.broadcast %294 : vector<1x128xf32> to vector<32x128xf32>
    %296 = arith.addf %293, %295 : vector<32x128xf32>
    %cst_118 = arith.constant 5.000000e-01 : f32
    %297 = vector.broadcast %cst_118 : f32 to vector<32x128xf32>
    %298 = arith.mulf %297, %296 : vector<32x128xf32>
    %cst_119 = arith.constant 4.471500e-02 : f32
    %299 = vector.broadcast %cst_119 : f32 to vector<32x128xf32>
    %300 = arith.mulf %299, %296 : vector<32x128xf32>
    %301 = arith.mulf %300, %296 : vector<32x128xf32>
    %302 = arith.mulf %301, %296 : vector<32x128xf32>
    %303 = arith.addf %296, %302 : vector<32x128xf32>
    %cst_120 = arith.constant 0.797884583 : f32
    %304 = vector.broadcast %cst_120 : f32 to vector<32x128xf32>
    %305 = arith.mulf %304, %303 : vector<32x128xf32>
    %306 = math.tanh %305 : vector<32x128xf32>
    %cst_121 = arith.constant 1.000000e+00 : f32
    %307 = vector.broadcast %cst_121 : f32 to vector<32x128xf32>
    %308 = arith.addf %307, %306 : vector<32x128xf32>
    %309 = arith.mulf %298, %308 : vector<32x128xf32>
    %c1_122 = arith.constant 1 : index
    %c0_123 = arith.constant 0 : index
    %c0_124 = arith.constant 0 : index
    %310 = vector.load %arg6[%c1_122, %c0_123, %c0_124] : memref<2x32x128xbf16, #tpu.memory_space<vmem>>, vector<1x32x128xbf16>
    %311 = vector.shape_cast %310 : vector<1x32x128xbf16> to vector<32x128xbf16>
    %312 = arith.truncf %309 : vector<32x128xf32> to vector<32x128xbf16>
    %cst_125 = arith.constant dense<0.000000e+00> : vector<32x32xf32>
    %313 = tpu.matmul %312, %311, %cst_125 {dimension_numbers = #tpu.dot_dimension_numbers<[1], [1], [0], [0], [0, 0, 1, 0], [], []>} : vector<32x128xbf16>, vector<32x128xbf16>, vector<32x32xf32> -> vector<32x32xf32>
    %c10 = arith.constant 10 : index
    %c0_126 = arith.constant 0 : index
    %314 = vector.load %arg7[%c10, %c0_126] : memref<11x32xf32, #tpu.memory_space<vmem>>, vector<1x32xf32>
    %315 = vector.broadcast %314 : vector<1x32xf32> to vector<32x32xf32>
    %316 = arith.addf %313, %315 : vector<32x32xf32>
    %317 = arith.addf %265, %316 : vector<32x32xf32>
    %c0_127 = arith.constant 0 : index
    %c0_128 = arith.constant 0 : index
    %318 = vector.load %arg10[%c0_127, %c0_128] : memref<32x32xf32, #tpu.memory_space<vmem>>, vector<32x32xf32>
    tpu.vector_store %arg10[%c0_127, %c0_128], %317 {strides = array<i32>} : memref<32x32xf32, #tpu.memory_space<vmem>>, vector<32x32xf32>,
    return
  }
  func.func @transform_0(%arg0: i32) -> (i32, i32) {
    %c0_i32 = arith.constant 0 : i32
    %c0_i32_0 = arith.constant 0 : i32
    return %arg0, %c0_i32 : i32, i32
  }
  func.func @transform_1(%arg0: i32) -> (i32, i32, i32) {
    %c0_i32 = arith.constant 0 : i32
    %c0_i32_0 = arith.constant 0 : i32
    %c0_i32_1 = arith.constant 0 : i32
    %c0_i32_2 = arith.constant 0 : i32
    return %c0_i32, %c0_i32_0, %c0_i32_1 : i32, i32, i32
  }
  func.func @transform_2(%arg0: i32) -> (i32, i32, i32) {
    %c0_i32 = arith.constant 0 : i32
    %c0_i32_0 = arith.constant 0 : i32
    %c0_i32_1 = arith.constant 0 : i32
    %c0_i32_2 = arith.constant 0 : i32
    return %c0_i32, %c0_i32_0, %c0_i32_1 : i32, i32, i32
  }
  func.func @transform_3(%arg0: i32) -> (i32, i32, i32) {
    %c0_i32 = arith.constant 0 : i32
    %c0_i32_0 = arith.constant 0 : i32
    %c0_i32_1 = arith.constant 0 : i32
    %c0_i32_2 = arith.constant 0 : i32
    return %c0_i32, %c0_i32_0, %c0_i32_1 : i32, i32, i32
  }
  func.func @transform_4(%arg0: i32) -> (i32, i32, i32) {
    %c0_i32 = arith.constant 0 : i32
    %c0_i32_0 = arith.constant 0 : i32
    %c0_i32_1 = arith.constant 0 : i32
    %c0_i32_2 = arith.constant 0 : i32
    return %c0_i32, %c0_i32_0, %c0_i32_1 : i32, i32, i32
  }
  func.func @transform_5(%arg0: i32) -> (i32, i32, i32) {
    %c0_i32 = arith.constant 0 : i32
    %c0_i32_0 = arith.constant 0 : i32
    %c0_i32_1 = arith.constant 0 : i32
    %c0_i32_2 = arith.constant 0 : i32
    return %c0_i32, %c0_i32_0, %c0_i32_1 : i32, i32, i32
  }
  func.func @transform_6(%arg0: i32) -> (i32, i32) {
    %c0_i32 = arith.constant 0 : i32
    %c0_i32_0 = arith.constant 0 : i32
    %c0_i32_1 = arith.constant 0 : i32
    return %c0_i32, %c0_i32_0 : i32, i32
  }
  func.func @transform_7(%arg0: i32) -> (i32, i32, i32) {
    %c0_i32 = arith.constant 0 : i32
    %c0_i32_0 = arith.constant 0 : i32
    %c0_i32_1 = arith.constant 0 : i32
    %c0_i32_2 = arith.constant 0 : i32
    return %c0_i32, %c0_i32_0, %c0_i32_1 : i32, i32, i32
  }
  func.func @transform_8(%arg0: i32) -> (i32, i32) {
    %c0_i32 = arith.constant 0 : i32
    %c0_i32_0 = arith.constant 0 : i32
    %c0_i32_1 = arith.constant 0 : i32
    return %c0_i32, %c0_i32_0 : i32, i32
  }
  func.func @transform_9(%arg0: i32) -> (i32, i32) {
    %c0_i32 = arith.constant 0 : i32
    %c0_i32_0 = arith.constant 0 : i32
    return %arg0, %c0_i32 : i32, i32
  }
}

</mosaic_0001>

<bundles_post_ra>
// kernel: tpu_custom_call.1
= control target key start
LH: loop header
LB: loop body
LE: loop exit
PB: predicated region body
PF: predicated region fallthrough
CT: control target
= control target key end

     0   :  { %s5434_s30 = smov 0   ;;  %s6379_s0 = inlined_call_operand.vmem [shape: f32[64,32], index: 0, kind: input, shape index: {}]   ;;  %s6380_s1 = inlined_call_operand.vmem [shape: bf16[12,32,8], index: 1, kind: input, shape index: {}]   ;;  %s6381_s2 = inlined_call_operand.vmem [shape: bf16[4,8,32], index: 2, kind: input, shape index: {}]   ;;  %s6382_s3 = inlined_call_operand.vmem [shape: bf16[3,32,32], index: 3, kind: input, shape index: {}]   ;;  %s6383_s4 = inlined_call_operand.vmem [shape: bf16[3,16,16], index: 4, kind: input, shape index: {}]   ;;  %s6384_s5 = inlined_call_operand.vmem [shape: bf16[2,32,128], index: 5, kind: input, shape index: {}]   ;;  %s6385_s6 = inlined_call_operand.vmem [shape: f32[11,32], index: 6, kind: input, shape index: {}]   ;;  %s6386_s7 = inlined_call_operand.vmem [shape: f32[3,16,1], index: 7, kind: input, shape index: {}]   ;;  %s6387_s8 = inlined_call_operand.vmem [shape: f32[1,128], index: 8, kind: input, shape index: {}]   ;;  %s6388_s9 = inlined_call_operand.vmem [shape: f32[64,32], index: 9, kind: output, shape index: {}]  }
   0x1 LB: > { %s4395_s10 = sadd.s32 4294967295, %s5379_s30   ;;  %p4399_p0 = scmp.ge.s32.totalorder %s5379_s30, 1  ;;  %s5379_s30 = sphi %s5434_s30, %s19_s30  }
   0x2   : > { %p288_p1 = scmp.lt.s32.totalorder %s5379_s30, 3 }
   0x4   : > { %p289_p2 = pnand %p4399_p0, %p288_p1 }
   0x5   : > { %s4400_s11 = sshll.u32 (!%p289_p2), %s4395_s10, 2  ;;  %vm343_vm0 = vcmask (!%p289_p2), 261120   ;;  %v5196_v28 = vld [vmem:[%s6382_s3] sm:$0xff] (!%p289_p2)   ;;  %v5197_v29 = vld [vmem:[%s6382_s3 + $0x10] sm:$0xff] (!%p289_p2)   ;;  %v5198_v30 = vld [vmem:[%s6382_s3 + $0x8] sm:$0xff] (!%p289_p2)   ;;  %v5381_v32 = vmov (!%p289_p2), 0.0  }
   0x6   : > { %292 = sbr.rel (%p289_p2) target bundleno = 6028 (0x178c), region = 56  ;;  %p325_p3 = scmp.lt.s32.totalorder (!%p289_p2), %s4400_s11, 7  ;;  %4715 = vmatprep.subr.bf16.mxu0 (!%p289_p2), %v5196_v28  ;;  %4723 = vmatprep.subr.bf16.mxu1 (!%p289_p2), %v5197_v29  ;;  %v5199_v31 = vld [vmem:[%s6382_s3 + $0x18] sm:$0xff] (!%p289_p2)   ;;  %v4404_v47 = vld [vmem:[%s6385_s6] ss:$0 sm:$0xff] (!%p289_p2)  ;;  %vm5382_vm1 = vmmov (!%p289_p2), 0  }
   0x7   : > { %4716 = vmatpush3.bf16.msra.mxu0 (!%p289_p2), %v5196_v28  ;;  %4724 = vmatpush3.bf16.msra.mxu1 (!%p289_p2), %v5197_v29  ;;  %v4405_v52 = vld [vmem:[%s6385_s6 + $0x1] ss:$0 sm:$0xff] (!%p289_p2)  ;;  %vm1279_vm2 = vcmask (!%p289_p2), 64512   ;;  %vm1468_vm3 = vcmask (!%p289_p2), 130048   ;;  %vm1748_vm4 = vcmask (!%p289_p2), 1043456  }
   0x8   : > { %4717 = vmatprep.subr.bf16.mxu0 (!%p289_p2), %v5198_v30  ;;  %4725 = vmatprep.subr.bf16.mxu1 (!%p289_p2), %v5199_v31 }
   0xb   : > { %4718 = vmatpush3.bf16.msra.mxu0 (!%p289_p2), %v5198_v30  ;;  %4726 = vmatpush3.bf16.msra.mxu1 (!%p289_p2), %v5199_v31 }
   0xc   : > { %4731 = vmatprep.subr.bf16.mxu0 (!%p289_p2), %v5381_v32  ;;  %4739 = vmatprep.subr.bf16.mxu1 (!%p289_p2), %v5381_v32 }
   0xd   : > { %s6390_s11 = smov (!%p325_p3, %s4400_s11), 7 }
   0xe   : > { %s4401_s12 = sshll.u32 %s6390_s11, 3 }
   0xf   : > { %s5450_s15 = scalar_lea.vmem %s6379_s0, %s4401_s12 }
  0x10   : > { %v337_v0 = vld [vmem:[%s5450_s15] sm:$0xff]  ;;  %v339_v1 = vld [vmem:[%s5450_s15 + $0x10] sm:$0xff]  ;;  %v338_v2 = vld [vmem:[%s5450_s15 + $0x8] sm:$0xff] }
  0x11   : > { %v344_v3 = vsel %vm343_vm0, %v337_v0, 0.0  ;;  %v350_v4 = vsel %vm343_vm0, %v339_v1, 0.0  ;;  %v340_v5 = vld [vmem:[%s5450_s15 + $0x18] sm:$0xff]  ;;  %v347_v6 = vsel %vm343_vm0, %v338_v2, 0.0 }
  0x12   : > { %345 = vadd.xlane.f32.xlu0 %v344_v3  ;;  %351 = vadd.xlane.f32.xlu1 %v350_v4  ;;  %v353_v7 = vsel %vm343_vm0, %v340_v5, 0.0  ;;  %v5520_v3 = vld [vmem:[%s6380_s1 + $0x8] sm:$0xff]   ;;  %v5203_v4 = vld [vmem:[%s6380_s1 + $0x18] sm:$0xff]  }
  0x16   : > { %348 = vadd.xlane.f32.xlu0 %v347_v6  ;;  %354 = vadd.xlane.f32.xlu1 %v353_v7  ;;  %v5205_v6 = vld [vmem:[%s6380_s1 + $0x30] sm:$0xff]   ;;  %v5550_v7 = vld [vmem:[%s6380_s1 + $0x28] sm:$0xff]  }
  0x9f   : > { %v346_v8 = vpop.xlane.xlu0 %345  ;;  %v352_v9 = vpop.xlane.xlu1 %351 }
  0xa0   : > { %v357_v10 = vmul.f32 0.03125, %v346_v8  ;;  %v359_v11 = vmul.f32 0.03125, %v352_v9  ;;  %v5207_v8 = vld [vmem:[%s6380_s1 + $0x38] sm:$0xff]   ;;  %v5565_v9 = vld [vmem:[%s6380_s1 + $0x40] sm:$0xff]  }
  0xa2   : > { %v361_v12 = vsub.f32 %v337_v0, %v357_v10  ;;  %v363_v13 = vsub.f32 %v339_v1, %v359_v11  ;;  %v5503_v0 = vld [vmem:[%s6380_s1] sm:$0xff]   ;;  %v5201_v1 = vld [vmem:[%s6380_s1 + $0x10] sm:$0xff]   ;;  %v5580_v11 = vld [vmem:[%s6380_s1 + $0x48] sm:$0xff]  }
  0xa3   : > { %v349_v14 = vpop.xlane.xlu0 %348  ;;  %v355_v15 = vpop.xlane.xlu1 %354  ;;  %v5209_v10 = vld [vmem:[%s6380_s1 + $0x50] sm:$0xff]  }
  0xa4   : > { %v358_v16 = vmul.f32 0.03125, %v349_v14  ;;  %v360_v17 = vmul.f32 0.03125, %v355_v15  ;;  %v365_v18 = vmul.f32 %v361_v12, %v361_v12  ;;  %v367_v19 = vmul.f32 %v363_v13, %v363_v13  ;;  %v5213_v14 = vld [vmem:[%s6380_s1 + $0x70] sm:$0xff]   ;;  %v5610_v15 = vld [vmem:[%s6380_s1 + $0x68] sm:$0xff]  }
  0xa6   : > { %v362_v20 = vsub.f32 %v338_v2, %v358_v16  ;;  %v364_v21 = vsub.f32 %v340_v5, %v360_v17  ;;  %v369_v22 = vsel %vm343_vm0, %v365_v18, 0.0  ;;  %v375_v23 = vsel %vm343_vm0, %v367_v19, 0.0  ;;  %v5535_v5 = vld [vmem:[%s6380_s1 + $0x20] sm:$0xff]   ;;  %v5215_v16 = vld [vmem:[%s6380_s1 + $0x78] sm:$0xff]   ;;  %v5217_v18 = vld [vmem:[%s6380_s1 + $0x90] sm:$0xff]  }
  0xa7   : > { %370 = vadd.xlane.f32.xlu0 %v369_v22  ;;  %v5625_v17 = vld [vmem:[%s6380_s1 + $0x80] sm:$0xff]   ;;  %v5640_v19 = vld [vmem:[%s6380_s1 + $0x88] sm:$0xff]   ;;  %v5221_v22 = vld [vmem:[%s6380_s1 + $0xb0] sm:$0xff]  }
  0xa8   : > { %v366_v24 = vmul.f32 %v362_v20, %v362_v20  ;;  %v368_v25 = vmul.f32 %v364_v21, %v364_v21 }
  0xaa   : > { %v372_v26 = vsel %vm343_vm0, %v366_v24, 0.0  ;;  %v378_v27 = vsel %vm343_vm0, %v368_v25, 0.0  ;;  %v5223_v24 = vld [vmem:[%s6380_s1 + $0xb8] sm:$0xff]   ;;  %v4406_v25 = vld [vmem:[%s6385_s6 + $0x2] ss:$0 sm:$0xff] }
  0xab   : > { %376 = vadd.xlane.f32.xlu0 %v375_v23  ;;  %373 = vadd.xlane.f32.xlu1 %v372_v26  ;;  %v5670_v23 = vld [vmem:[%s6380_s1 + $0xa8] sm:$0xff]   ;;  %v4415_v26 = vld [vmem:[%s6385_s6 + $0x3] ss:$0 sm:$0xff] }
  0xaf   : > { %379 = vadd.xlane.f32.xlu1 %v378_v27 }
 0x134   : > { %v371_v33 = vpop.xlane.xlu0 %370 }
 0x135   : > { %v381_v34 = vmul.f32 0.03125, %v371_v33 }
 0x137   : > { %v385_v35 = vadd.f32 1e-05, %v381_v34 }
 0x138   : > { %v374_v36 = vpop.xlane.xlu1 %373  ;;  %v377_v37 = vpop.xlane.xlu0 %376 }
 0x139   : > { %5233 = vrsqrt.f32 %v385_v35  ;;  %v382_v38 = vmul.f32 0.03125, %v374_v36  ;;  %v383_v39 = vmul.f32 0.03125, %v377_v37 }
 0x13b   : > { %v386_v40 = vadd.f32 1e-05, %v382_v38  ;;  %v387_v41 = vadd.f32 1e-05, %v383_v39 }
 0x13c   : > { %v380_v42 = vpop.xlane.xlu1 %379 }
 0x13d   : > { %5235 = vrsqrt.f32 %v386_v40  ;;  %v384_v43 = vmul.f32 0.03125, %v380_v42 }
 0x13e   : > { %5237 = vrsqrt.f32 %v387_v41 }
 0x13f   : > { %v388_v44 = vadd.f32 1e-05, %v384_v43 }
 0x141   : > { %5239 = vrsqrt.f32 %v388_v44 }
 0x143   : > { %v5234_v45 = vpop.eup %5233 }
 0x144   : > { %v393_v46 = vmul.f32 %v5234_v45, %v361_v12  ;;  %v5211_v12 = vld [vmem:[%s6380_s1 + $0x58] sm:$0xff]  }
 0x146   : > { %v401_v50 = vmul.f32 %v4404_v47, %v393_v46 }
 0x147   : > { %v5236_v48 = vpop.eup %5235 }
 0x148   : > { %v5238_v49 = vpop.eup %5237  ;;  %v394_v51 = vmul.f32 %v5236_v48, %v362_v20  ;;  %v5484_v56 = vadd.f32 %v4405_v52, %v401_v50  ;;  %v5219_v20 = vld [vmem:[%s6380_s1 + $0x98] sm:$0xff]  }
 0x149   : > { %v395_v53 = vmul.f32 %v5238_v49, %v363_v13  ;;  %v5595_v13 = vld [vmem:[%s6380_s1 + $0x60] sm:$0xff]  }
 0x14a   : > { %v402_v54 = vmul.f32 %v4404_v47, %v394_v51 }
 0x14b   : > { %v5240_v55 = vpop.eup %5239  ;;  %v403_v58 = vmul.f32 %v4404_v47, %v395_v53 }
 0x14c   : > { %v5486_v57 = vadd.f32 %v4405_v52, %v402_v54  ;;  %v396_v59 = vmul.f32 %v5240_v55, %v364_v21  ;;  %v5655_v21 = vld [vmem:[%s6380_s1 + $0xa0] sm:$0xff]  }
 0x14d   : > { %v5492_v62 = vadd.f32 %v4405_v52, %v403_v58 }
 0x14e   : > { %v5490_v60 = vpack.c.bf16 %v5486_v57, %v5484_v56  ;;  %v404_v61 = vmul.f32 %v4404_v47, %v396_v59 }
 0x150   : > { %v5494_v63 = vadd.f32 %v4405_v52, %v404_v61  ;;  %4719 = vmatprep.mubr.msk.bf16.mxu0 %vm343_vm0, %v5490_v60  ;;  %4727 = vmatprep.mubr.msk.bf16.mxu1 %vm343_vm0, %v5490_v60 }
 0x152   : > { %v5510_v2 = vpack.c.bf16 %v5494_v63, %v5492_v62 }
 0x154   : > { %4720 = vmatmul.mubr.msk.bf16.vlgmr.msra.gmra.mrb[0].mxu0 %vm343_vm0, %v5510_v2  ;;  %4728 = vmatmul.mubr.msk.bf16.vlgmr.msra.gmra.mrb[0].mxu1 %vm343_vm0, %v5510_v2 }
 0x155   : > { %4732 = vmatpush3.bf16.msra.mxu0 %v5503_v0  ;;  %4740 = vmatpush3.bf16.msra.mxu1 %v5201_v1 }
 0x156   : > { %4733 = vmatprep.subr.bf16.mxu0 %v5381_v32  ;;  %4741 = vmatprep.subr.bf16.mxu1 %v5381_v32 }
 0x157   : > { %4735 = vmatprep.mubr.msk.bf16.mxu0 %vm5382_vm1, %v5381_v32  ;;  %4743 = vmatprep.mubr.msk.bf16.mxu1 %vm5382_vm1, %v5381_v32 }
 0x159   : > { %4734 = vmatpush3.bf16.msra.mxu0 %v5520_v3  ;;  %4742 = vmatpush3.bf16.msra.mxu1 %v5203_v4 }
 0x15a   : > { %4747 = vmatprep.subr.bf16.mxu0 %v5381_v32  ;;  %4755 = vmatprep.subr.bf16.mxu1 %v5381_v32 }
 0x15c   : > { %4736 = vmatmul.mubr.msk.bf16.vlgmr.msra.gmra.mrb[4].mxu0 %vm343_vm0, %v5490_v60  ;;  %4744 = vmatmul.mubr.msk.bf16.vlgmr.msra.gmra.mrb[4].mxu1 %vm343_vm0, %v5490_v60 }
 0x15d   : > { %4748 = vmatpush3.bf16.msra.mxu0 %v5535_v5  ;;  %4756 = vmatpush3.bf16.msra.mxu1 %v5205_v6 }
 0x15e   : > { %4749 = vmatprep.subr.bf16.mxu0 %v5381_v32  ;;  %4757 = vmatprep.subr.bf16.mxu1 %v5381_v32 }
 0x15f   : > { %4751 = vmatprep.mubr.msk.bf16.mxu0 %vm5382_vm1, %v5381_v32  ;;  %4759 = vmatprep.mubr.msk.bf16.mxu1 %vm5382_vm1, %v5381_v32 }
 0x161   : > { %4750 = vmatpush3.bf16.msra.mxu0 %v5550_v7  ;;  %4758 = vmatpush3.bf16.msra.mxu1 %v5207_v8 }
 0x162   : > { %4763 = vmatprep.subr.bf16.mxu0 %v5381_v32  ;;  %4771 = vmatprep.subr.bf16.mxu1 %v5381_v32 }
 0x164   : > { %4752 = vmatmul.mubr.msk.bf16.vlgmr.msra.gmra.mrb[8].mxu0 %vm343_vm0, %v5490_v60  ;;  %4760 = vmatmul.mubr.msk.bf16.vlgmr.msra.gmra.mrb[8].mxu1 %vm343_vm0, %v5490_v60 }
 0x165   : > { %4764 = vmatpush3.bf16.msra.mxu0 %v5565_v9  ;;  %4772 = vmatpush3.bf16.msra.mxu1 %v5209_v10 }
 0x166   : > { %4765 = vmatprep.subr.bf16.mxu0 %v5381_v32  ;;  %4773 = vmatprep.subr.bf16.mxu1 %v5381_v32 }
 0x167   : > { %4767 = vmatprep.mubr.msk.bf16.mxu0 %vm5382_vm1, %v5381_v32  ;;  %4775 = vmatprep.mubr.msk.bf16.mxu1 %vm5382_vm1, %v5381_v32 }
 0x169   : > { %4766 = vmatpush3.bf16.msra.mxu0 %v5580_v11  ;;  %4774 = vmatpush3.bf16.msra.mxu1 %v5211_v12 }
 0x16a   : > { %4779 = vmatprep.subr.bf16.mxu0 %v5381_v32  ;;  %4787 = vmatprep.subr.bf16.mxu1 %v5381_v32 }
 0x16c   : > { %4768 = vmatmul.mubr.msk.bf16.vlgmr.msra.gmra.mrb[12].mxu0 %vm343_vm0, %v5490_v60  ;;  %4776 = vmatmul.mubr.msk.bf16.vlgmr.msra.gmra.mrb[12].mxu1 %vm343_vm0, %v5490_v60 }
 0x16d   : > { %4780 = vmatpush3.bf16.msra.mxu0 %v5595_v13  ;;  %4788 = vmatpush3.bf16.msra.mxu1 %v5213_v14 }
 0x16e   : > { %4781 = vmatprep.subr.bf16.mxu0 %v5381_v32  ;;  %4789 = vmatprep.subr.bf16.mxu1 %v5381_v32 }
 0x16f   : > { %4783 = vmatprep.mubr.msk.bf16.mxu0 %vm5382_vm1, %v5381_v32  ;;  %4791 = vmatprep.mubr.msk.bf16.mxu1 %vm5382_vm1, %v5381_v32 }
 0x171   : > { %4782 = vmatpush3.bf16.msra.mxu0 %v5610_v15  ;;  %4790 = vmatpush3.bf16.msra.mxu1 %v5215_v16 }
 0x172   : > { %4795 = vmatprep.subr.bf16.mxu0 %v5381_v32  ;;  %4803 = vmatprep.subr.bf16.mxu1 %v5381_v32 }
 0x174   : > { %4784 = vmatmul.mubr.msk.bf16.vlgmr.msra.gmra.mrb[16].mxu0 %vm343_vm0, %v5490_v60  ;;  %4792 = vmatmul.mubr.msk.bf16.vlgmr.msra.gmra.mrb[16].mxu1 %vm343_vm0, %v5490_v60 }
 0x175   : > { %4796 = vmatpush3.bf16.msra.mxu0 %v5625_v17  ;;  %4804 = vmatpush3.bf16.msra.mxu1 %v5217_v18 }
 0x176   : > { %4797 = vmatprep.subr.bf16.mxu0 %v5381_v32  ;;  %4805 = vmatprep.subr.bf16.mxu1 %v5381_v32 }
 0x177   : > { %4799 = vmatprep.mubr.msk.bf16.mxu0 %vm5382_vm1, %v5381_v32  ;;  %4807 = vmatprep.mubr.msk.bf16.mxu1 %vm5382_vm1, %v5381_v32 }
 0x179   : > { %4798 = vmatpush3.bf16.msra.mxu0 %v5640_v19  ;;  %4806 = vmatpush3.bf16.msra.mxu1 %v5219_v20 }
 0x17a   : > { %4811 = vmatprep.subr.bf16.mxu0 %v5381_v32  ;;  %4819 = vmatprep.subr.bf16.mxu1 %v5381_v32 }
 0x17c   : > { %4800 = vmatmul.mubr.msk.bf16.vlgmr.msra.gmra.mrb[20].mxu0 %vm343_vm0, %v5490_v60  ;;  %4808 = vmatmul.mubr.msk.bf16.vlgmr.msra.gmra.mrb[20].mxu1 %vm343_vm0, %v5490_v60 }
 0x17d   : > { %4812 = vmatpush3.bf16.msra.mxu0 %v5655_v21  ;;  %4820 = vmatpush3.bf16.msra.mxu1 %v5221_v22 }
 0x17e   : > { %4813 = vmatprep.subr.bf16.mxu0 %v5381_v32  ;;  %4821 = vmatprep.subr.bf16.mxu1 %v5381_v32 }
 0x17f   : > { %4815 = vmatprep.mubr.msk.bf16.mxu0 %vm5382_vm1, %v5381_v32  ;;  %4823 = vmatprep.mubr.msk.bf16.mxu1 %vm5382_vm1, %v5381_v32 }
 0x181   : > { %4814 = vmatpush3.bf16.msra.mxu0 %v5670_v23  ;;  %4822 = vmatpush3.bf16.msra.mxu1 %v5223_v24 }
 0x182   : > { %4827 = vmatprep.subr.bf16.mxu0 %v5381_v32  ;;  %4833 = vmatprep.subr.bf16.mxu1 %v5381_v32 }
 0x184   : > { %4816 = vmatmul.mubr.msk.bf16.vlgmr.msra.gmra.mrb[24].mxu0 %vm343_vm0, %v5490_v60  ;;  %4824 = vmatmul.mubr.msk.bf16.vlgmr.msra.gmra.mrb[24].mxu1 %vm343_vm0, %v5490_v60 }
 0x185   : > { %4829 = vmatprep.mubr.msk.bf16.mxu0 %vm5382_vm1, %v5381_v32  ;;  %4835 = vmatprep.mubr.msk.bf16.mxu1 %vm5382_vm1, %v5381_v32 }
 0x227   : > { %v4721_v27 = vpop.f32.mrb[0].mxu0  ;;  %v4729_v28 = vpop.f32.mrb[0].mxu1 }
 0x228   : > { %v5698_v29 = vadd.f32 %v4721_v27, %v4406_v25  ;;  %v5700_v30 = vadd.f32 %v4729_v28, %v4415_v26  ;;  %v476_v31 = vpop.f32.mrb[1].mxu0  ;;  %v547_v33 = vpop.f32.mrb[1].mxu1 }
 0x229   : > { %v4722_v34 = vpop.f32.mrb[2].mxu0  ;;  %v4730_v35 = vpop.f32.mrb[2].mxu1  ;;  %v5706_v40 = vadd.f32 %v4406_v25, %v476_v31  ;;  %v5708_v41 = vadd.f32 %v4415_v26, %v547_v33 }
 0x22a   : > { %v5702_v36 = vadd.f32 %v4722_v34, %v4406_v25  ;;  %v5704_v37 = vadd.f32 %v4730_v35, %v4415_v26  ;;  %v479_v38 = vpop.f32.mrb[3].mxu0  ;;  %v550_v39 = vpop.f32.mrb[3].mxu1 }
 0x22b   : > { %v5710_v42 = vadd.f32 %v4406_v25, %v479_v38  ;;  %v5712_v43 = vadd.f32 %v4415_v26, %v550_v39 }
 0x22c   : > { %v3849_v44 = vpack.c.bf16 %v5702_v36, %v5698_v29  ;;  %v3848_v45 = vpack.c.bf16 %v5704_v37, %v5700_v30 }
 0x22d   : > { %v2227_v46 = vpack.c.bf16 %v5710_v42, %v5706_v40  ;;  %v2226_v47 = vpack.c.bf16 %v5712_v43, %v5708_v41  ;;  %v5941_v40 = vld [vmem:[%s6382_s3 + $0x28] sm:$0xff]  }
 0x22f   : > { %v681_v48 = vpop.f32.mrb[4].mxu0  ;;  %v734_v49 = vpop.f32.mrb[4].mxu1 }
 0x230   : > { %v4737_v50 = vpop.f32.mrb[5].mxu0  ;;  %v4745_v51 = vpop.f32.mrb[5].mxu1 }
 0x231   : > { %v684_v52 = vpop.f32.mrb[6].mxu0  ;;  %v737_v53 = vpop.f32.mrb[6].mxu1 }
 0x232   : > { %v1271_v54 = vpack.c.bf16 %v684_v52, %v681_v48  ;;  %v1272_v55 = vpack.c.bf16 %v737_v53, %v734_v49  ;;  %v4738_v58 = vpop.f32.mrb[7].mxu0  ;;  %v4746_v59 = vpop.f32.mrb[7].mxu1 }
 0x237   : > { %v787_v61 = vpop.f32.mrb[8].mxu0  ;;  %v840_v1 = vpop.f32.mrb[8].mxu1 }
 0x238   : > { %v4753_v4 = vpop.f32.mrb[9].mxu0  ;;  %v4761_v6 = vpop.f32.mrb[9].mxu1 }
 0x239   : > { %v790_v8 = vpop.f32.mrb[10].mxu0  ;;  %v843_v10 = vpop.f32.mrb[10].mxu1 }
 0x23a   : > { %v1273_v12 = vpack.c.bf16 %v790_v8, %v787_v61  ;;  %v1274_v14 = vpack.c.bf16 %v843_v10, %v840_v1  ;;  %v4754_v16 = vpop.f32.mrb[11].mxu0  ;;  %v4762_v18 = vpop.f32.mrb[11].mxu1 }
 0x23f   : > { %v893_v20 = vpop.f32.mrb[12].mxu0  ;;  %v946_v22 = vpop.f32.mrb[12].mxu1 }
 0x240   : > { %v4769_v24 = vpop.f32.mrb[13].mxu0  ;;  %v4777_v25 = vpop.f32.mrb[13].mxu1 }
 0x241   : > { %v896_v26 = vpop.f32.mrb[14].mxu0  ;;  %v949_v27 = vpop.f32.mrb[14].mxu1 }
 0x242   : > { %v1275_v28 = vpack.c.bf16 %v896_v26, %v893_v20  ;;  %v1276_v31 = vpack.c.bf16 %v949_v27, %v946_v22  ;;  %v4770_v33 = vpop.f32.mrb[15].mxu0  ;;  %v4778_v34 = vpop.f32.mrb[15].mxu1 }
 0x244   : > { %v1284_v35 = vsel %vm1279_vm2, %v1275_v28, 0  ;;  %v1331_v38 = vsel %vm1279_vm2, %v1276_v31, 0 }
 0x245   : > { %4828 = vmatpush3.bf16.xpose.msra.mxu0 %v1284_v35  ;;  %4834 = vmatpush3.bf16.xpose.msra.mxu1 %v1331_v38 }
 0x246   : > { %4839 = vmatprep.subr.bf16.mxu0 %v5381_v32  ;;  %4845 = vmatprep.subr.bf16.mxu1 %v5381_v32 }
 0x247   : > { %v999_v39 = vpop.f32.mrb[16].mxu0  ;;  %v1052_v48 = vpop.f32.mrb[16].mxu1 }
 0x248   : > { %v4785_v49 = vpop.f32.mrb[17].mxu0  ;;  %v4793_v50 = vpop.f32.mrb[17].mxu1 }
 0x249   : > { %v1002_v51 = vpop.f32.mrb[18].mxu0  ;;  %v1055_v52 = vpop.f32.mrb[18].mxu1 }
 0x24a   : > { %v1277_v53 = vpack.c.bf16 %v1002_v51, %v999_v39  ;;  %v1278_v58 = vpack.c.bf16 %v1055_v52, %v1052_v48  ;;  %v4786_v59 = vpop.f32.mrb[19].mxu0  ;;  %v4794_v61 = vpop.f32.mrb[19].mxu1 }
 0x24c   : > { %v1378_v1 = vsel %vm1279_vm2, %v1277_v53, 0  ;;  %v1425_v4 = vsel %vm1279_vm2, %v1278_v58, 0  ;;  %4830 = vmatmul.mubr.msk.bf16.vlgmr.msra.gmra.mrb[28].mxu0 %vm1279_vm2, %v1271_v54  ;;  %4836 = vmatmul.mubr.msk.bf16.vlgmr.msra.gmra.mrb[28].mxu1 %vm1279_vm2, %v1272_v55 }
 0x24d   : > { %4840 = vmatpush3.bf16.xpose.msra.mxu0 %v1378_v1  ;;  %4846 = vmatpush3.bf16.xpose.msra.mxu1 %v1425_v4 }
 0x24e   : > { %4841 = vmatprep.mubr.msk.bf16.mxu0 %vm5382_vm1, %v5381_v32  ;;  %4847 = vmatprep.mubr.msk.bf16.mxu1 %vm5382_vm1, %v5381_v32 }
 0x24f   : > { %v1105_v6 = vpop.f32.mrb[20].mxu0  ;;  %v1158_v8 = vpop.f32.mrb[20].mxu1  ;;  %4851 = vmatprep.subr.bf16.mxu0 %v5381_v32  ;;  %4857 = vmatprep.subr.bf16.mxu1 %v5381_v32 }
 0x250   : > { %v4801_v10 = vpop.f32.mrb[21].mxu0  ;;  %v4809_v16 = vpop.f32.mrb[21].mxu1 }
 0x251   : > { %v1108_v18 = vpop.f32.mrb[22].mxu0  ;;  %v1161_v54 = vpop.f32.mrb[22].mxu1 }
 0x252   : > { %v1561_v20 = vpack.c.bf16 %v1108_v18, %v1105_v6  ;;  %v1562_v55 = vpack.c.bf16 %v1161_v54, %v1158_v8  ;;  %v4802_v22 = vpop.f32.mrb[23].mxu0  ;;  %v4810_v24 = vpop.f32.mrb[23].mxu1 }
 0x254   : > { %4842 = vmatmul.mubr.msk.bf16.vlgmr.msra.gmra.mrb[32].mxu0 %vm1279_vm2, %v1273_v12  ;;  %4848 = vmatmul.mubr.msk.bf16.vlgmr.msra.gmra.mrb[32].mxu1 %vm1279_vm2, %v1274_v14 }
 0x255   : > { %4852 = vmatpush3.bf16.msra.mxu0 %v1561_v20  ;;  %4858 = vmatpush3.bf16.msra.mxu1 %v1562_v55 }
 0x256   : > { %4853 = vmatprep.mubr.msk.bf16.mxu0 %vm5382_vm1, %v5381_v32  ;;  %4863 = vmatprep.subr.bf16.mxu0 %v5381_v32 }
 0x257   : > { %v5741_v25 = vpop.f32.mrb[24].mxu0  ;;  %v5743_v26 = vpop.f32.mrb[24].mxu1  ;;  %4859 = vmatprep.mubr.msk.bf16.mxu1 %vm5382_vm1, %v5381_v32  ;;  %4869 = vmatprep.subr.bf16.mxu1 %v5381_v32 }
 0x258   : > { %v4817_v27 = vpop.f32.mrb[25].mxu0  ;;  %v4825_v12 = vpop.f32.mrb[25].mxu1 }
 0x259   : > { %v5748_v28 = vpop.f32.mrb[26].mxu0  ;;  %v5750_v14 = vpop.f32.mrb[26].mxu1 }
 0x25a   : > { %v1563_v31 = vpack.c.bf16 %v5748_v28, %v5741_v25  ;;  %v1564_v33 = vpack.c.bf16 %v5750_v14, %v5743_v26  ;;  %v4818_v34 = vpop.f32.mrb[27].mxu0  ;;  %v4826_v35 = vpop.f32.mrb[27].mxu1 }
 0x31f   : > { %v1320_v38 = vpop.f32.mrb[28].mxu0  ;;  %v5756_v39 = vpop.f32.mrb[28].mxu1 }
 0x320   : > { %v4831_v48 = vpop.f32.mrb[29].mxu0  ;;  %v4837_v49 = vpop.f32.mrb[29].mxu1  ;;  %v1469_v50 = vsel %vm1468_vm3, %v1320_v38, -inf }
 0x321   : > { %v5759_v51 = vpop.f32.mrb[30].mxu1  ;;  %1470 = vmax.xlane.f32.xlu0 %v1469_v50  ;;  %v1323_v52 = vpop.f32.mrb[30].mxu0 }
 0x322   : > { %v4832_v53 = vpop.f32.mrb[31].mxu0  ;;  %v4838_v58 = vpop.f32.mrb[31].mxu1  ;;  %v1472_v59 = vsel %vm1468_vm3, %v1323_v52, -inf }
 0x323   : > { %1473 = vmax.xlane.f32.xlu1 %v1472_v59 }
 0x327   : > { %v1414_v61 = vpop.f32.mrb[32].mxu0  ;;  %v5762_v1 = vpop.f32.mrb[32].mxu1 }
 0x328   : > { %v4843_v4 = vpop.f32.mrb[33].mxu0  ;;  %v4849_v6 = vpop.f32.mrb[33].mxu1  ;;  %v1481_v8 = vsel %vm1468_vm3, %v1414_v61, -inf }
 0x329   : > { %v5765_v10 = vpop.f32.mrb[34].mxu1  ;;  %1482 = vmax.xlane.f32.xlu0 %v1481_v8  ;;  %v1417_v16 = vpop.f32.mrb[34].mxu0 }
 0x32a   : > { %v4844_v18 = vpop.f32.mrb[35].mxu0  ;;  %v4850_v54 = vpop.f32.mrb[35].mxu1  ;;  %v1484_v20 = vsel %vm1468_vm3, %v1417_v16, -inf }
 0x32b   : > { %1485 = vmax.xlane.f32.xlu1 %v1484_v20  ;;  %v1478_v54 = vsel %vm1468_vm3, %v5759_v51, -inf  ;;  %v1487_v20 = vsel %vm1468_vm3, %v5762_v1, -inf }
 0x3ae   : > { %v1471_v55 = vpop.xlane.xlu0 %1470 }
 0x3af   : > { %v1493_v22 = vsub.f32 %v1320_v38, %v1471_v55  ;;  %v1490_v55 = vsel %vm1468_vm3, %v5765_v10, -inf }
 0x3b0   : > { %v1474_v24 = vpop.xlane.xlu1 %1473 }
 0x3b1   : > { %v1501_v27 = vmul.f32 1.442695, %v1493_v22  ;;  %v1494_v12 = vsub.f32 %v1323_v52, %v1474_v24 }
 0x3b3   : > { %5241 = vpow2.f32 %v1501_v27  ;;  %v1503_v34 = vmul.f32 1.442695, %v1494_v12 }
 0x3b5   : > { %5243 = vpow2.f32 %v1503_v34 }
 0x3b6   : > { %v1483_v35 = vpop.xlane.xlu0 %1482 }
 0x3b7   : > { %v1497_v48 = vsub.f32 %v1414_v61, %v1483_v35 }
 0x3b8   : > { %v1486_v49 = vpop.xlane.xlu1 %1485 }
 0x3b9   : > { %v1509_v50 = vmul.f32 1.442695, %v1497_v48  ;;  %v1498_v53 = vsub.f32 %v1417_v16, %v1486_v49  ;;  %v1475_v16 = vsel %vm1468_vm3, %v5756_v39, -inf }
 0x3bb   : > { %5245 = vpow2.f32 %v1509_v50  ;;  %v1511_v58 = vmul.f32 1.442695, %v1498_v53 }
 0x3bd   : > { %v5242_v59 = vpop.eup %5241  ;;  %5247 = vpow2.f32 %v1511_v58 }
 0x3be   : > { %v1517_v4 = vsel %vm1468_vm3, %v5242_v59, 0.0 }
 0x3bf   : > { %v5244_v6 = vpop.eup %5243  ;;  %1518 = vadd.xlane.f32.xlu0 %v1517_v4 }
 0x3c0   : > { %v1520_v38 = vsel %vm1468_vm3, %v5244_v6, 0.0 }
 0x3c1   : > { %1521 = vadd.xlane.f32.xlu1 %v1520_v38 }
 0x3c5   : > { %v5246_v52 = vpop.eup %5245 }
 0x3c6   : > { %v1529_v8 = vsel %vm1468_vm3, %v5246_v52, 0.0 }
 0x3c7   : > { %v5248_v18 = vpop.eup %5247  ;;  %1530 = vadd.xlane.f32.xlu0 %v1529_v8 }
 0x3c8   : > { %v1532_v61 = vsel %vm1468_vm3, %v5248_v18, 0.0 }
 0x3c9   : > { %1533 = vadd.xlane.f32.xlu1 %v1532_v61 }
 0x3cb   : > { %1476 = vmax.xlane.f32.xlu0 %v1475_v16 }
 0x3cd   : > { %1479 = vmax.xlane.f32.xlu1 %v1478_v54 }
 0x3cf   : > { %1488 = vmax.xlane.f32.xlu0 %v1487_v20 }
 0x3d1   : > { %1491 = vmax.xlane.f32.xlu1 %v1490_v55 }
 0x44c   : > { %v1519_v22 = vpop.xlane.xlu0 %1518 }
 0x44d   : > { %5249 = vrcp.f32 %v1519_v22 }
 0x44e   : > { %v1522_v24 = vpop.xlane.xlu1 %1521 }
 0x44f   : > { %5251 = vrcp.f32 %v1522_v24 }
 0x454   : > { %v1531_v27 = vpop.xlane.xlu0 %1530 }
 0x455   : > { %5253 = vrcp.f32 %v1531_v27 }
 0x456   : > { %v1534_v12 = vpop.xlane.xlu1 %1533 }
 0x457   : > { %v5250_v34 = vpop.eup %5249  ;;  %5255 = vrcp.f32 %v1534_v12 }
 0x458   : > { %v1477_v35 = vpop.xlane.xlu0 %1476  ;;  %v1549_v50 = vmul.f32 %v5250_v34, %v5242_v59  ;;  %v610_v34 = vld [vmem:[%s6381_s2] sm:$0xf] }
 0x459   : > { %v5252_v48 = vpop.eup %5251  ;;  %v1495_v49 = vsub.f32 %v5756_v39, %v1477_v35  ;;  %v5802_v35 = vsel %vm1748_vm4, %v610_v34, 0  ;;  %v5847_v34 = vld [vmem:[%s6383_s4] sm:$0xff]  }
 0x45a   : > { %v1550_v53 = vmul.f32 %v5252_v48, %v5244_v6  ;;  %v1480_v58 = vpop.xlane.xlu1 %1479  ;;  %v628_v48 = vld [vmem:[%s6386_s7 + $0x8] sm:$0xff] }
 0x45b   : > { %v1505_v4 = vmul.f32 1.442695, %v1495_v49  ;;  %v1496_v38 = vsub.f32 %v5759_v51, %v1480_v58  ;;  %v627_v49 = vld [vmem:[%s6386_s7] sm:$0xff]  ;;  %v4429_v58 = vld [vmem:[%s6386_s7 + $0x18] sm:$0xff] }
 0x45c   : > { %v1489_v8 = vpop.xlane.xlu0 %1488  ;;  %v1557_v61 = vpack.c.bf16 %v1550_v53, %v1549_v50  ;;  %v5383_v50 = vmov 0   ;;  %v4428_v53 = vld [vmem:[%s6386_s7 + $0x10] sm:$0xff] }
 0x45d   : > { %5257 = vpow2.f32 %v1505_v4  ;;  %v1507_v16 = vmul.f32 1.442695, %v1496_v38  ;;  %v1499_v54 = vsub.f32 %v5762_v1, %v1489_v8  ;;  %5195 = vset.pattern.permute.xlu1 %v5383_v50  ;;  %5194 = vset.pattern.permute.xlu0 %v5383_v50 }
 0x45e   : > { %4854 = vmatmul.mubr.msk.bf16.vlgmr.msra.gmra.mrb[36].mxu0 %vm1468_vm3, %v1557_v61  ;;  %v1492_v20 = vpop.xlane.xlu1 %1491 }
 0x45f   : > { %v5254_v55 = vpop.eup %5253  ;;  %5259 = vpow2.f32 %v1507_v16  ;;  %v1513_v22 = vmul.f32 1.442695, %v1499_v54  ;;  %4864 = vmatpush3.bf16.msra.mxu0 %v1563_v31  ;;  %v1500_v39 = vsub.f32 %v5765_v10, %v1492_v20  ;;  %4865 = vmatprep.mubr.msk.bf16.mxu0 %vm5382_vm1, %v5381_v32 }
 0x460   : > { %4875 = vmatprep.subr.bf16.mxu0 %v5381_v32  ;;  %v1553_v59 = vmul.f32 %v5254_v55, %v5246_v52 }
 0x461   : > { %v5256_v51 = vpop.eup %5255  ;;  %5261 = vpow2.f32 %v1513_v22  ;;  %v1515_v1 = vmul.f32 1.442695, %v1500_v39 }
 0x462   : > { %v1554_v6 = vmul.f32 %v5256_v51, %v5248_v18 }
 0x463   : > { %5263 = vpow2.f32 %v1515_v1 }
 0x464   : > { %v1559_v24 = vpack.c.bf16 %v1554_v6, %v1553_v59 }
 0x466   : > { %4866 = vmatmul.mubr.msk.bf16.vlgmr.msra.gmra.mrb[40].mxu0 %vm1468_vm3, %v1559_v24 }
 0x467   : > { %v5258_v27 = vpop.eup %5257  ;;  %4877 = vmatprep.mubr.msk.bf16.mxu0 %vm5382_vm1, %v5381_v32  ;;  %4876 = vmatpush3.bf16.msra.mxu0 %v5802_v35 }
 0x468   : > { %v1523_v25 = vsel %vm1468_vm3, %v5258_v27, 0.0  ;;  %4887 = vmatprep.subr.bf16.mxu0 %v5381_v32 }
 0x469   : > { %v5260_v28 = vpop.eup %5259  ;;  %1524 = vadd.xlane.f32.xlu0 %v1523_v25 }
 0x46a   : > { %v1526_v31 = vsel %vm1468_vm3, %v5260_v28, 0.0 }
 0x46b   : > { %v5262_v10 = vpop.eup %5261  ;;  %1527 = vadd.xlane.f32.xlu1 %v1526_v31 }
 0x46c   : > { %v1535_v12 = vsel %vm1468_vm3, %v5262_v10, 0.0 }
 0x46d   : > { %v5264_v52 = vpop.eup %5263  ;;  %1536 = vadd.xlane.f32.xlu0 %v1535_v12 }
 0x46e   : > { %v1538_v18 = vsel %vm1468_vm3, %v5264_v52, 0.0 }
 0x46f   : > { %1539 = vadd.xlane.f32.xlu1 %v1538_v18 }
 0x480   : > { %1962 = vperm.xlu1 %5195, %v628_v48   ;;  %v611_v48 = vld [vmem:[%s6381_s2 + $0x4] sm:$0xf] }
 0x483   : > { %1957 = vperm.xlu0 %5194, %v627_v49   ;;  %v5857_v49 = vsel %vm1748_vm4, %v611_v48, 0 }
 0x484   : > { %2016 = vperm.xlu1 %5195, %v4428_v53   ;;  %v613_v53 = vld [vmem:[%s6381_s2 + $0xc] sm:$0xf] }
 0x488   : > { %2021 = vperm.xlu1 %5195, %v4429_v58  }
 0x4f6   : > { %v1525_v4 = vpop.xlane.xlu0 %1524 }
 0x4f7   : > { %5265 = vrcp.f32 %v1525_v4 }
 0x4f8   : > { %v1528_v38 = vpop.xlane.xlu1 %1527 }
 0x4f9   : > { %5267 = vrcp.f32 %v1528_v38 }
 0x4fa   : > { %v1537_v8 = vpop.xlane.xlu0 %1536 }
 0x4fc   : > { %v1540_v61 = vpop.xlane.xlu1 %1539 }
 0x4fd   : > { %5269 = vrcp.f32 %v1540_v61  ;;  %v5865_v61 = vsel %vm1748_vm4, %v613_v53, 0 }
 0x4fe   : > { %5271 = vrcp.f32 %v1537_v8 }
 0x501   : > { %v5266_v16 = vpop.eup %5265 }
 0x502   : > { %v1551_v20 = vmul.f32 %v5266_v16, %v5258_v27  ;;  %v612_v27 = vld [vmem:[%s6381_s2 + $0x8] sm:$0xf] }
 0x503   : > { %v5268_v54 = vpop.eup %5267 }
 0x504   : > { %v1552_v55 = vmul.f32 %v5268_v54, %v5260_v28  ;;  %v5832_v28 = vsel %vm1748_vm4, %v612_v27, 0 }
 0x506   : > { %v1558_v22 = vpack.c.bf16 %v1552_v55, %v1551_v20 }
 0x507   : > { %v5270_v39 = vpop.eup %5269 }
 0x508   : > { %4860 = vmatmul.mubr.msk.bf16.vlgmr.msra.gmra.mrb[36].mxu1 %vm1468_vm3, %v1558_v22  ;;  %v5272_v51 = vpop.eup %5271  ;;  %v1556_v1 = vmul.f32 %v5270_v39, %v5264_v52  ;;  %v5880_v39 = vld [vmem:[%s6383_s4 + $0x8] sm:$0xff]  }
 0x509   : > { %4870 = vmatpush3.bf16.msra.mxu1 %v1564_v33  ;;  %4871 = vmatprep.mubr.msk.bf16.mxu1 %vm5382_vm1, %v5381_v32  ;;  %v1555_v59 = vmul.f32 %v5272_v51, %v5262_v10 }
 0x50a   : > { %4881 = vmatprep.subr.bf16.mxu1 %v5381_v32 }
 0x50b   : > { %v1560_v6 = vpack.c.bf16 %v1556_v1, %v1555_v59 }
 0x510   : > { %4872 = vmatmul.mubr.msk.bf16.vlgmr.msra.gmra.mrb[40].mxu1 %vm1468_vm3, %v1560_v6 }
 0x511   : > { %4883 = vmatprep.mubr.msk.bf16.mxu1 %vm5382_vm1, %v5381_v32  ;;  %4882 = vmatpush3.bf16.msra.mxu1 %v5857_v49 }
 0x512   : > { %4893 = vmatprep.subr.bf16.mxu1 %v5381_v32 }
 0x531   : > { %v1602_v24 = vpop.f32.mrb[36].mxu0 }
 0x532   : > { %v4855_v26 = vpop.f32.mrb[37].mxu0 }
 0x533   : > { %v1605_v14 = vpop.f32.mrb[38].mxu0 }
 0x534   : > { %v1741_v33 = vpack.c.bf16 %v1605_v14, %v1602_v24  ;;  %v4856_v25 = vpop.f32.mrb[39].mxu0 }
 0x536   : > { %4878 = vmatmul.mubr.msk.bf16.vlgmr.msra.gmra.mrb[44].mxu0 %vm1279_vm2, %v1741_v33  ;;  %v5886_v33 = vpop.permute.xlu0 %1957 }
 0x537   : > { %4888 = vmatpush3.bf16.msra.mxu0 %v5832_v28  ;;  %4889 = vmatprep.mubr.msk.bf16.mxu0 %vm5382_vm1, %v5381_v32 }
 0x538   : > { %4899 = vmatprep.subr.bf16.mxu0 %v5381_v32 }
 0x539   : > { %v1690_v31 = vpop.f32.mrb[40].mxu0 }
 0x53a   : > { %v4867_v10 = vpop.f32.mrb[41].mxu0 }
 0x53b   : > { %v1693_v12 = vpop.f32.mrb[42].mxu0  ;;  %v5888_v10 = vpop.permute.xlu1 %1962 }
 0x53c   : > { %v1743_v52 = vpack.c.bf16 %v1693_v12, %v1690_v31  ;;  %v4868_v18 = vpop.f32.mrb[43].mxu0 }
 0x53e   : > { %4890 = vmatmul.mubr.msk.bf16.vlgmr.msra.gmra.mrb[48].mxu0 %vm1279_vm2, %v1743_v52 }
 0x53f   : > { %4900 = vmatpush3.bf16.msra.mxu0 %v5490_v60  ;;  %4901 = vmatprep.mubr.msk.bf16.mxu0 %vm5382_vm1, %v5381_v32 }
 0x540   : > { %4911 = vmatprep.subr.bf16.mxu0 %v5381_v32 }
 0x546   : > { %4902 = vmatmul.mubr.msk.bf16.vlgmr.msra.gmra.mrb[52].mxu0 %vm1468_vm3, %v5847_v34 }
 0x547   : > { %4913 = vmatprep.mubr.msk.bf16.mxu0 %vm5382_vm1, %v5381_v32 }
 0x5db   : > { %v1646_v50 = vpop.f32.mrb[36].mxu1 }
 0x5dc   : > { %v4861_v58 = vpop.f32.mrb[37].mxu1 }
 0x5dd   : > { %v1649_v4 = vpop.f32.mrb[38].mxu1  ;;  %v5901_v58 = vld [vmem:[%s6382_s3 + $0x20] sm:$0xff]  }
 0x5de   : > { %v1742_v38 = vpack.c.bf16 %v1649_v4, %v1646_v50  ;;  %v4862_v8 = vpop.f32.mrb[39].mxu1 }
 0x5e0   : > { %4884 = vmatmul.mubr.msk.bf16.vlgmr.msra.gmra.mrb[44].mxu1 %vm1279_vm2, %v1742_v38 }
 0x5e1   : > { %4894 = vmatpush3.bf16.msra.mxu1 %v5865_v61  ;;  %4895 = vmatprep.mubr.msk.bf16.mxu1 %vm5382_vm1, %v5381_v32 }
 0x5e2   : > { %4905 = vmatprep.subr.bf16.mxu1 %v5381_v32 }
 0x5e3   : > { %v1734_v16 = vpop.f32.mrb[40].mxu1 }
 0x5e4   : > { %v4873_v54 = vpop.f32.mrb[41].mxu1 }
 0x5e5   : > { %v1737_v20 = vpop.f32.mrb[42].mxu1 }
 0x5e6   : > { %v1744_v55 = vpack.c.bf16 %v1737_v20, %v1734_v16  ;;  %v4874_v22 = vpop.f32.mrb[43].mxu1 }
 0x5e8   : > { %4896 = vmatmul.mubr.msk.bf16.vlgmr.msra.gmra.mrb[48].mxu1 %vm1279_vm2, %v1744_v55 }
 0x5e9   : > { %4906 = vmatpush3.bf16.msra.mxu1 %v5490_v60  ;;  %4907 = vmatprep.mubr.msk.bf16.mxu1 %vm5382_vm1, %v5381_v32 }
 0x5ea   : > { %4917 = vmatprep.subr.bf16.mxu1 %v5381_v32 }
 0x5f0   : > { %4908 = vmatmul.mubr.msk.bf16.vlgmr.msra.gmra.mrb[52].mxu1 %vm1468_vm3, %v5880_v39 }
 0x5f1   : > { %4919 = vmatprep.mubr.msk.bf16.mxu1 %vm5382_vm1, %v5381_v32 }
 0x609   : > { %v1786_v51 = vpop.f32.mrb[44].mxu0 }
 0x60a   : > { %v4879_v1 = vpop.f32.mrb[45].mxu0  ;;  %v1934_v38 = vsel %vm343_vm0, %v1786_v51, 0.0 }
 0x60b   : > { %v1789_v59 = vpop.f32.mrb[46].mxu0 }
 0x60c   : > { %v4880_v6 = vpop.f32.mrb[47].mxu0  ;;  %v1941_v20 = vsel %vm343_vm0, %v1789_v59, 0.0 }
 0x611   : > { %v1880_v24 = vpop.f32.mrb[48].mxu0 }
 0x612   : > { %v4891_v27 = vpop.f32.mrb[49].mxu0  ;;  %v1937_v55 = vsel %vm343_vm0, %v1880_v24, 0.0 }
 0x613   : > { %v1883_v26 = vpop.f32.mrb[50].mxu0 }
 0x614   : > { %v4892_v14 = vpop.f32.mrb[51].mxu0 }
 0x615   : > { %v1944_v14 = vsel %vm343_vm0, %v1883_v26, 0.0 }
 0x619   : > { %v2007_v25 = vpop.f32.mrb[52].mxu0 }
 0x61a   : > { %v4903_v31 = vpop.f32.mrb[53].mxu0  ;;  %v2008_v52 = vadd.f32 %v2007_v25, %v5886_v33 }
 0x61b   : > { %v2010_v12 = vpop.f32.mrb[54].mxu0 }
 0x61c   : > { %v2011_v18 = vadd.f32 %v2010_v12, %v5888_v10  ;;  %v4904_v48 = vpop.f32.mrb[55].mxu0 }
 0x61e   : > { %v2073_v50 = vpack.c.bf16 %v2011_v18, %v2008_v52 }
 0x620   : > { %v2075_v53 = vsel %vm343_vm0, %v2073_v50, 0  ;;  %v5915_v50 = vpop.permute.xlu1 %2016 }
 0x621   : > { %4912 = vmatpush3.bf16.xpose.msra.mxu0 %v2075_v53 }
 0x622   : > { %4923 = vmatprep.subr.bf16.mxu0 %v5381_v32 }
 0x628   : > { %4914 = vmatmul.mubr.msk.bf16.vlgmr.msra.gmra.mrb[56].mxu0 %vm343_vm0, %v5490_v60 }
 0x629   : > { %4927 = vmatprep.mubr.msk.bf16.mxu0 %vm5382_vm1, %v5381_v32  ;;  %4924 = vmatpush3.bf16.msra.mxu0 %v5901_v58 }
 0x62a   : > { %4925 = vmatprep.subr.bf16.mxu0 %v5381_v32 }
 0x62d   : > { %4926 = vmatpush3.bf16.msra.mxu0 %v5941_v40 }
 0x62e   : > { %4937 = vmatprep.subr.bf16.mxu0 %v5381_v32 }
 0x6b3   : > { %v1833_v4 = vpop.f32.mrb[44].mxu1 }
 0x6b4   : > { %v1935_v8 = vsel %vm343_vm0, %v1833_v4, 0.0  ;;  %v4885_v16 = vpop.f32.mrb[45].mxu1 }
 0x6b5   : > { %v1936_v54 = vadd.f32 %v1935_v8, %v1934_v38  ;;  %v1836_v60 = vpop.f32.mrb[46].mxu1  ;;  %v5919_v38 = vpop.permute.xlu1 %2021 }
 0x6b6   : > { %v1942_v22 = vsel %vm343_vm0, %v1836_v60, 0.0  ;;  %v4886_v1 = vpop.f32.mrb[47].mxu1 }
 0x6b7   : > { %v1943_v6 = vadd.f32 %v1942_v22, %v1941_v20  ;;  %v1938_v27 = vadd.f32 %v1937_v55, %v1936_v54 }
 0x6b9   : > { %v1945_v25 = vadd.f32 %v1944_v14, %v1943_v6 }
 0x6bb   : > { %v1927_v31 = vpop.f32.mrb[48].mxu1 }
 0x6bc   : > { %v1939_v51 = vsel %vm343_vm0, %v1927_v31, 0.0  ;;  %v4897_v12 = vpop.f32.mrb[49].mxu1 }
 0x6bd   : > { %v5912_v52 = vadd.f32 %v1939_v51, %v1938_v27  ;;  %v1930_v18 = vpop.f32.mrb[50].mxu1  ;;  %v2232_v27 = vsel %vm343_vm0, %v2227_v46, 0 }
 0x6be   : > { %v1946_v48 = vsel %vm343_vm0, %v1930_v18, 0.0  ;;  %v4898_v59 = vpop.f32.mrb[51].mxu1  ;;  %v5951_v18 = vld [vmem:[%s6385_s6 + $0x4] ss:$0 sm:$0xff] }
 0x6bf   : > { %v5917_v24 = vadd.f32 %v1946_v48, %v1945_v25 }
 0x6c3   : > { %v2066_v53 = vpop.f32.mrb[52].mxu1 }
 0x6c4   : > { %v4909_v4 = vpop.f32.mrb[53].mxu1  ;;  %v2067_v8 = vadd.f32 %v2066_v53, %v5915_v50 }
 0x6c5   : > { %v2069_v26 = vpop.f32.mrb[54].mxu1 }
 0x6c6   : > { %v2070_v16 = vadd.f32 %v2069_v26, %v5919_v38  ;;  %v4910_v54 = vpop.f32.mrb[55].mxu1 }
 0x6c7   : > { %v5358_v54 = vld [vmem:[%s6380_s1 + $0x18] sm:$0xff]  }
 0x6c8   : > { %v2119_v60 = vpack.c.bf16 %v2070_v16, %v2067_v8 }
 0x6ca   : > { %4918 = vmatpush3.bf16.msra.mxu1 %v2119_v60 }
 0x6cb   : > { %4931 = vmatprep.subr.bf16.mxu1 %v5381_v32 }
 0x6fb   : > { %v2111_v20 = vpop.f32.mrb[56].mxu0 }
 0x6fc   : > { %v4915_v55 = vpop.f32.mrb[57].mxu0 }
 0x6fd   : > { %v2114_v22 = vpop.f32.mrb[58].mxu0  ;;  %v5359_v55 = vld [vmem:[%s6380_s1 + $0x30] sm:$0xff]  }
 0x6fe   : > { %v2118_v1 = vpack.c.bf16 %v2114_v22, %v2111_v20  ;;  %v4916_v6 = vpop.f32.mrb[59].mxu0 }
 0x700   : > { %4920 = vmatmul.mubr.msk.bf16.vlgmr.msra.gmra.mrb[56].mxu1 %vm1468_vm3, %v2118_v1 }
 0x701   : > { %4932 = vmatpush3.bf16.xpose.msra.mxu1 %v2232_v27  ;;  %4933 = vmatprep.mubr.msk.bf16.mxu1 %vm5382_vm1, %v5381_v32  ;;  %v5360_v27 = vld [vmem:[%s6380_s1 + $0x38] sm:$0xff]  }
 0x702   : > { %4943 = vmatprep.subr.bf16.mxu1 %v5381_v32 }
 0x708   : > { %4934 = vmatmul.mubr.msk.bf16.vlgmr.msra.gmra.mrb[60].mxu1 %vm343_vm0, %v2226_v47 }
 0x709   : > { %4945 = vmatprep.mubr.msk.bf16.mxu1 %vm5382_vm1, %v5381_v32 }
 0x7d3   : > { %v2157_v42 = vpop.f32.mrb[56].mxu1 }
 0x7d4   : > { %v4921_v46 = vpop.f32.mrb[57].mxu1 }
 0x7d5   : > { %v2160_v14 = vpop.f32.mrb[58].mxu1 }
 0x7d6   : > { %v2164_v25 = vpack.c.bf16 %v2160_v14, %v2157_v42  ;;  %v4922_v31 = vpop.f32.mrb[59].mxu1  ;;  %v5361_v14 = vld [vmem:[%s6380_s1 + $0x50] sm:$0xff]  }
 0x7d8   : > { %4928 = vmatmul.mubr.msk.bf16.vlgmr.msra.gmra.mrb[60].mxu0 %vm343_vm0, %v2164_v25 }
 0x7d9   : > { %4939 = vmatprep.mubr.msk.bf16.mxu0 %vm5382_vm1, %v5381_v32 }
 0x7db   : > { %v2268_v41 = vpop.f32.mrb[60].mxu1 }
 0x7dc   : > { %v4935_v43 = vpop.f32.mrb[61].mxu1 }
 0x7dd   : > { %v2271_v47 = vpop.f32.mrb[62].mxu1 }
 0x7de   : > { %v2275_v51 = vpack.c.bf16 %v2271_v47, %v2268_v41  ;;  %v4936_v12 = vpop.f32.mrb[63].mxu1  ;;  %v5362_v47 = vld [vmem:[%s6380_s1 + $0x58] sm:$0xff]  }
 0x8ab   : > { %v2219_v48 = vpop.f32.mrb[60].mxu0 }
 0x8ac   : > { %v4929_v59 = vpop.f32.mrb[61].mxu0  ;;  %v2220_v4 = vadd.f32 %v5951_v18, %v2219_v48  ;;  %v5363_v48 = vld [vmem:[%s6380_s1 + $0x70] sm:$0xff]  }
 0x8ad   : > { %v2222_v53 = vpop.f32.mrb[62].mxu0 }
 0x8ae   : > { %v2223_v26 = vadd.f32 %v5951_v18, %v2222_v53  ;;  %v4930_v8 = vpop.f32.mrb[63].mxu0 }
 0x8af   : > { %v5364_v8 = vld [vmem:[%s6380_s1 + $0x78] sm:$0xff]  }
 0x8b0   : > { %v2276_v16 = vpack.c.bf16 %v2223_v26, %v2220_v4 }
 0x8b2   : > { %4938 = vmatpush3.bf16.msra.mxu0 %v2276_v16 }
 0x8b3   : > { %4949 = vmatprep.subr.bf16.mxu0 %v5381_v32 }
 0x8b5   : > { %4940 = vmatmul.mubr.msk.bf16.vlgmr.msra.gmra.mrb[64].mxu0 %vm1468_vm3, %v2275_v51 }
 0x8b6   : > { %4950 = vmatpush3.bf16.msra.mxu0 %v5503_v0  ;;  %4953 = vmatprep.mubr.msk.bf16.mxu0 %vm5382_vm1, %v5381_v32 }
 0x8b7   : > { %4951 = vmatprep.subr.bf16.mxu0 %v5381_v32 }
 0x8ba   : > { %4952 = vmatpush3.bf16.msra.mxu0 %v5520_v3 }
 0x8bb   : > { %4965 = vmatprep.subr.bf16.mxu0 %v5381_v32 }
 0x8bd   : > { %4954 = vmatmul.mubr.msk.bf16.vlgmr.msra.gmra.mrb[68].mxu0 %vm343_vm0, %v5510_v2 }
 0x8be   : > { %4966 = vmatpush3.bf16.msra.mxu0 %v5535_v5  ;;  %4969 = vmatprep.mubr.msk.bf16.mxu0 %vm5382_vm1, %v5381_v32 }
 0x8bf   : > { %4967 = vmatprep.subr.bf16.mxu0 %v5381_v32 }
 0x8c2   : > { %4968 = vmatpush3.bf16.msra.mxu0 %v5550_v7 }
 0x8c3   : > { %4981 = vmatprep.subr.bf16.mxu0 %v5381_v32 }
 0x8c5   : > { %4970 = vmatmul.mubr.msk.bf16.vlgmr.msra.gmra.mrb[72].mxu0 %vm343_vm0, %v5510_v2 }
 0x8c6   : > { %4982 = vmatpush3.bf16.msra.mxu0 %v5565_v9  ;;  %4985 = vmatprep.mubr.msk.bf16.mxu0 %vm5382_vm1, %v5381_v32 }
 0x8c7   : > { %4983 = vmatprep.subr.bf16.mxu0 %v5381_v32 }
 0x8ca   : > { %4984 = vmatpush3.bf16.msra.mxu0 %v5580_v11  ;;  %v6010_v11 = vld [vmem:[%s6383_s4 + $0x10] sm:$0xff]  }
 0x8cb   : > { %4997 = vmatprep.subr.bf16.mxu0 %v5381_v32 }
 0x8cd   : > { %4986 = vmatmul.mubr.msk.bf16.vlgmr.msra.gmra.mrb[76].mxu0 %vm343_vm0, %v5510_v2 }
 0x8ce   : > { %4998 = vmatpush3.bf16.msra.mxu0 %v5595_v13  ;;  %5001 = vmatprep.mubr.msk.bf16.mxu0 %vm5382_vm1, %v5381_v32 }
 0x8cf   : > { %4999 = vmatprep.subr.bf16.mxu0 %v5381_v32 }
 0x8d2   : > { %5000 = vmatpush3.bf16.msra.mxu0 %v5610_v15 }
 0x8d3   : > { %5013 = vmatprep.subr.bf16.mxu0 %v5381_v32 }
 0x8d5   : > { %5002 = vmatmul.mubr.msk.bf16.vlgmr.msra.gmra.mrb[80].mxu0 %vm343_vm0, %v5510_v2 }
 0x8d6   : > { %5014 = vmatpush3.bf16.msra.mxu0 %v5625_v17  ;;  %5017 = vmatprep.mubr.msk.bf16.mxu0 %vm5382_vm1, %v5381_v32  ;;  %v5357_v17 = vld [vmem:[%s6380_s1 + $0x10] sm:$0xff]  }
 0x8d7   : > { %5015 = vmatprep.subr.bf16.mxu0 %v5381_v32 }
 0x8da   : > { %5016 = vmatpush3.bf16.msra.mxu0 %v5640_v19 }
 0x8db   : > { %5029 = vmatprep.subr.bf16.mxu0 %v5381_v32 }
 0x8dd   : > { %5018 = vmatmul.mubr.msk.bf16.vlgmr.msra.gmra.mrb[84].mxu0 %vm343_vm0, %v5510_v2 }
 0x8de   : > { %5030 = vmatpush3.bf16.msra.mxu0 %v5655_v21  ;;  %5033 = vmatprep.mubr.msk.bf16.mxu0 %vm5382_vm1, %v5381_v32 }
 0x8df   : > { %5031 = vmatprep.subr.bf16.mxu0 %v5381_v32 }
 0x8e2   : > { %5032 = vmatpush3.bf16.msra.mxu0 %v5670_v23 }
 0x8e3   : > { %5045 = vmatprep.subr.bf16.mxu0 %v5381_v32 }
 0x8e5   : > { %5034 = vmatmul.mubr.msk.bf16.vlgmr.msra.gmra.mrb[88].mxu0 %vm343_vm0, %v5510_v2 }
 0x8e6   : > { %5047 = vmatprep.mubr.msk.bf16.mxu0 %vm5382_vm1, %v5381_v32 }
 0x988   : > { %v2314_v0 = vpop.f32.mrb[64].mxu0 }
 0x989   : > { %v4941_v3 = vpop.f32.mrb[65].mxu0 }
 0x98a   : > { %v2317_v5 = vpop.f32.mrb[66].mxu0  ;;  %v5365_v3 = vld [vmem:[%s6380_s1 + $0x90] sm:$0xff]  }
 0x98b   : > { %v2321_v7 = vpack.c.bf16 %v2317_v5, %v2314_v0  ;;  %v4942_v9 = vpop.f32.mrb[67].mxu0 }
 0x98d   : > { %4944 = vmatpush3.bf16.msra.mxu1 %v2321_v7 }
 0x98e   : > { %4957 = vmatprep.subr.bf16.mxu1 %v5381_v32 }
 0x990   : > { %4946 = vmatmul.mubr.msk.bf16.vlgmr.msra.gmra.mrb[64].mxu1 %vm1468_vm3, %v6010_v11  ;;  %v2508_v13 = vpop.f32.mrb[68].mxu0 }
 0x991   : > { %v4955_v15 = vpop.f32.mrb[69].mxu0  ;;  %4958 = vmatpush3.bf16.msra.mxu1 %v5357_v17  ;;  %4961 = vmatprep.mubr.msk.bf16.mxu1 %vm5382_vm1, %v5381_v32 }
 0x992   : > { %v2511_v19 = vpop.f32.mrb[70].mxu0  ;;  %4959 = vmatprep.subr.bf16.mxu1 %v5381_v32 }
 0x993   : > { %v2966_v21 = vpack.c.bf16 %v2511_v19, %v2508_v13  ;;  %v4956_v23 = vpop.f32.mrb[71].mxu0  ;;  %v5366_v13 = vld [vmem:[%s6380_s1 + $0x98] sm:$0xff]   ;;  %v5367_v19 = vld [vmem:[%s6380_s1 + $0xb0] sm:$0xff]  }
 0x995   : > { %4960 = vmatpush3.bf16.msra.mxu1 %v5358_v54 }
 0x996   : > { %4973 = vmatprep.subr.bf16.mxu1 %v5381_v32 }
 0x998   : > { %4962 = vmatmul.mubr.msk.bf16.vlgmr.msra.gmra.mrb[68].mxu1 %vm343_vm0, %v5510_v2  ;;  %v2590_v60 = vpop.f32.mrb[72].mxu0 }
 0x999   : > { %v4971_v20 = vpop.f32.mrb[73].mxu0  ;;  %4974 = vmatpush3.bf16.msra.mxu1 %v5359_v55  ;;  %4977 = vmatprep.mubr.msk.bf16.mxu1 %vm5382_vm1, %v5381_v32 }
 0x99a   : > { %v2593_v22 = vpop.f32.mrb[74].mxu0  ;;  %4975 = vmatprep.subr.bf16.mxu1 %v5381_v32 }
 0x99b   : > { %v2968_v1 = vpack.c.bf16 %v2593_v22, %v2590_v60  ;;  %v4972_v6 = vpop.f32.mrb[75].mxu0  ;;  %v5368_v60 = vld [vmem:[%s6380_s1 + $0xb8] sm:$0xff]  }
 0x99d   : > { %4976 = vmatpush3.bf16.msra.mxu1 %v5360_v27 }
 0x99e   : > { %4989 = vmatprep.subr.bf16.mxu1 %v5381_v32 }
 0x9a0   : > { %4978 = vmatmul.mubr.msk.bf16.vlgmr.msra.gmra.mrb[72].mxu1 %vm343_vm0, %v5510_v2  ;;  %v2672_v42 = vpop.f32.mrb[76].mxu0 }
 0x9a1   : > { %v4987_v46 = vpop.f32.mrb[77].mxu0  ;;  %4990 = vmatpush3.bf16.msra.mxu1 %v5361_v14  ;;  %4993 = vmatprep.mubr.msk.bf16.mxu1 %vm5382_vm1, %v5381_v32 }
 0x9a2   : > { %v2675_v25 = vpop.f32.mrb[78].mxu0  ;;  %4991 = vmatprep.subr.bf16.mxu1 %v5381_v32 }
 0x9a3   : > { %v2970_v31 = vpack.c.bf16 %v2675_v25, %v2672_v42  ;;  %v4988_v41 = vpop.f32.mrb[79].mxu0 }
 0x9a5   : > { %v2978_v43 = vsel %vm1279_vm2, %v2970_v31, 0  ;;  %4992 = vmatpush3.bf16.msra.mxu1 %v5362_v47 }
 0x9a6   : > { %5046 = vmatpush3.bf16.xpose.msra.mxu0 %v2978_v43  ;;  %5005 = vmatprep.subr.bf16.mxu1 %v5381_v32 }
 0x9a7   : > { %5057 = vmatprep.subr.bf16.mxu0 %v5381_v32 }
 0x9a8   : > { %4994 = vmatmul.mubr.msk.bf16.vlgmr.msra.gmra.mrb[76].mxu1 %vm343_vm0, %v5510_v2  ;;  %v2754_v51 = vpop.f32.mrb[80].mxu0 }
 0x9a9   : > { %v5003_v12 = vpop.f32.mrb[81].mxu0  ;;  %5006 = vmatpush3.bf16.msra.mxu1 %v5363_v48  ;;  %5009 = vmatprep.mubr.msk.bf16.mxu1 %vm5382_vm1, %v5381_v32 }
 0x9aa   : > { %v2757_v59 = vpop.f32.mrb[82].mxu0  ;;  %5007 = vmatprep.subr.bf16.mxu1 %v5381_v32 }
 0x9ab   : > { %v2972_v53 = vpack.c.bf16 %v2757_v59, %v2754_v51  ;;  %v5004_v4 = vpop.f32.mrb[83].mxu0 }
 0x9ad   : > { %v3072_v26 = vsel %vm1279_vm2, %v2972_v53, 0  ;;  %5008 = vmatpush3.bf16.msra.mxu1 %v5364_v8  ;;  %5048 = vmatmul.mubr.msk.bf16.vlgmr.msra.gmra.mrb[92].mxu0 %vm1279_vm2, %v2966_v21 }
 0x9ae   : > { %5058 = vmatpush3.bf16.xpose.msra.mxu0 %v3072_v26  ;;  %5021 = vmatprep.subr.bf16.mxu1 %v5381_v32 }
 0x9af   : > { %5059 = vmatprep.mubr.msk.bf16.mxu0 %vm5382_vm1, %v5381_v32  ;;  %5069 = vmatprep.subr.bf16.mxu0 %v5381_v32 }
 0x9b0   : > { %5010 = vmatmul.mubr.msk.bf16.vlgmr.msra.gmra.mrb[80].mxu1 %vm343_vm0, %v5510_v2  ;;  %v2836_v16 = vpop.f32.mrb[84].mxu0 }
 0x9b1   : > { %v5019_v0 = vpop.f32.mrb[85].mxu0  ;;  %5022 = vmatpush3.bf16.msra.mxu1 %v5365_v3  ;;  %5025 = vmatprep.mubr.msk.bf16.mxu1 %vm5382_vm1, %v5381_v32 }
 0x9b2   : > { %v2839_v5 = vpop.f32.mrb[86].mxu0  ;;  %5023 = vmatprep.subr.bf16.mxu1 %v5381_v32 }
 0x9b3   : > { %v3254_v7 = vpack.c.bf16 %v2839_v5, %v2836_v16  ;;  %v5020_v9 = vpop.f32.mrb[87].mxu0 }
 0x9b5   : > { %5024 = vmatpush3.bf16.msra.mxu1 %v5366_v13  ;;  %5060 = vmatmul.mubr.msk.bf16.vlgmr.msra.gmra.mrb[96].mxu0 %vm1279_vm2, %v2968_v1 }
 0x9b6   : > { %5070 = vmatpush3.bf16.msra.mxu0 %v3254_v7  ;;  %5037 = vmatprep.subr.bf16.mxu1 %v5381_v32 }
 0x9b7   : > { %5071 = vmatprep.mubr.msk.bf16.mxu0 %vm5382_vm1, %v5381_v32  ;;  %5081 = vmatprep.subr.bf16.mxu0 %v5381_v32 }
 0x9b8   : > { %5026 = vmatmul.mubr.msk.bf16.vlgmr.msra.gmra.mrb[84].mxu1 %vm343_vm0, %v5510_v2  ;;  %v6086_v15 = vpop.f32.mrb[88].mxu0 }
 0x9b9   : > { %v5035_v17 = vpop.f32.mrb[89].mxu0  ;;  %5038 = vmatpush3.bf16.msra.mxu1 %v5367_v19  ;;  %5041 = vmatprep.mubr.msk.bf16.mxu1 %vm5382_vm1, %v5381_v32 }
 0x9ba   : > { %v6093_v21 = vpop.f32.mrb[90].mxu0  ;;  %5039 = vmatprep.subr.bf16.mxu1 %v5381_v32 }
 0x9bb   : > { %v3256_v23 = vpack.c.bf16 %v6093_v21, %v6086_v15  ;;  %v5036_v54 = vpop.f32.mrb[91].mxu0 }
 0x9bd   : > { %5040 = vmatpush3.bf16.msra.mxu1 %v5368_v60 }
 0x9be   : > { %5051 = vmatprep.subr.bf16.mxu1 %v5381_v32 }
 0x9c0   : > { %5042 = vmatmul.mubr.msk.bf16.vlgmr.msra.gmra.mrb[88].mxu1 %vm343_vm0, %v5510_v2 }
 0x9c1   : > { %5053 = vmatprep.mubr.msk.bf16.mxu1 %vm5382_vm1, %v5381_v32 }
 0xa63   : > { %v6106_v20 = vpop.f32.mrb[64].mxu1 }
 0xa64   : > { %v4947_v55 = vpop.f32.mrb[65].mxu1 }
 0xa65   : > { %v6108_v22 = vpop.f32.mrb[66].mxu1 }
 0xa66   : > { %v4948_v1 = vpop.f32.mrb[67].mxu1 }
 0xa6b   : > { %v2549_v6 = vpop.f32.mrb[68].mxu1 }
 0xa6c   : > { %v4963_v27 = vpop.f32.mrb[69].mxu1 }
 0xa6d   : > { %v2552_v42 = vpop.f32.mrb[70].mxu1 }
 0xa6e   : > { %v2967_v46 = vpack.c.bf16 %v2552_v42, %v2549_v6  ;;  %v4964_v14 = vpop.f32.mrb[71].mxu1 }
 0xa73   : > { %v2631_v25 = vpop.f32.mrb[72].mxu1 }
 0xa74   : > { %v4979_v31 = vpop.f32.mrb[73].mxu1 }
 0xa75   : > { %v2634_v41 = vpop.f32.mrb[74].mxu1 }
 0xa76   : > { %v2969_v43 = vpack.c.bf16 %v2634_v41, %v2631_v25  ;;  %v4980_v47 = vpop.f32.mrb[75].mxu1 }
 0xa7b   : > { %v2713_v51 = vpop.f32.mrb[76].mxu1 }
 0xa7c   : > { %v4995_v12 = vpop.f32.mrb[77].mxu1 }
 0xa7d   : > { %v2716_v48 = vpop.f32.mrb[78].mxu1 }
 0xa7e   : > { %v2971_v59 = vpack.c.bf16 %v2716_v48, %v2713_v51  ;;  %v4996_v53 = vpop.f32.mrb[79].mxu1 }
 0xa80   : > { %v3025_v4 = vsel %vm1279_vm2, %v2971_v59, 0  ;;  %v3014_v26 = vpop.f32.mrb[92].mxu0 }
 0xa81   : > { %v5049_v8 = vpop.f32.mrb[93].mxu0  ;;  %5052 = vmatpush3.bf16.xpose.msra.mxu1 %v3025_v4  ;;  %v3162_v16 = vsel %vm1468_vm3, %v3014_v26, -inf }
 0xa82   : > { %3163 = vmax.xlane.f32.xlu1 %v3162_v16  ;;  %v3017_v0 = vpop.f32.mrb[94].mxu0  ;;  %5063 = vmatprep.subr.bf16.mxu1 %v5381_v32 }
 0xa83   : > { %v2795_v3 = vpop.f32.mrb[80].mxu1  ;;  %v5050_v5 = vpop.f32.mrb[95].mxu0  ;;  %v3165_v7 = vsel %vm1468_vm3, %v3017_v0, -inf }
 0xa84   : > { %3166 = vmax.xlane.f32.xlu0 %v3165_v7  ;;  %v5011_v9 = vpop.f32.mrb[81].mxu1 }
 0xa85   : > { %v2798_v13 = vpop.f32.mrb[82].mxu1 }
 0xa86   : > { %v2973_v17 = vpack.c.bf16 %v2798_v13, %v2795_v3  ;;  %v5012_v19 = vpop.f32.mrb[83].mxu1 }
 0xa88   : > { %v3119_v54 = vsel %vm1279_vm2, %v2973_v17, 0  ;;  %5054 = vmatmul.mubr.msk.bf16.vlgmr.msra.gmra.mrb[92].mxu1 %vm1279_vm2, %v2967_v46  ;;  %v3108_v60 = vpop.f32.mrb[96].mxu0 }
 0xa89   : > { %v5061_v55 = vpop.f32.mrb[97].mxu0  ;;  %5064 = vmatpush3.bf16.xpose.msra.mxu1 %v3119_v54  ;;  %v3174_v1 = vsel %vm1468_vm3, %v3108_v60, -inf  ;;  %5065 = vmatprep.mubr.msk.bf16.mxu1 %vm5382_vm1, %v5381_v32 }
 0xa8a   : > { %3175 = vmax.xlane.f32.xlu1 %v3174_v1  ;;  %v3111_v6 = vpop.f32.mrb[98].mxu0  ;;  %5075 = vmatprep.subr.bf16.mxu1 %v5381_v32 }
 0xa8b   : > { %v2877_v27 = vpop.f32.mrb[84].mxu1  ;;  %v5062_v42 = vpop.f32.mrb[99].mxu0  ;;  %v3177_v31 = vsel %vm1468_vm3, %v3111_v6, -inf }
 0xa8c   : > { %v5027_v14 = vpop.f32.mrb[85].mxu1 }
 0xa8d   : > { %v2880_v25 = vpop.f32.mrb[86].mxu1 }
 0xa8e   : > { %v3255_v41 = vpack.c.bf16 %v2880_v25, %v2877_v27  ;;  %3178 = vmax.xlane.f32.xlu1 %v3177_v31  ;;  %v5028_v46 = vpop.f32.mrb[87].mxu1 }
 0xa90   : > { %5066 = vmatmul.mubr.msk.bf16.vlgmr.msra.gmra.mrb[96].mxu1 %vm1279_vm2, %v2969_v43 }
 0xa91   : > { %5076 = vmatpush3.bf16.msra.mxu1 %v3255_v41  ;;  %5077 = vmatprep.mubr.msk.bf16.mxu1 %vm5382_vm1, %v5381_v32 }
 0xa92   : > { %5087 = vmatprep.subr.bf16.mxu1 %v5381_v32 }
 0xa93   : > { %v6125_v47 = vpop.f32.mrb[88].mxu1 }
 0xa94   : > { %v5043_v51 = vpop.f32.mrb[89].mxu1 }
 0xa95   : > { %v6127_v12 = vpop.f32.mrb[90].mxu1 }
 0xa96   : > { %v3257_v48 = vpack.c.bf16 %v6127_v12, %v6125_v47  ;;  %v5044_v59 = vpop.f32.mrb[91].mxu1 }
 0xb0f   : > { %v3164_v53 = vpop.xlane.xlu1 %3163 }
 0xb10   : > { %v3186_v4 = vsub.f32 %v3014_v26, %v3164_v53 }
 0xb11   : > { %v3167_v8 = vpop.xlane.xlu0 %3166 }
 0xb12   : > { %v3194_v16 = vmul.f32 1.442695, %v3186_v4  ;;  %v3187_v43 = vsub.f32 %v3017_v0, %v3167_v8 }
 0xb14   : > { %5273 = vpow2.f32 %v3194_v16  ;;  %v3196_v3 = vmul.f32 1.442695, %v3187_v43 }
 0xb16   : > { %5275 = vpow2.f32 %v3196_v3 }
 0xb17   : > { %v3176_v5 = vpop.xlane.xlu1 %3175 }
 0xb18   : > { %v3190_v7 = vsub.f32 %v3108_v60, %v3176_v5 }
 0xb1a   : > { %v3202_v9 = vmul.f32 1.442695, %v3190_v7 }
 0xb1b   : > { %v3179_v13 = vpop.xlane.xlu1 %3178 }
 0xb1c   : > { %5277 = vpow2.f32 %v3202_v9  ;;  %v3191_v17 = vsub.f32 %v3111_v6, %v3179_v13 }
 0xb1e   : > { %v5274_v19 = vpop.eup %5273  ;;  %v3204_v54 = vmul.f32 1.442695, %v3191_v17 }
 0xb1f   : > { %v3210_v55 = vsel %vm1468_vm3, %v5274_v19, 0.0 }
 0xb20   : > { %v5276_v1 = vpop.eup %5275  ;;  %5279 = vpow2.f32 %v3204_v54  ;;  %3211 = vadd.xlane.f32.xlu1 %v3210_v55 }
 0xb21   : > { %v3213_v26 = vsel %vm1468_vm3, %v5276_v1, 0.0 }
 0xb24   : > { %3214 = vadd.xlane.f32.xlu1 %v3213_v26 }
 0xb26   : > { %v5278_v0 = vpop.eup %5277 }
 0xb27   : > { %v3222_v27 = vsel %vm1468_vm3, %v5278_v0, 0.0 }
 0xb28   : > { %3223 = vadd.xlane.f32.xlu0 %v3222_v27 }
 0xb2a   : > { %v5280_v42 = vpop.eup %5279 }
 0xb2b   : > { %v3225_v60 = vsel %vm1468_vm3, %v5280_v42, 0.0 }
 0xb2c   : > { %3226 = vadd.xlane.f32.xlu1 %v3225_v60 }
 0xb5b   : > { %v3061_v14 = vpop.f32.mrb[92].mxu1 }
 0xb5c   : > { %v5055_v6 = vpop.f32.mrb[93].mxu1  ;;  %v3168_v25 = vsel %vm1468_vm3, %v3061_v14, -inf }
 0xb5d   : > { %3169 = vmax.xlane.f32.xlu0 %v3168_v25  ;;  %v3064_v31 = vpop.f32.mrb[94].mxu1 }
 0xb5e   : > { %v5056_v41 = vpop.f32.mrb[95].mxu1  ;;  %v3171_v46 = vsel %vm1468_vm3, %v3064_v31, -inf }
 0xb5f   : > { %3172 = vmax.xlane.f32.xlu1 %v3171_v46 }
 0xb63   : > { %v3155_v51 = vpop.f32.mrb[96].mxu1 }
 0xb64   : > { %v5067_v59 = vpop.f32.mrb[97].mxu1  ;;  %v3180_v53 = vsel %vm1468_vm3, %v3155_v51, -inf }
 0xb65   : > { %3181 = vmax.xlane.f32.xlu0 %v3180_v53  ;;  %v3158_v4 = vpop.f32.mrb[98].mxu1 }
 0xb66   : > { %v5068_v8 = vpop.f32.mrb[99].mxu1  ;;  %v3183_v16 = vsel %vm1468_vm3, %v3158_v4, -inf }
 0xb67   : > { %3184 = vmax.xlane.f32.xlu1 %v3183_v16 }
 0xbad   : > { %v3212_v43 = vpop.xlane.xlu1 %3211 }
 0xbae   : > { %5281 = vrcp.f32 %v3212_v43 }
 0xbb1   : > { %v3215_v3 = vpop.xlane.xlu1 %3214 }
 0xbb2   : > { %5283 = vrcp.f32 %v3215_v3 }
 0xbb5   : > { %v3224_v5 = vpop.xlane.xlu0 %3223 }
 0xbb6   : > { %5285 = vrcp.f32 %v3224_v5 }
 0xbb8   : > { %v5282_v9 = vpop.eup %5281 }
 0xbb9   : > { %v3227_v7 = vpop.xlane.xlu1 %3226  ;;  %v3242_v17 = vmul.f32 %v5282_v9, %v5274_v19 }
 0xbba   : > { %5287 = vrcp.f32 %v3227_v7  ;;  %v4430_v7 = vld [vmem:[%s6386_s7 + $0x20] sm:$0xff] }
 0xbbc   : > { %v5284_v13 = vpop.eup %5283 }
 0xbbd   : > { %v3243_v54 = vmul.f32 %v5284_v13, %v5276_v1 }
 0xbbf   : > { %v3250_v55 = vpack.c.bf16 %v3243_v54, %v3242_v17 }
 0xbc0   : > { %v5286_v26 = vpop.eup %5285 }
 0xbc1   : > { %5072 = vmatmul.mubr.msk.bf16.vlgmr.msra.gmra.mrb[100].mxu0 %vm1468_vm3, %v3250_v55  ;;  %v3246_v60 = vmul.f32 %v5286_v26, %v5278_v0 }
 0xbc2   : > { %5082 = vmatpush3.bf16.msra.mxu0 %v3256_v23  ;;  %5083 = vmatprep.mubr.msk.bf16.mxu0 %vm5382_vm1, %v5381_v32 }
 0xbc3   : > { %5093 = vmatprep.subr.bf16.mxu0 %v5381_v32 }
 0xbc4   : > { %v5288_v27 = vpop.eup %5287 }
 0xbc5   : > { %v3247_v6 = vmul.f32 %v5288_v27, %v5280_v42 }
 0xbc7   : > { %v3252_v25 = vpack.c.bf16 %v3247_v6, %v3246_v60 }
 0xbc9   : > { %5084 = vmatmul.mubr.msk.bf16.vlgmr.msra.gmra.mrb[104].mxu0 %vm1468_vm3, %v3252_v25 }
 0xbca   : > { %5094 = vmatpush3.bf16.msra.mxu0 %v5802_v35  ;;  %5095 = vmatprep.mubr.msk.bf16.mxu0 %vm5382_vm1, %v5381_v32 }
 0xbcb   : > { %5105 = vmatprep.subr.bf16.mxu0 %v5381_v32 }
 0xbea   : > { %v3170_v15 = vpop.xlane.xlu0 %3169 }
 0xbeb   : > { %v3188_v21 = vsub.f32 %v3061_v14, %v3170_v15 }
 0xbec   : > { %v3173_v23 = vpop.xlane.xlu1 %3172 }
 0xbed   : > { %v3198_v19 = vmul.f32 1.442695, %v3188_v21  ;;  %v3189_v1 = vsub.f32 %v3064_v31, %v3173_v23 }
 0xbef   : > { %5289 = vpow2.f32 %v3198_v19  ;;  %v3200_v41 = vmul.f32 1.442695, %v3189_v1 }
 0xbf1   : > { %5291 = vpow2.f32 %v3200_v41 }
 0xbf2   : > { %v3182_v0 = vpop.xlane.xlu0 %3181 }
 0xbf3   : > { %v3192_v42 = vsub.f32 %v3155_v51, %v3182_v0 }
 0xbf4   : > { %v3185_v46 = vpop.xlane.xlu1 %3184 }
 0xbf5   : > { %v3206_v59 = vmul.f32 1.442695, %v3192_v42  ;;  %v3193_v53 = vsub.f32 %v3158_v4, %v3185_v46  ;;  %v4431_v4 = vld [vmem:[%s6386_s7 + $0x28] sm:$0xff] }
 0xbf7   : > { %5293 = vpow2.f32 %v3206_v59  ;;  %v3208_v35 = vmul.f32 1.442695, %v3193_v53 }
 0xbf9   : > { %v5290_v8 = vpop.eup %5289  ;;  %5295 = vpow2.f32 %v3208_v35 }
 0xbfa   : > { %v3216_v16 = vsel %vm1468_vm3, %v5290_v8, 0.0 }
 0xbfb   : > { %v5292_v43 = vpop.eup %5291  ;;  %3217 = vadd.xlane.f32.xlu0 %v3216_v16 }
 0xbfc   : > { %v3219_v14 = vsel %vm1468_vm3, %v5292_v43, 0.0 }
 0xbfd   : > { %3220 = vadd.xlane.f32.xlu1 %v3219_v14 }
 0xc01   : > { %v5294_v31 = vpop.eup %5293 }
 0xc02   : > { %v3228_v3 = vsel %vm1468_vm3, %v5294_v31, 0.0 }
 0xc03   : > { %v5296_v5 = vpop.eup %5295  ;;  %3229 = vadd.xlane.f32.xlu0 %v3228_v3 }
 0xc04   : > { %v3231_v51 = vsel %vm1468_vm3, %v5296_v5, 0.0 }
 0xc05   : > { %3232 = vadd.xlane.f32.xlu1 %v3231_v51 }
 0xc16   : > { %2329 = vperm.xlu1 %5195, %v4431_v4  }
 0xc19   : > { %2324 = vperm.xlu0 %5194, %v4430_v7  }
 0xc88   : > { %v3218_v9 = vpop.xlane.xlu0 %3217 }
 0xc89   : > { %5297 = vrcp.f32 %v3218_v9 }
 0xc8a   : > { %v3221_v13 = vpop.xlane.xlu1 %3220 }
 0xc8b   : > { %5299 = vrcp.f32 %v3221_v13 }
 0xc90   : > { %v3230_v17 = vpop.xlane.xlu0 %3229 }
 0xc91   : > { %5301 = vrcp.f32 %v3230_v17 }
 0xc92   : > { %v3233_v54 = vpop.xlane.xlu1 %3232 }
 0xc93   : > { %v5298_v55 = vpop.eup %5297  ;;  %5303 = vrcp.f32 %v3233_v54 }
 0xc94   : > { %v3295_v26 = vpop.f32.mrb[100].mxu0  ;;  %v3244_v6 = vmul.f32 %v5298_v55, %v5290_v8 }
 0xc95   : > { %v5300_v27 = vpop.eup %5299  ;;  %v5073_v60 = vpop.f32.mrb[101].mxu0 }
 0xc96   : > { %v3245_v25 = vmul.f32 %v5300_v27, %v5292_v43  ;;  %v3298_v15 = vpop.f32.mrb[102].mxu0  ;;  %v6161_v21 = vpop.permute.xlu1 %2329 }
 0xc97   : > { %v3434_v23 = vpack.c.bf16 %v3298_v15, %v3295_v26  ;;  %v2378_v19 = vadd.f32 %v6108_v22, %v6161_v21  ;;  %v5074_v1 = vpop.f32.mrb[103].mxu0 }
 0xc98   : > { %v6165_v41 = vpop.permute.xlu0 %2324  ;;  %v3251_v0 = vpack.c.bf16 %v3245_v25, %v3244_v6 }
 0xc99   : > { %v2375_v42 = vadd.f32 %v6106_v20, %v6165_v41  ;;  %5096 = vmatmul.mubr.msk.bf16.vlgmr.msra.gmra.mrb[108].mxu0 %vm1279_vm2, %v3434_v23  ;;  %v2382_v59 = vsel %vm343_vm0, %v2378_v19, -inf }
 0xc9a   : > { %5078 = vmatmul.mubr.msk.bf16.vlgmr.msra.gmra.mrb[100].mxu1 %vm1468_vm3, %v3251_v0  ;;  %5106 = vmatpush3.bf16.msra.mxu0 %v5832_v28 }
 0xc9b   : > { %v5302_v46 = vpop.eup %5301  ;;  %v2381_v53 = vsel %vm343_vm0, %v2375_v42, -inf  ;;  %5088 = vmatpush3.bf16.msra.mxu1 %v3257_v48  ;;  %5107 = vmatprep.mubr.msk.bf16.mxu0 %vm5382_vm1, %v5381_v32 }
 0xc9c   : > { %v2383_v22 = vmax.f32 %v2381_v53, %v2382_v59  ;;  %v3383_v20 = vpop.f32.mrb[104].mxu0  ;;  %5117 = vmatprep.subr.bf16.mxu0 %v5381_v32  ;;  %5089 = vmatprep.mubr.msk.bf16.mxu1 %vm5382_vm1, %v5381_v32  ;;  %v3248_v8 = vmul.f32 %v5302_v46, %v5294_v31 }
 0xc9d   : > { %v5304_v28 = vpop.eup %5303  ;;  %v5085_v35 = vpop.f32.mrb[105].mxu0  ;;  %5099 = vmatprep.subr.bf16.mxu1 %v5381_v32 }
 0xc9e   : > { %v3249_v16 = vmul.f32 %v5304_v28, %v5296_v5  ;;  %v2384_v43 = vrot.slane %v2383_v22, 4  ;;  %v3386_v14 = vpop.f32.mrb[106].mxu0 }
 0xc9f   : > { %v3436_v47 = vpack.c.bf16 %v3386_v14, %v3383_v20  ;;  %v5086_v12 = vpop.f32.mrb[107].mxu0 }
 0xca0   : > { %v2385_v48 = vmax.f32 %v2383_v22, %v2384_v43  ;;  %v3253_v3 = vpack.c.bf16 %v3249_v16, %v3248_v8 }
 0xca1   : > { %5108 = vmatmul.mubr.msk.bf16.vlgmr.msra.gmra.mrb[112].mxu0 %vm1279_vm2, %v3436_v47 }
 0xca2   : > { %v2386_v51 = vrot.slane %v2385_v48, 2  ;;  %5118 = vmatpush3.bf16.msra.mxu0 %v5510_v2  ;;  %5090 = vmatmul.mubr.msk.bf16.vlgmr.msra.gmra.mrb[104].mxu1 %vm1468_vm3, %v3253_v3 }
 0xca3   : > { %5119 = vmatprep.mubr.msk.bf16.mxu0 %vm5382_vm1, %v5381_v32  ;;  %5100 = vmatpush3.bf16.msra.mxu1 %v5857_v49 }
 0xca4   : > { %v2387_v31 = vmax.f32 %v2385_v48, %v2386_v51  ;;  %5101 = vmatprep.mubr.msk.bf16.mxu1 %vm5382_vm1, %v5381_v32  ;;  %5111 = vmatprep.subr.bf16.mxu1 %v5381_v32 }
 0xca5   : > { %5129 = vmatprep.subr.bf16.mxu0 %v5381_v32 }
 0xca6   : > { %v2388_v5 = vrot.slane %v2387_v31, 1 }
 0xca8   : > { %v2389_v4 = vmax.f32 %v2387_v31, %v2388_v5 }
 0xca9   : > { %5120 = vmatmul.mubr.msk.bf16.vlgmr.msra.gmra.mrb[116].mxu0 %vm1468_vm3, %v5847_v34 }
 0xcaa   : > { %v2390_v7 = vsub.f32 %v2375_v42, %v2389_v4  ;;  %v2391_v9 = vsub.f32 %v2378_v19, %v2389_v4  ;;  %5131 = vmatprep.mubr.msk.bf16.mxu0 %vm5382_vm1, %v5381_v32 }
 0xcac   : > { %v2392_v13 = vmul.f32 1.442695, %v2390_v7  ;;  %v2394_v49 = vmul.f32 1.442695, %v2391_v9 }
 0xcae   : > { %5305 = vpow2.f32 %v2392_v13 }
 0xcaf   : > { %5307 = vpow2.f32 %v2394_v49 }
 0xcb8   : > { %v5306_v17 = vpop.eup %5305 }
 0xcb9   : > { %v5308_v54 = vpop.eup %5307  ;;  %v2396_v55 = vsel %vm343_vm0, %v5306_v17, 0.0 }
 0xcba   : > { %v2397_v26 = vsel %vm343_vm0, %v5308_v54, 0.0 }
 0xcbb   : > { %v2398_v27 = vadd.f32 %v2397_v26, %v2396_v55 }
 0xcbd   : > { %v2399_v60 = vrot.slane %v2398_v27, 4 }
 0xcbf   : > { %v2400_v6 = vadd.f32 %v2399_v60, %v2398_v27 }
 0xcc1   : > { %v2401_v25 = vrot.slane %v2400_v6, 2 }
 0xcc3   : > { %v2402_v34 = vadd.f32 %v2401_v25, %v2400_v6 }
 0xcc5   : > { %v2403_v15 = vrot.slane %v2402_v34, 1 }
 0xcc7   : > { %v2404_v23 = vadd.f32 %v2403_v15, %v2402_v34 }
 0xcc9   : > { %5309 = vrcp.f32 %v2404_v23 }
 0xcd3   : > { %v5310_v19 = vpop.eup %5309 }
 0xcd4   : > { %v6199_v1 = vmul.f32 %v5310_v19, %v5308_v54  ;;  %v6201_v0 = vmul.f32 %v5310_v19, %v5306_v17 }
 0xcd6   : > { %v2411_v42 = vsel %vm343_vm0, %v6199_v1, -inf  ;;  %v2408_v46 = vsel %vm343_vm0, %v6201_v0, -inf }
 0xcd7   : > { %2412 = vmax.xlane.f32.xlu0 %v2411_v42  ;;  %2409 = vmax.xlane.f32.xlu1 %v2408_v46 }
 0xd6c   : > { %v3475_v59 = vpop.f32.mrb[108].mxu0 }
 0xd6d   : > { %v3339_v53 = vpop.f32.mrb[100].mxu1  ;;  %v5097_v22 = vpop.f32.mrb[109].mxu0 }
 0xd6e   : > { %v5079_v20 = vpop.f32.mrb[101].mxu1  ;;  %v3478_v28 = vpop.f32.mrb[110].mxu0 }
 0xd6f   : > { %v3342_v35 = vpop.f32.mrb[102].mxu1  ;;  %v5098_v8 = vpop.f32.mrb[111].mxu0 }
 0xd70   : > { %v3435_v16 = vpack.c.bf16 %v3342_v35, %v3339_v53  ;;  %v5080_v43 = vpop.f32.mrb[103].mxu1 }
 0xd72   : > { %5102 = vmatmul.mubr.msk.bf16.vlgmr.msra.gmra.mrb[108].mxu1 %vm1279_vm2, %v3435_v16 }
 0xd73   : > { %5112 = vmatpush3.bf16.msra.mxu1 %v5865_v61  ;;  %5113 = vmatprep.mubr.msk.bf16.mxu1 %vm5382_vm1, %v5381_v32 }
 0xd74   : > { %v3563_v14 = vpop.f32.mrb[112].mxu0  ;;  %5123 = vmatprep.subr.bf16.mxu1 %v5381_v32 }
 0xd75   : > { %v3427_v47 = vpop.f32.mrb[104].mxu1  ;;  %v5109_v12 = vpop.f32.mrb[113].mxu0 }
 0xd76   : > { %v5091_v48 = vpop.f32.mrb[105].mxu1  ;;  %v3566_v3 = vpop.f32.mrb[114].mxu0 }
 0xd77   : > { %v3430_v51 = vpop.f32.mrb[106].mxu1  ;;  %v5110_v31 = vpop.f32.mrb[115].mxu0 }
 0xd78   : > { %v3437_v5 = vpack.c.bf16 %v3430_v51, %v3427_v47  ;;  %v5092_v4 = vpop.f32.mrb[107].mxu1 }
 0xd79   : > { %v3854_v4 = vsel %vm343_vm0, %v3849_v44, 0 }
 0xd7a   : > { %5114 = vmatmul.mubr.msk.bf16.vlgmr.msra.gmra.mrb[112].mxu1 %vm1279_vm2, %v3437_v5 }
 0xd7b   : > { %5124 = vmatpush3.bf16.msra.mxu1 %v5510_v2  ;;  %5125 = vmatprep.mubr.msk.bf16.mxu1 %vm5382_vm1, %v5381_v32 }
 0xd7c   : > { %v3664_v61 = vpop.f32.mrb[116].mxu0  ;;  %5135 = vmatprep.subr.bf16.mxu1 %v5381_v32 }
 0xd7d   : > { %v5121_v7 = vpop.f32.mrb[117].mxu0  ;;  %v3665_v13 = vadd.f32 %v3664_v61, %v5886_v33  ;;  %v3614_v33 = vsel %vm343_vm0, %v3475_v59, 0.0 }
 0xd7e   : > { %v3667_v9 = vpop.f32.mrb[118].mxu0 }
 0xd7f   : > { %v3668_v49 = vadd.f32 %v3667_v9, %v5888_v10  ;;  %v5122_v17 = vpop.f32.mrb[119].mxu0 }
 0xd81   : > { %v3712_v54 = vpack.c.bf16 %v3668_v49, %v3665_v13 }
 0xd82   : > { %5126 = vmatmul.mubr.msk.bf16.vlgmr.msra.gmra.mrb[116].mxu1 %vm1468_vm3, %v5880_v39 }
 0xd83   : > { %v3714_v55 = vsel %vm343_vm0, %v3712_v54, 0  ;;  %5137 = vmatprep.mubr.msk.bf16.mxu1 %vm5382_vm1, %v5381_v32 }
 0xd84   : > { %5130 = vmatpush3.bf16.xpose.msra.mxu0 %v3714_v55 }
 0xd85   : > { %5141 = vmatprep.subr.bf16.mxu0 %v5381_v32 }
 0xd8b   : > { %5132 = vmatmul.mubr.msk.bf16.vlgmr.msra.gmra.mrb[120].mxu0 %vm343_vm0, %v5510_v2  ;;  %v3621_v2 = vsel %vm343_vm0, %v3478_v28, 0.0 }
 0xd8c   : > { %5142 = vmatpush3.bf16.msra.mxu0 %v5901_v58  ;;  %5145 = vmatprep.mubr.msk.bf16.mxu0 %vm5382_vm1, %v5381_v32  ;;  %v3617_v58 = vsel %vm343_vm0, %v3563_v14, 0.0 }
 0xd8d   : > { %5143 = vmatprep.subr.bf16.mxu0 %v5381_v32 }
 0xd90   : > { %5144 = vmatpush3.bf16.msra.mxu0 %v5941_v40  ;;  %v3624_v40 = vsel %vm343_vm0, %v3566_v3, 0.0 }
 0xd91   : > { %5155 = vmatprep.subr.bf16.mxu0 %v5381_v32 }
 0xe45   : > { %v3519_v39 = vpop.f32.mrb[108].mxu1 }
 0xe46   : > { %v3615_v10 = vsel %vm343_vm0, %v3519_v39, 0.0  ;;  %v5103_v26 = vpop.f32.mrb[109].mxu1 }
 0xe47   : > { %v3616_v27 = vadd.f32 %v3615_v10, %v3614_v33  ;;  %v3522_v60 = vpop.f32.mrb[110].mxu1 }
 0xe48   : > { %v3622_v6 = vsel %vm343_vm0, %v3522_v60, 0.0  ;;  %v5104_v25 = vpop.f32.mrb[111].mxu1 }
 0xe49   : > { %v3623_v34 = vadd.f32 %v3622_v6, %v3621_v2  ;;  %v3618_v15 = vadd.f32 %v3617_v58, %v3616_v27 }
 0xe4b   : > { %v3625_v23 = vadd.f32 %v3624_v40, %v3623_v34 }
 0xe4d   : > { %v3607_v19 = vpop.f32.mrb[112].mxu1 }
 0xe4e   : > { %v3619_v42 = vsel %vm343_vm0, %v3607_v19, 0.0  ;;  %v5115_v46 = vpop.f32.mrb[113].mxu1 }
 0xe4f   : > { %v6240_v59 = vadd.f32 %v3619_v42, %v3618_v15  ;;  %v3610_v53 = vpop.f32.mrb[114].mxu1 }
 0xe50   : > { %v3626_v22 = vsel %vm343_vm0, %v3610_v53, 0.0  ;;  %v5116_v20 = vpop.f32.mrb[115].mxu1 }
 0xe51   : > { %v6243_v28 = vadd.f32 %v3626_v22, %v3625_v23 }
 0xe55   : > { %v3705_v35 = vpop.f32.mrb[116].mxu1 }
 0xe56   : > { %v5127_v8 = vpop.f32.mrb[117].mxu1  ;;  %v3706_v43 = vadd.f32 %v3705_v35, %v5915_v50 }
 0xe57   : > { %v3708_v16 = vpop.f32.mrb[118].mxu1 }
 0xe58   : > { %v3709_v14 = vadd.f32 %v3708_v16, %v5919_v38  ;;  %v5128_v47 = vpop.f32.mrb[119].mxu1 }
 0xe5a   : > { %v3758_v12 = vpack.c.bf16 %v3709_v14, %v3706_v43 }
 0xe5c   : > { %5136 = vmatpush3.bf16.msra.mxu1 %v3758_v12 }
 0xe5d   : > { %5149 = vmatprep.subr.bf16.mxu1 %v5381_v32 }
 0xe5e   : > { %v3750_v48 = vpop.f32.mrb[120].mxu0 }
 0xe5f   : > { %v5133_v3 = vpop.f32.mrb[121].mxu0 }
 0xe60   : > { %v3753_v51 = vpop.f32.mrb[122].mxu0 }
 0xe61   : > { %v3757_v31 = vpack.c.bf16 %v3753_v51, %v3750_v48  ;;  %v5134_v5 = vpop.f32.mrb[123].mxu0  ;;  %v2413_v48 = vpop.xlane.xlu0 %2412 }
 0xe62   : > { %v2410_v51 = vpop.xlane.xlu1 %2409  ;;  %v2415_v5 = vsub.f32 %v6199_v1, %v2413_v48 }
 0xe63   : > { %5138 = vmatmul.mubr.msk.bf16.vlgmr.msra.gmra.mrb[120].mxu1 %vm1468_vm3, %v3757_v31 }
 0xe64   : > { %5151 = vmatprep.mubr.msk.bf16.mxu1 %vm5382_vm1, %v5381_v32 }
 0xe65   : > { %5150 = vmatpush3.bf16.xpose.msra.mxu1 %v3854_v4  ;;  %v2414_v4 = vsub.f32 %v6201_v0, %v2410_v51 }
 0xe66   : > { %5161 = vmatprep.subr.bf16.mxu1 %v5381_v32 }
 0xe6c   : > { %5152 = vmatmul.mubr.msk.bf16.vlgmr.msra.gmra.mrb[124].mxu1 %vm343_vm0, %v3848_v45 }
 0xe6d   : > { %5163 = vmatprep.mubr.msk.bf16.mxu1 %vm5382_vm1, %v5381_v32 }
 0xf36   : > { %v3796_v50 = vpop.f32.mrb[120].mxu1 }
 0xf37   : > { %v5139_v38 = vpop.f32.mrb[121].mxu1 }
 0xf38   : > { %v3799_v61 = vpop.f32.mrb[122].mxu1 }
 0xf39   : > { %v3803_v29 = vpack.c.bf16 %v3799_v61, %v3796_v50  ;;  %v5140_v36 = vpop.f32.mrb[123].mxu1  ;;  %v2418_v61 = vmul.f32 1.442695, %v2415_v5 }
 0xf3b   : > { %5146 = vmatmul.mubr.msk.bf16.vlgmr.msra.gmra.mrb[124].mxu0 %vm343_vm0, %v3803_v29  ;;  %v2416_v29 = vmul.f32 1.442695, %v2414_v4 }
 0xf3c   : > { %5157 = vmatprep.mubr.msk.bf16.mxu0 %vm5382_vm1, %v5381_v32 }
 0xf3f   : > { %v3890_v44 = vpop.f32.mrb[124].mxu1 }
 0xf40   : > { %v5153_v7 = vpop.f32.mrb[125].mxu1 }
 0xf41   : > { %v3893_v9 = vpop.f32.mrb[126].mxu1 }
 0xf42   : > { %v3897_v13 = vpack.c.bf16 %v3893_v9, %v3890_v44  ;;  %v5154_v30 = vpop.f32.mrb[127].mxu1 }
0x100e   : > { %v3841_v37 = vpop.f32.mrb[124].mxu0 }
0x100f   : > { %v5147_v45 = vpop.f32.mrb[125].mxu0  ;;  %v3842_v17 = vadd.f32 %v5951_v18, %v3841_v37 }
0x1010   : > { %v3844_v49 = vpop.f32.mrb[126].mxu0 }
0x1011   : > { %v3845_v54 = vadd.f32 %v5951_v18, %v3844_v49  ;;  %v5148_v55 = vpop.f32.mrb[127].mxu0 }
0x1013   : > { %v3898_v39 = vpack.c.bf16 %v3845_v54, %v3842_v17 }
0x1015   : > { %5156 = vmatpush3.bf16.msra.mxu0 %v3898_v39 }
0x1018   : > { %5158 = vmatmul.mubr.msk.bf16.vlgmr.msra.gmra.mrb[128].mxu0 %vm1468_vm3, %v3897_v13 }
0x10eb   : > { %v3936_v33 = vpop.f32.mrb[128].mxu0 }
0x10ec   : > { %v5159_v10 = vpop.f32.mrb[129].mxu0 }
0x10ed   : > { %v3939_v32 = vpop.f32.mrb[130].mxu0 }
0x10ee   : > { %v3943_v26 = vpack.c.bf16 %v3939_v32, %v3936_v33  ;;  %v5160_v27 = vpop.f32.mrb[131].mxu0 }
0x10f0   : > { %5162 = vmatpush3.bf16.msra.mxu1 %v3943_v26 }
0x10f3   : > { %5164 = vmatmul.mubr.msk.bf16.vlgmr.msra.gmra.mrb[128].mxu1 %vm1468_vm3, %v6010_v11 }
0x11c6   : > { %v3978_v60 = vpop.f32.mrb[128].mxu1 }
0x11c7   : > { %v3979_v2 = vadd.f32 %v3978_v60, %v6165_v41  ;;  %v5165_v58 = vpop.f32.mrb[129].mxu1 }
0x11c8   : > { %v3981_v6 = vpop.f32.mrb[130].mxu1 }
0x11c9   : > { %v3982_v18 = vadd.f32 %v3981_v6, %v6161_v21  ;;  %v5166_v25 = vpop.f32.mrb[131].mxu1  ;;  %v3985_v34 = vsel %vm343_vm0, %v3979_v2, -inf }
0x11cb   : > { %v3986_v15 = vsel %vm343_vm0, %v3982_v18, -inf }
0x11cc   : > { %v3987_v40 = vmax.f32 %v3985_v34, %v3986_v15 }
0x11ce   : > { %v3988_v23 = vrot.slane %v3987_v40, 4 }
0x11d0   : > { %v3989_v19 = vmax.f32 %v3987_v40, %v3988_v23 }
0x11d2   : > { %v3990_v42 = vrot.slane %v3989_v19, 2 }
0x11d4   : > { %v3991_v46 = vmax.f32 %v3989_v19, %v3990_v42 }
0x11d6   : > { %v3992_v53 = vrot.slane %v3991_v46, 1 }
0x11d8   : > { %v3993_v22 = vmax.f32 %v3991_v46, %v3992_v53 }
0x11da   : > { %v3994_v11 = vsub.f32 %v3979_v2, %v3993_v22  ;;  %v3995_v20 = vsub.f32 %v3982_v18, %v3993_v22 }
0x11dc   : > { %v3996_v35 = vmul.f32 1.442695, %v3994_v11  ;;  %v3998_v41 = vmul.f32 1.442695, %v3995_v20 }
0x11de   : > { %5311 = vpow2.f32 %v3996_v35 }
0x11df   : > { %5313 = vpow2.f32 %v3998_v41 }
0x11e8   : > { %v5312_v8 = vpop.eup %5311 }
0x11e9   : > { %v5314_v21 = vpop.eup %5313  ;;  %v4000_v16 = vsel %vm343_vm0, %v5312_v8, 0.0 }
0x11ea   : > { %v4001_v43 = vsel %vm343_vm0, %v5314_v21, 0.0 }
0x11eb   : > { %v4002_v14 = vadd.f32 %v4001_v43, %v4000_v16 }
0x11ed   : > { %v4003_v47 = vrot.slane %v4002_v14, 4 }
0x11ef   : > { %v4004_v12 = vadd.f32 %v4003_v47, %v4002_v14 }
0x11f1   : > { %v4005_v3 = vrot.slane %v4004_v12, 2 }
0x11f3   : > { %v4006_v31 = vadd.f32 %v4005_v3, %v4004_v12 }
0x11f5   : > { %v4007_v50 = vrot.slane %v4006_v31, 1 }
0x11f7   : > { %v4008_v38 = vadd.f32 %v4007_v50, %v4006_v31 }
0x11f9   : > { %5315 = vrcp.f32 %v4008_v38 }
0x11fa   : > { %5317 = vpow2.f32 %v2418_v61 }
0x11fb   : > { %5319 = vpow2.f32 %v2416_v29 }
0x1203   : > { %v5316_v36 = vpop.eup %5315 }
0x1204   : > { %v4011_v44 = vmul.f32 %v5316_v36, %v5314_v21  ;;  %v4010_v7 = vmul.f32 %v5316_v36, %v5312_v8  ;;  %v5318_v9 = vpop.eup %5317 }
0x1205   : > { %v5320_v37 = vpop.eup %5319  ;;  %v2423_v1 = vsel %vm343_vm0, %v5318_v9, 0.0 }
0x1206   : > { %v4015_v13 = vsel %vm343_vm0, %v4011_v44, -inf  ;;  %v4012_v30 = vsel %vm343_vm0, %v4010_v7, -inf  ;;  %v2420_v0 = vsel %vm343_vm0, %v5320_v37, 0.0 }
0x1207   : > { %4016 = vmax.xlane.f32.xlu1 %v4015_v13  ;;  %4013 = vmax.xlane.f32.xlu0 %v4012_v30 }
0x120b   : > { %2424 = vadd.xlane.f32.xlu1 %v2423_v1  ;;  %2421 = vadd.xlane.f32.xlu0 %v2420_v0 }
0x1294   : > { %v4017_v45 = vpop.xlane.xlu1 %4016  ;;  %v4014_v49 = vpop.xlane.xlu0 %4013 }
0x1295   : > { %v4019_v17 = vsub.f32 %v4011_v44, %v4017_v45  ;;  %v4018_v54 = vsub.f32 %v4010_v7, %v4014_v49  ;;  %v4496_v49 = vld [vmem:[%s6385_s6 + $0x7] ss:$0 sm:$0xff] }
0x1297   : > { %v4022_v55 = vmul.f32 1.442695, %v4019_v17  ;;  %v4020_v39 = vmul.f32 1.442695, %v4018_v54  ;;  %v4480_v17 = vld [vmem:[%s6385_s6 + $0x5] ss:$0 sm:$0xff] }
0x1298   : > { %v2425_v33 = vpop.xlane.xlu1 %2424  ;;  %v2422_v10 = vpop.xlane.xlu0 %2421 }
0x1299   : > { %5321 = vpow2.f32 %v4022_v55 }
0x129a   : > { %5323 = vpow2.f32 %v4020_v39  ;;  %v1954_v39 = vadd.f32 %v4480_v17, %v5917_v24 }
0x129b   : > { %5325 = vrcp.f32 %v2425_v33 }
0x129c   : > { %5327 = vrcp.f32 %v2422_v10  ;;  %v1953_v10 = vadd.f32 %v4480_v17, %v5912_v52 }
0x12a3   : > { %v5322_v32 = vpop.eup %5321 }
0x12a4   : > { %v5324_v26 = vpop.eup %5323  ;;  %v4027_v27 = vsel %vm343_vm0, %v5322_v32, 0.0 }
0x12a5   : > { %v5326_v60 = vpop.eup %5325  ;;  %4028 = vadd.xlane.f32.xlu1 %v4027_v27  ;;  %v4024_v2 = vsel %vm343_vm0, %v5324_v26, 0.0 }
0x12a6   : > { %v5328_v58 = vpop.eup %5327  ;;  %4025 = vadd.xlane.f32.xlu0 %v4024_v2  ;;  %v2429_v6 = vmul.f32 %v5326_v60, %v5318_v9  ;;  %v5369_v60 = vld [vmem:[%s5450_s15 + $0x8] sm:$0xff] }
0x12a7   : > { %v2428_v18 = vmul.f32 %v5328_v58, %v5320_v37  ;;  %v4495_v37 = vld [vmem:[%s6385_s6 + $0x6] ss:$0 sm:$0xff] }
0x12a8   : > { %v2431_v25 = vadd.f32 %v2429_v6, %v5486_v57  ;;  %v5370_v58 = vld [vmem:[%s5450_s15] sm:$0xff] }
0x12a9   : > { %v2430_v34 = vadd.f32 %v2428_v18, %v5484_v56 }
0x12aa   : > { %v2437_v15 = vsel %vm343_vm0, %v2431_v25, 0.0 }
0x12ab   : > { %2438 = vadd.xlane.f32.xlu1 %v2437_v15  ;;  %v2434_v40 = vsel %vm343_vm0, %v2430_v34, 0.0 }
0x12ac   : > { %2435 = vadd.xlane.f32.xlu0 %v2434_v40 }
0x1332   : > { %v4029_v23 = vpop.xlane.xlu1 %4028 }
0x1333   : > { %5329 = vrcp.f32 %v4029_v23  ;;  %v4026_v19 = vpop.xlane.xlu0 %4025 }
0x1334   : > { %5331 = vrcp.f32 %v4026_v19 }
0x1338   : > { %v2439_v42 = vpop.xlane.xlu1 %2438 }
0x1339   : > { %v2436_v46 = vpop.xlane.xlu0 %2435  ;;  %v2441_v53 = vmul.f32 0.03125, %v2439_v42 }
0x133a   : > { %v2440_v22 = vmul.f32 0.03125, %v2436_v46 }
0x133b   : > { %v2443_v35 = vsub.f32 %v2431_v25, %v2441_v53 }
0x133c   : > { %v2442_v41 = vsub.f32 %v2430_v34, %v2440_v22 }
0x133d   : > { %v5330_v11 = vpop.eup %5329  ;;  %v2445_v43 = vmul.f32 %v2443_v35, %v2443_v35 }
0x133e   : > { %v5332_v20 = vpop.eup %5331  ;;  %v4033_v57 = vmul.f32 %v5330_v11, %v5322_v32  ;;  %v2444_v47 = vmul.f32 %v2442_v41, %v2442_v41 }
0x133f   : > { %v4032_v56 = vmul.f32 %v5332_v20, %v5324_v26  ;;  %v2449_v12 = vsel %vm343_vm0, %v2445_v43, 0.0  ;;  %v3629_v20 = vadd.f32 %v4480_v17, %v6243_v28 }
0x1340   : > { %v4035_v8 = vadd.f32 %v4033_v57, %v5494_v63  ;;  %v2446_v48 = vsel %vm343_vm0, %v2444_v47, 0.0  ;;  %v3628_v57 = vadd.f32 %v4480_v17, %v6240_v59 }
0x1341   : > { %v4034_v21 = vadd.f32 %v4032_v56, %v5492_v62 }
0x1342   : > { %v4039_v16 = vsel %vm343_vm0, %v4035_v8, 0.0 }
0x1343   : > { %4040 = vadd.xlane.f32.xlu1 %v4039_v16  ;;  %v4036_v14 = vsel %vm343_vm0, %v4034_v21, 0.0 }
0x1344   : > { %4037 = vadd.xlane.f32.xlu0 %v4036_v14  ;;  %v5371_v14 = vld [vmem:[%s5450_s15 + $0x18] sm:$0xff] }
0x1347   : > { %2450 = vadd.xlane.f32.xlu1 %v2449_v12 }
0x1348   : > { %2447 = vadd.xlane.f32.xlu0 %v2446_v48  ;;  %v5372_v48 = vld [vmem:[%s5450_s15 + $0x10] sm:$0xff]  ;;  %s334_s15 = scalar_lea.vmem %s6388_s9, %s4401_s12 }
0x13d0   : > { %v4041_v3 = vpop.xlane.xlu1 %4040 }
0x13d1   : > { %v4043_v51 = vmul.f32 0.03125, %v4041_v3  ;;  %v4038_v31 = vpop.xlane.xlu0 %4037 }
0x13d2   : > { %v4042_v63 = vmul.f32 0.03125, %v4038_v31 }
0x13d3   : > { %v4045_v5 = vsub.f32 %v4035_v8, %v4043_v51 }
0x13d4   : > { %v4044_v62 = vsub.f32 %v4034_v21, %v4042_v63  ;;  %v2451_v4 = vpop.xlane.xlu1 %2450 }
0x13d5   : > { %v2453_v50 = vmul.f32 0.03125, %v2451_v4  ;;  %v2448_v38 = vpop.xlane.xlu0 %2447  ;;  %v4047_v61 = vmul.f32 %v4045_v5, %v4045_v5 }
0x13d6   : > { %v2452_v29 = vmul.f32 0.03125, %v2448_v38  ;;  %v4046_v36 = vmul.f32 %v4044_v62, %v4044_v62 }
0x13d7   : > { %v2455_v44 = vadd.f32 1e-05, %v2453_v50  ;;  %v4051_v7 = vsel %vm343_vm0, %v4047_v61, 0.0 }
0x13d8   : > { %v2454_v9 = vadd.f32 1e-05, %v2452_v29  ;;  %4052 = vadd.xlane.f32.xlu1 %v4051_v7  ;;  %v4048_v13 = vsel %vm343_vm0, %v4046_v36, 0.0 }
0x13d9   : > { %5333 = vrsqrt.f32 %v2455_v44  ;;  %4049 = vadd.xlane.f32.xlu0 %v4048_v13 }
0x13da   : > { %5335 = vrsqrt.f32 %v2454_v9 }
0x13e3   : > { %v5334_v30 = vpop.eup %5333 }
0x13e4   : > { %v5336_v1 = vpop.eup %5335  ;;  %v2459_v0 = vmul.f32 %v5334_v30, %v2443_v35 }
0x13e5   : > { %v2458_v45 = vmul.f32 %v5336_v1, %v2442_v41 }
0x13e6   : > { %v2465_v54 = vmul.f32 %v4495_v37, %v2459_v0 }
0x13e7   : > { %v2464_v55 = vmul.f32 %v4495_v37, %v2458_v45 }
0x13e8   : > { %v2471_v33 = vadd.f32 %v4496_v49, %v2465_v54 }
0x13e9   : > { %v2470_v32 = vadd.f32 %v4496_v49, %v2464_v55  ;;  %v4529_v55 = vld [vmem:[%s6385_s6 + $0x8] ss:$0 sm:$0xff] }
0x13ea   : > { %v2473_v26 = vadd.f32 %v2471_v33, %v1954_v39 }
0x13eb   : > { %v2472_v27 = vadd.f32 %v2470_v32, %v1953_v10  ;;  %v4530_v32 = vld [vmem:[%s6385_s6 + $0x9] ss:$0 sm:$0xff] }
0x13ec   : > { %v6308_v2 = vadd.f32 %v5369_v60, %v2473_v26 }
0x13ed   : > { %v6311_v6 = vadd.f32 %v5370_v58, %v2472_v27 }
0x13ee   : > { %v4077_v18 = vsel %vm343_vm0, %v6308_v2, 0.0 }
0x13ef   : > { %4078 = vadd.xlane.f32.xlu1 %v4077_v18  ;;  %v4074_v25 = vsel %vm343_vm0, %v6311_v6, 0.0 }
0x13f0   : > { %4075 = vadd.xlane.f32.xlu0 %v4074_v25  ;;  %v5229_v25 = vld [vmem:[%s6384_s5] sm:$0xff]  }
0x13f1   : > { %5167 = vmatprep.subr.bf16.mxu0 %v5229_v25 }
0x13f2   : > { %5168 = vmatpush3.bf16.msra.mxu0 %v5229_v25 }
0x1465   : > { %v4053_v24 = vpop.xlane.xlu1 %4052 }
0x1466   : > { %v4055_v34 = vmul.f32 0.03125, %v4053_v24  ;;  %v4050_v52 = vpop.xlane.xlu0 %4049  ;;  %v5230_v24 = vld [vmem:[%s6384_s5 + $0x8] sm:$0xff]  }
0x1467   : > { %v4054_v15 = vmul.f32 0.03125, %v4050_v52  ;;  %5169 = vmatprep.subr.bf16.mxu0 %v5230_v24 }
0x1468   : > { %v4057_v40 = vadd.f32 1e-05, %v4055_v34  ;;  %5170 = vmatpush3.bf16.msra.mxu0 %v5230_v24 }
0x1469   : > { %v4056_v23 = vadd.f32 1e-05, %v4054_v15 }
0x146a   : > { %5337 = vrsqrt.f32 %v4057_v40 }
0x146b   : > { %5339 = vrsqrt.f32 %v4056_v23 }
0x1474   : > { %v5338_v19 = vpop.eup %5337 }
0x1475   : > { %v5340_v42 = vpop.eup %5339  ;;  %v4061_v46 = vmul.f32 %v5338_v19, %v4045_v5 }
0x1476   : > { %v4060_v53 = vmul.f32 %v5340_v42, %v4044_v62 }
0x1477   : > { %v4063_v22 = vmul.f32 %v4495_v37, %v4061_v46 }
0x1478   : > { %v4062_v11 = vmul.f32 %v4495_v37, %v4060_v53 }
0x1479   : > { %v4065_v35 = vadd.f32 %v4496_v49, %v4063_v22 }
0x147a   : > { %v4064_v41 = vadd.f32 %v4496_v49, %v4062_v11 }
0x147b   : > { %v4067_v56 = vadd.f32 %v4065_v35, %v3629_v20 }
0x147c   : > { %v4079_v8 = vpop.xlane.xlu1 %4078  ;;  %v4066_v21 = vadd.f32 %v4064_v41, %v3628_v57 }
0x147d   : > { %v4087_v16 = vmul.f32 0.03125, %v4079_v8  ;;  %v4076_v43 = vpop.xlane.xlu0 %4075  ;;  %v6320_v47 = vadd.f32 %v5371_v14, %v4067_v56  ;;  %v5231_v56 = vld [vmem:[%s6384_s5 + $0x10] sm:$0xff]   ;;  %v5232_v8 = vld [vmem:[%s6384_s5 + $0x18] sm:$0xff]  }
0x147e   : > { %v4086_v12 = vmul.f32 0.03125, %v4076_v43  ;;  %v6323_v3 = vadd.f32 %v5372_v48, %v4066_v21  ;;  %5175 = vmatprep.subr.bf16.mxu1 %v5231_v56  ;;  %v4531_v21 = vld [vmem:[%s6387_s8] ss:$0 sm:$0xff] }
0x147f   : > { %v4091_v51 = vsub.f32 %v6308_v2, %v4087_v16  ;;  %v4083_v28 = vsel %vm343_vm0, %v6320_v47, 0.0  ;;  %5176 = vmatpush3.bf16.xpose.msra.mxu1 %v5231_v56 }
0x1480   : > { %v4090_v59 = vsub.f32 %v6311_v6, %v4086_v12  ;;  %4084 = vadd.xlane.f32.xlu1 %v4083_v28  ;;  %v4080_v31 = vsel %vm343_vm0, %v6323_v3, 0.0  ;;  %5177 = vmatprep.subr.bf16.mxu1 %v5232_v8 }
0x1481   : > { %4081 = vadd.xlane.f32.xlu0 %v4080_v31  ;;  %v4095_v63 = vmul.f32 %v4091_v51, %v4091_v51 }
0x1482   : > { %v4094_v5 = vmul.f32 %v4090_v59, %v4090_v59 }
0x1483   : > { %v4101_v62 = vsel %vm343_vm0, %v4095_v63, 0.0 }
0x1484   : > { %4102 = vadd.xlane.f32.xlu1 %v4101_v62  ;;  %v4098_v4 = vsel %vm343_vm0, %v4094_v5, 0.0 }
0x1485   : > { %4099 = vadd.xlane.f32.xlu0 %v4098_v4 }
0x1487   : > { %5178 = vmatpush3.bf16.xpose.msra.mxu1 %v5232_v8 }
0x150d   : > { %v4085_v50 = vpop.xlane.xlu1 %4084 }
0x150e   : > { %v4089_v38 = vmul.f32 0.03125, %v4085_v50  ;;  %v4082_v61 = vpop.xlane.xlu0 %4081 }
0x150f   : > { %v4088_v29 = vmul.f32 0.03125, %v4082_v61 }
0x1510   : > { %v4093_v36 = vsub.f32 %v6320_v47, %v4089_v38 }
0x1511   : > { %v4092_v44 = vsub.f32 %v6323_v3, %v4088_v29  ;;  %v4103_v7 = vpop.xlane.xlu1 %4102 }
0x1512   : > { %v4111_v9 = vmul.f32 0.03125, %v4103_v7  ;;  %v4100_v13 = vpop.xlane.xlu0 %4099  ;;  %v4097_v30 = vmul.f32 %v4093_v36, %v4093_v36 }
0x1513   : > { %v4110_v37 = vmul.f32 0.03125, %v4100_v13  ;;  %v4096_v1 = vmul.f32 %v4092_v44, %v4092_v44 }
0x1514   : > { %v4115_v0 = vadd.f32 1e-05, %v4111_v9  ;;  %v4107_v45 = vsel %vm343_vm0, %v4097_v30, 0.0 }
0x1515   : > { %v4114_v49 = vadd.f32 1e-05, %v4110_v37  ;;  %4108 = vadd.xlane.f32.xlu1 %v4107_v45  ;;  %v4104_v17 = vsel %vm343_vm0, %v4096_v1, 0.0 }
0x1516   : > { %5341 = vrsqrt.f32 %v4115_v0  ;;  %4105 = vadd.xlane.f32.xlu0 %v4104_v17 }
0x1517   : > { %5343 = vrsqrt.f32 %v4114_v49 }
0x1520   : > { %v5342_v54 = vpop.eup %5341 }
0x1521   : > { %v5344_v39 = vpop.eup %5343  ;;  %v4123_v33 = vmul.f32 %v5342_v54, %v4091_v51 }
0x1522   : > { %v4122_v10 = vmul.f32 %v5344_v39, %v4090_v59 }
0x1523   : > { %v4131_v26 = vmul.f32 %v4529_v55, %v4123_v33 }
0x1524   : > { %v4130_v27 = vmul.f32 %v4529_v55, %v4122_v10 }
0x1525   : > { %v4139_v60 = vadd.f32 %v4530_v32, %v4131_v26 }
0x1526   : > { %v4138_v58 = vadd.f32 %v4530_v32, %v4130_v27 }
0x1528   : > { %v4146_v18 = vpack.c.bf16 %v4139_v60, %v4138_v58 }
0x152a   : > { %5171 = vmatprep.mubr.msk.bf16.mxu0 %vm343_vm0, %v4146_v18 }
0x15a2   : > { %v4109_v34 = vpop.xlane.xlu1 %4108 }
0x15a3   : > { %v4113_v52 = vmul.f32 0.03125, %v4109_v34  ;;  %v4106_v15 = vpop.xlane.xlu0 %4105 }
0x15a4   : > { %v4112_v40 = vmul.f32 0.03125, %v4106_v15 }
0x15a5   : > { %v4117_v23 = vadd.f32 1e-05, %v4113_v52 }
0x15a6   : > { %v4116_v19 = vadd.f32 1e-05, %v4112_v40 }
0x15a7   : > { %5345 = vrsqrt.f32 %v4117_v23  ;;  %v4540_v23 = vld [vmem:[%s6385_s6 + $0xa] ss:$0 sm:$0xff] }
0x15a8   : > { %5347 = vrsqrt.f32 %v4116_v19 }
0x15b1   : > { %v5346_v42 = vpop.eup %5345 }
0x15b2   : > { %v5348_v46 = vpop.eup %5347  ;;  %v4125_v53 = vmul.f32 %v5346_v42, %v4093_v36 }
0x15b3   : > { %v4124_v22 = vmul.f32 %v5348_v46, %v4092_v44 }
0x15b4   : > { %v4133_v11 = vmul.f32 %v4529_v55, %v4125_v53 }
0x15b5   : > { %v4132_v20 = vmul.f32 %v4529_v55, %v4124_v22 }
0x15b6   : > { %v4141_v35 = vadd.f32 %v4530_v32, %v4133_v11 }
0x15b7   : > { %v4140_v57 = vadd.f32 %v4530_v32, %v4132_v20 }
0x15b9   : > { %v4147_v41 = vpack.c.bf16 %v4141_v35, %v4140_v57 }
0x15bb   : > { %5172 = vmatmul.mubr.msk.bf16.vlgmr.msra.gmra.mrb[132].mxu0 %vm343_vm0, %v4147_v41 }
0x168e   : > { %v5173_v16 = vpop.f32.mrb[132].mxu0 }
0x168f   : > { %v4216_v43 = vadd.f32 %v5173_v16, %v4531_v21  ;;  %v4207_v14 = vpop.f32.mrb[133].mxu0 }
0x1690   : > { %v4208_v12 = vadd.f32 %v4531_v21, %v4207_v14  ;;  %v5174_v48 = vpop.f32.mrb[134].mxu0 }
0x1691   : > { %v4228_v51 = vmul.f32 0.044715, %v4216_v43  ;;  %v4219_v28 = vadd.f32 %v5174_v48, %v4531_v21  ;;  %v4210_v59 = vpop.f32.mrb[135].mxu0  ;;  %v4224_v32 = vmul.f32 0.5, %v4216_v43 }
0x1692   : > { %v4226_v31 = vmul.f32 0.044715, %v4208_v12  ;;  %v4211_v63 = vadd.f32 %v4531_v21, %v4210_v59  ;;  %v4222_v60 = vmul.f32 0.5, %v4208_v12 }
0x1693   : > { %v4232_v5 = vmul.f32 %v4228_v51, %v4216_v43  ;;  %v4229_v62 = vmul.f32 0.044715, %v4219_v28  ;;  %v4225_v26 = vmul.f32 0.5, %v4219_v28 }
0x1694   : > { %v4230_v4 = vmul.f32 %v4226_v31, %v4208_v12  ;;  %v4227_v50 = vmul.f32 0.044715, %v4211_v63  ;;  %v4223_v58 = vmul.f32 0.5, %v4211_v63 }
0x1695   : > { %v4236_v38 = vmul.f32 %v4232_v5, %v4216_v43  ;;  %v4233_v61 = vmul.f32 %v4229_v62, %v4219_v28 }
0x1696   : > { %v4234_v29 = vmul.f32 %v4230_v4, %v4208_v12  ;;  %v4231_v36 = vmul.f32 %v4227_v50, %v4211_v63 }
0x1697   : > { %v4240_v44 = vadd.f32 %v4236_v38, %v4216_v43  ;;  %v4237_v7 = vmul.f32 %v4233_v61, %v4219_v28 }
0x1698   : > { %v4235_v9 = vmul.f32 %v4231_v36, %v4211_v63  ;;  %v4238_v13 = vadd.f32 %v4234_v29, %v4208_v12 }
0x1699   : > { %v4244_v30 = vmul.f32 0.7978846, %v4240_v44  ;;  %v4241_v37 = vadd.f32 %v4237_v7, %v4219_v28 }
0x169a   : > { %v4239_v1 = vadd.f32 %v4235_v9, %v4211_v63  ;;  %v4242_v0 = vmul.f32 0.7978846, %v4238_v13 }
0x169b   : > { %5349 = vtanh.f32 %v4244_v30  ;;  %v4245_v45 = vmul.f32 0.7978846, %v4241_v37 }
0x169c   : > { %v4243_v49 = vmul.f32 0.7978846, %v4239_v1  ;;  %5351 = vtanh.f32 %v4242_v0 }
0x169d   : > { %5353 = vtanh.f32 %v4245_v45 }
0x169e   : > { %5355 = vtanh.f32 %v4243_v49 }
0x16a5   : > { %v5350_v17 = vpop.eup %5349 }
0x16a6   : > { %v5352_v54 = vpop.eup %5351  ;;  %v4252_v55 = vadd.f32 1.0, %v5350_v17 }
0x16a7   : > { %v5354_v39 = vpop.eup %5353  ;;  %v4250_v33 = vadd.f32 1.0, %v5352_v54 }
0x16a8   : > { %v5356_v10 = vpop.eup %5355  ;;  %v4253_v27 = vadd.f32 1.0, %v5354_v39  ;;  %v4256_v25 = vmul.f32 %v4252_v55, %v4224_v32 }
0x16a9   : > { %v4251_v18 = vadd.f32 1.0, %v5356_v10  ;;  %v4254_v34 = vmul.f32 %v4250_v33, %v4222_v60 }
0x16aa   : > { %v4257_v24 = vmul.f32 %v4253_v27, %v4225_v26 }
0x16ab   : > { %v4255_v52 = vmul.f32 %v4251_v18, %v4223_v58 }
0x16ac   : > { %v4264_v15 = vpack.c.bf16 %v4257_v24, %v4256_v25 }
0x16ad   : > { %v4263_v40 = vpack.c.bf16 %v4255_v52, %v4254_v34 }
0x16af   : > { %5179 = vmatprep.mubr.bf16.mxu1 %v4263_v40 }
0x16b0   : > { %5180 = vmatmul.mubr.bf16.vlgmr.msra.gmra.mrb[132].mxu1 %v4264_v15 }
0x1783   : > { %v5181_v19 = vpop.f32.mrb[132].mxu1 }
0x1784   : > { %v4316_v42 = vpop.f32.mrb[133].mxu1  ;;  %v4325_v22 = vadd.f32 %v5181_v19, %v4540_v23 }
0x1785   : > { %v4317_v46 = vadd.f32 %v4540_v23, %v4316_v42  ;;  %v5182_v53 = vpop.f32.mrb[134].mxu1 }
0x1786   : > { %v4319_v11 = vpop.f32.mrb[135].mxu1  ;;  %v4328_v35 = vadd.f32 %v5182_v53, %v4540_v23  ;;  %v4333_v56 = vadd.f32 %v4325_v22, %v6323_v3 }
0x1787   : > { %v4331_v20 = vadd.f32 %v4317_v46, %v6311_v6  ;;  %v4320_v57 = vadd.f32 %v4540_v23, %v4319_v11 }
0x1788   : > { %v4334_v8 = vadd.f32 %v4328_v35, %v6320_v47  ;;  %4337 = vst.msk [vmem:[%s334_s15 + $0x10] sm:$0xff] %vm343_vm0, %v4333_v56 }
0x1789   : > { %4335 = vst.msk [vmem:[%s334_s15] sm:$0xff] %vm343_vm0, %v4331_v20  ;;  %v4332_v41 = vadd.f32 %v4320_v57, %v6308_v2 }
0x178a   : > { %4338 = vst.msk [vmem:[%s334_s15 + $0x18] sm:$0xff] %vm343_vm0, %v4334_v8 }
0x178b   : > { %4336 = vst.msk [vmem:[%s334_s15 + $0x8] sm:$0xff] %vm343_vm0, %v4332_v41 }
0x178c PF: > { %s19_s30 = sadd.s32 1, %s5379_s30  }
0x178d   : > { %p16_p4 = scmp.ge.s32.totalorder %s19_s30, 4  }
0x178f   :  { %18 = sbr.rel (!%p16_p4) target bundleno = 1 (0x1), region = 93 }

</bundles_post_ra>
